<compile_context>
chip_gen: v7x
topology: tpu7x:2x2x1
jax: 0.10.0
libtpu: 0.0.40
codegen_flags: <defaults>
</compile_context>

<pallas_src>
import jax
import jax.numpy as jnp
from jax.experimental import pallas as pl
from jax.experimental.pallas import tpu as pltpu

BN_EPS = 1e-5

_COMPILER_PARAMS = pltpu.CompilerParams(
    dimension_semantics=("parallel",),      # 1-D grid -> shards across TCs
    vmem_limit_bytes=48 * 1024 * 1024,      # safe on v7x (64 MiB/TC), roomy on v5e/v6e
)


def _round_up(x, m):
    return ((x + m - 1) // m) * m


def _pick_row_tile(rows):
    for cand in (2048, 1024, 512, 256, 128, 64, 32, 16, 8):
        if rows % cand == 0:
            return cand
    return rows


# ----------------------------- kernels -----------------------------
def _conv_body(x_hwc, w_ref, b_ref, y_ref, stats_ref, xpad_ref, H, W, Cin):
    """3x3 SAME conv + bias for one image, plus centered BN partial stats."""
    HW = H * W
    Wp = xpad_ref.shape[1]
    Cout = w_ref.shape[-1]

    # SAME padding: zero only the 1-pixel halo strips (every step), then write
    # the tile interior.  Right-pad columns [W+1 : Wp) are zeroed in one strip.
    xpad_ref[0:1, :, :] = jnp.zeros((1, Wp, Cin), jnp.float32)
    xpad_ref[H + 1:H + 2, :, :] = jnp.zeros((1, Wp, Cin), jnp.float32)
    xpad_ref[:, 0:1, :] = jnp.zeros((H + 2, 1, Cin), jnp.float32)
    xpad_ref[:, W + 1:, :] = jnp.zeros((H + 2, Wp - (W + 1), Cin), jnp.float32)
    xpad_ref[1:1 + H, 1:1 + W, :] = x_hwc

    # 3x3 conv = 9 accumulating MXU matmuls (no im2col slab / concatenate).
    y = jnp.zeros((HW, Cout), jnp.float32)
    for dy in range(3):
        for dx in range(3):
            view = xpad_ref[dy:dy + H, dx:dx + W, :].reshape(HW, Cin)
            y = y + jnp.dot(view, w_ref[dy, dx],
                            preferred_element_type=jnp.float32)
    y = y + b_ref[...]                                              # (HW, Cout)
    y_ref[0] = y

    # Centered single-pass BN partial stats: per-image mean and M2 (sum of
    # squared deviations from the per-image mean).  Two plain row stores.
    mean = jnp.sum(y, axis=0, keepdims=True) * (1.0 / HW)           # (1, Cout)
    d = y - mean
    stats_ref[0, 0:1, :] = mean
    stats_ref[0, 1:2, :] = jnp.sum(d * d, axis=0, keepdims=True)


def _make_conv1_kernel(H, W, Cin):
    def kernel(x_ref, w_ref, b_ref, y_ref, stats_ref, xpad_ref):
        _conv_body(x_ref[0], w_ref, b_ref, y_ref, stats_ref, xpad_ref, H, W, Cin)
    return kernel


def _make_conv2_kernel(H, W, Cin):
    def kernel(y_ref, scale_ref, shift_ref, w_ref, b_ref, y2_ref, stats_ref,
               xpad_ref):
        # BN1 affine + ReLU (pre-folded scale/shift), then conv2.
        a = jnp.maximum(y_ref[0] * scale_ref[...] + shift_ref[...], 0.0)
        _conv_body(a.reshape(H, W, Cin), w_ref, b_ref, y2_ref, stats_ref,
                   xpad_ref, H, W, Cin)
    return kernel


def _affine_relu_kernel(y_ref, scale_ref, shift_ref, o_ref):
    o_ref[...] = jnp.maximum(y_ref[...] * scale_ref[...] + shift_ref[...], 0.0)


# ----------------------------- wrapper -----------------------------
def _bn_scale_shift(stats, gamma, beta, hw):
    """Fold training-mode BatchNorm (biased variance) into one per-channel FMA.

    stats[:, 0, :] = per-image mean, stats[:, 1, :] = per-image M2; merged with
    the parallel (Chan) variance combination -> numerically stable vs
    E[x^2] - E[x]^2.
    """
    n_img = stats.shape[0]
    means = stats[:, 0, :]                                           # (N, C)
    m2s = stats[:, 1, :]                                             # (N, C)
    mean = jnp.mean(means, axis=0)                                   # (C,)
    m2 = jnp.sum(m2s, axis=0) + hw * jnp.sum((means - mean) ** 2, axis=0)
    var = jnp.maximum(m2 / (n_img * hw), 0.0)
    scale = gamma / jnp.sqrt(var + BN_EPS)
    shift = beta - mean * scale
    return scale.reshape(1, -1), shift.reshape(1, -1)


def unet_module_nhwc(x_nhwc, params):
    """Forward pass in NHWC. x_nhwc: (N, H, W, Cin) f32 -> (N, H, W, Cout)."""
    N, H, W, Cin = x_nhwc.shape
    Cout = params["w1"].shape[-1]
    HW = H * W
    Wp = _round_up(W + 2, 8)            # 8-aligned row pitch for padded scratch

    b1 = params["b1"].reshape(1, Cout)
    b2 = params["b2"].reshape(1, Cout)

    vec_spec = pl.BlockSpec((1, Cout), lambda n: (0, 0))
    act_spec = pl.BlockSpec((1, HW, Cout), lambda n: (n, 0, 0))
    stats_spec = pl.BlockSpec((1, 2, Cout), lambda n: (n, 0, 0))
    act_shape = jax.ShapeDtypeStruct((N, HW, Cout), jnp.float32)
    stats_shape = jax.ShapeDtypeStruct((N, 2, Cout), jnp.float32)

    # ---- pass 1: conv1 + bias, centered BN1 partial stats ----
    y1, stats1 = pl.pallas_call(
        _make_conv1_kernel(H, W, Cin),
        grid=(N,),
        in_specs=[
            pl.BlockSpec((1, H, W, Cin), lambda n: (n, 0, 0, 0)),
            pl.BlockSpec((3, 3, Cin, Cout), lambda n: (0, 0, 0, 0)),
            vec_spec,
        ],
        out_specs=(act_spec, stats_spec),
        out_shape=(act_shape, stats_shape),
        scratch_shapes=[pltpu.VMEM((H + 2, Wp, Cin), jnp.float32)],
        compiler_params=_COMPILER_PARAMS,
    )(x_nhwc, params["w1"], b1)
    scale1, shift1 = _bn_scale_shift(stats1, params["g1"], params["be1"], HW)

    # ---- pass 2: BN1 affine + ReLU + conv2 + bias, centered BN2 stats ----
    y2, stats2 = pl.pallas_call(
        _make_conv2_kernel(H, W, Cout),
        grid=(N,),
        in_specs=[
            act_spec, vec_spec, vec_spec,
            pl.BlockSpec((3, 3, Cout, Cout), lambda n: (0, 0, 0, 0)),
            vec_spec,
        ],
        out_specs=(act_spec, stats_spec),
        out_shape=(act_shape, stats_shape),
        scratch_shapes=[pltpu.VMEM((H + 2, Wp, Cout), jnp.float32)],
        compiler_params=_COMPILER_PARAMS,
    )(y1, scale1, shift1, params["w2"], b2)
    scale2, shift2 = _bn_scale_shift(stats2, params["g2"], params["be2"], HW)

    # ---- pass 3: BN2 affine + ReLU over one flattened lane-dense slab ----
    total = N * HW * Cout
    if Cout < 128 and 128 % Cout == 0 and total % 128 == 0:
        lanes = 128                     # lane-dense output stores (no vst.msk)
    else:
        lanes = Cout                    # already >=128-wide or non-divisible
    rows = total // lanes
    rep = lanes // Cout
    scale2t = jnp.tile(scale2, (1, rep))
    shift2t = jnp.tile(shift2, (1, rep))
    tr = _pick_row_tile(rows)           # large blocks -> near HBM roofline

    out_flat = pl.pallas_call(
        _affine_relu_kernel,
        grid=(rows // tr,),
        in_specs=[
            pl.BlockSpec((tr, lanes), lambda i: (i, 0)),
            pl.BlockSpec((1, lanes), lambda i: (0, 0)),
            pl.BlockSpec((1, lanes), lambda i: (0, 0)),
        ],
        out_specs=pl.BlockSpec((tr, lanes), lambda i: (i, 0)),
        out_shape=jax.ShapeDtypeStruct((rows, lanes), jnp.float32),
        compiler_params=_COMPILER_PARAMS,
    )(y2.reshape(rows, lanes), scale2t, shift2t)

    return out_flat.reshape(N, H, W, Cout)


def unet_module(x_nchw, params):
    """PyTorch-parity NCHW wrapper.  Keep the surrounding model NHWC end-to-end
    to drop both transposes (they are pure layout churn around the kernels)."""
    x_nhwc = jnp.transpose(x_nchw, (0, 2, 3, 1))
    out = unet_module_nhwc(x_nhwc, params)
    return jnp.transpose(out, (0, 3, 1, 2))


# ----------------------------- reference (plain JAX) -----------------------------
def _reference_nchw(x_nchw, params):
    x = jnp.transpose(x_nchw, (0, 2, 3, 1))

    def conv3(y, w, b):
        y = jax.lax.conv_general_dilated(
            y, w, (1, 1), "SAME", dimension_numbers=("NHWC", "HWIO", "NHWC"))
        return y + b

    def bn(y, g, b):
        m = y.mean(axis=(0, 1, 2))
        v = ((y - m) ** 2).mean(axis=(0, 1, 2))
        return (y - m) / jnp.sqrt(v + BN_EPS) * g + b

    out = jax.nn.relu(bn(conv3(x, params["w1"], params["b1"]),
                         params["g1"], params["be1"]))
    out = jax.nn.relu(bn(conv3(out, params["w2"], params["b2"]),
                         params["g2"], params["be2"]))
    return jnp.transpose(out, (0, 3, 1, 2))


# ----------------------------- parameter init -----------------------------
def init_params(key, in_ch, out_ch):
    ks = jax.random.split(key, 8)
    return {
        # conv weights in HWIO; conv biases (PyTorch Conv2d default bias=True)
        "w1": 0.1 * jax.random.normal(ks[0], (3, 3, in_ch, out_ch), jnp.float32),
        "b1": 0.1 * jax.random.normal(ks[1], (out_ch,), jnp.float32),
        "g1": 1.0 + 0.1 * jax.random.normal(ks[2], (out_ch,), jnp.float32),
        "be1": 0.1 * jax.random.normal(ks[3], (out_ch,), jnp.float32),
        "w2": 0.1 * jax.random.normal(ks[4], (3, 3, out_ch, out_ch), jnp.float32),
        "b2": 0.1 * jax.random.normal(ks[5], (out_ch,), jnp.float32),
        "g2": 1.0 + 0.1 * jax.random.normal(ks[6], (out_ch,), jnp.float32),
        "be2": 0.1 * jax.random.normal(ks[7], (out_ch,), jnp.float32),
    }


if __name__ == "__main__":
    N, IN_CH, OUT_CH, H, W = 2, 4, 32, 16, 16
    key = jax.random.PRNGKey(0)
    kx, kp = jax.random.split(key)

    x = jax.random.normal(kx, (N, IN_CH, H, W), jnp.float32)
    params = init_params(kp, IN_CH, OUT_CH)

    out = jax.jit(unet_module)(x, params)
    out = jax.block_until_ready(out)

    ref = _reference_nchw(x, params)
    assert out.shape == (N, OUT_CH, H, W), out.shape
    max_err = float(jnp.max(jnp.abs(out - ref)))
    assert jnp.allclose(out, ref, rtol=1e-4, atol=1e-4), max_err

    print("KERNEL_OK")
</pallas_src>

<mosaic_0001>
module attributes {stable_mosaic.version = 11 : i64} {
  func.func @kernel(%arg0: i32, %arg1: memref<1x16x16x4xf32, #tpu.memory_space<vmem>>, %arg2: memref<3x3x4x32xf32, #tpu.memory_space<vmem>>, %arg3: memref<1x32xf32, #tpu.memory_space<vmem>>, %arg4: memref<1x256x32xf32, #tpu.memory_space<vmem>>, %arg5: memref<1x2x32xf32, #tpu.memory_space<vmem>>, %arg6: memref<18x24x4xf32, #tpu.memory_space<vmem>>) attributes {dimension_semantics = [#tpu.dimension_semantics<parallel>], iteration_bounds = array<i64: 2>, scalar_prefetch = 0 : i64, scratch_operands = 1 : i64, tpu.core_type = #tpu.core_type<tc>, window_params = [{transform_indices = @transform_0, window_bounds = array<i64: 1, 16, 16, 4>}, {pipeline_mode = #tpu.pipeline_mode<synchronous>, transform_indices = @transform_1, window_bounds = array<i64: 3, 3, 4, 32>}, {pipeline_mode = #tpu.pipeline_mode<synchronous>, transform_indices = @transform_2, window_bounds = array<i64: 1, 32>}, {transform_indices = @transform_3, window_bounds = array<i64: 1, 256, 32>}, {transform_indices = @transform_4, window_bounds = array<i64: 1, 2, 32>}]} {
    %c0 = arith.constant 0 : index
    %c0_0 = arith.constant 0 : index
    %c0_1 = arith.constant 0 : index
    %c0_2 = arith.constant 0 : index
    %0 = vector.load %arg1[%c0, %c0_0, %c0_1, %c0_2] : memref<1x16x16x4xf32, #tpu.memory_space<vmem>>, vector<1x16x16x4xf32>
    %1 = vector.shape_cast %0 : vector<1x16x16x4xf32> to vector<16x16x4xf32>
    %cst = arith.constant 0.000000e+00 : f32
    %2 = vector.broadcast %cst : f32 to vector<1x24x4xf32>
    %c0_3 = arith.constant 0 : index
    %c0_4 = arith.constant 0 : index
    %c0_5 = arith.constant 0 : index
    %3 = vector.load %arg6[%c0_3, %c0_4, %c0_5] : memref<18x24x4xf32, #tpu.memory_space<vmem>>, vector<1x24x4xf32>
    tpu.vector_store %arg6[%c0_3, %c0_4, %c0_5], %2 {strides = array<i32>} : memref<18x24x4xf32, #tpu.memory_space<vmem>>, vector<1x24x4xf32>,
    %cst_6 = arith.constant 0.000000e+00 : f32
    %4 = vector.broadcast %cst_6 : f32 to vector<1x24x4xf32>
    %c17 = arith.constant 17 : index
    %c0_7 = arith.constant 0 : index
    %c0_8 = arith.constant 0 : index
    %5 = vector.load %arg6[%c17, %c0_7, %c0_8] : memref<18x24x4xf32, #tpu.memory_space<vmem>>, vector<1x24x4xf32>
    tpu.vector_store %arg6[%c17, %c0_7, %c0_8], %4 {strides = array<i32>} : memref<18x24x4xf32, #tpu.memory_space<vmem>>, vector<1x24x4xf32>,
    %cst_9 = arith.constant 0.000000e+00 : f32
    %6 = vector.broadcast %cst_9 : f32 to vector<18x1x4xf32>
    %c0_10 = arith.constant 0 : index
    %c0_11 = arith.constant 0 : index
    %c0_12 = arith.constant 0 : index
    %7 = vector.load %arg6[%c0_10, %c0_11, %c0_12] : memref<18x24x4xf32, #tpu.memory_space<vmem>>, vector<18x1x4xf32>
    tpu.vector_store %arg6[%c0_10, %c0_11, %c0_12], %6 {strides = array<i32>} : memref<18x24x4xf32, #tpu.memory_space<vmem>>, vector<18x1x4xf32>,
    %cst_13 = arith.constant 0.000000e+00 : f32
    %8 = vector.broadcast %cst_13 : f32 to vector<18x7x4xf32>
    %c0_14 = arith.constant 0 : index
    %c17_15 = arith.constant 17 : index
    %c0_16 = arith.constant 0 : index
    %9 = vector.load %arg6[%c0_14, %c17_15, %c0_16] : memref<18x24x4xf32, #tpu.memory_space<vmem>>, vector<18x7x4xf32>
    tpu.vector_store %arg6[%c0_14, %c17_15, %c0_16], %8 {strides = array<i32>} : memref<18x24x4xf32, #tpu.memory_space<vmem>>, vector<18x7x4xf32>,
    %c1 = arith.constant 1 : index
    %c1_17 = arith.constant 1 : index
    %c0_18 = arith.constant 0 : index
    %10 = vector.load %arg6[%c1, %c1_17, %c0_18] : memref<18x24x4xf32, #tpu.memory_space<vmem>>, vector<16x16x4xf32>
    tpu.vector_store %arg6[%c1, %c1_17, %c0_18], %1 {strides = array<i32>} : memref<18x24x4xf32, #tpu.memory_space<vmem>>, vector<16x16x4xf32>,
    %cst_19 = arith.constant 0.000000e+00 : f32
    %11 = vector.broadcast %cst_19 : f32 to vector<256x32xf32>
    %c0_20 = arith.constant 0 : index
    %c0_21 = arith.constant 0 : index
    %c0_22 = arith.constant 0 : index
    %12 = vector.load %arg6[%c0_20, %c0_21, %c0_22] : memref<18x24x4xf32, #tpu.memory_space<vmem>>, vector<16x16x4xf32>
    %13 = vector.shape_cast %12 : vector<16x16x4xf32> to vector<256x4xf32>
    %c0_23 = arith.constant 0 : index
    %c0_24 = arith.constant 0 : index
    %c0_25 = arith.constant 0 : index
    %c0_26 = arith.constant 0 : index
    %14 = vector.load %arg2[%c0_23, %c0_24, %c0_25, %c0_26] : memref<3x3x4x32xf32, #tpu.memory_space<vmem>>, vector<1x1x4x32xf32>
    %15 = vector.shape_cast %14 : vector<1x1x4x32xf32> to vector<4x32xf32>
    %cst_27 = arith.constant dense<0.000000e+00> : vector<256x32xf32>
    %16 = tpu.matmul %13, %15, %cst_27 {dimension_numbers = #tpu.dot_dimension_numbers<[1], [0], [0], [1], [0, 0, 1, 1], [], []>} : vector<256x4xf32>, vector<4x32xf32>, vector<256x32xf32> -> vector<256x32xf32>
    %17 = arith.addf %11, %16 : vector<256x32xf32>
    %c0_28 = arith.constant 0 : index
    %c1_29 = arith.constant 1 : index
    %c0_30 = arith.constant 0 : index
    %18 = vector.load %arg6[%c0_28, %c1_29, %c0_30] : memref<18x24x4xf32, #tpu.memory_space<vmem>>, vector<16x16x4xf32>
    %19 = vector.shape_cast %18 : vector<16x16x4xf32> to vector<256x4xf32>
    %c0_31 = arith.constant 0 : index
    %c1_32 = arith.constant 1 : index
    %c0_33 = arith.constant 0 : index
    %c0_34 = arith.constant 0 : index
    %20 = vector.load %arg2[%c0_31, %c1_32, %c0_33, %c0_34] : memref<3x3x4x32xf32, #tpu.memory_space<vmem>>, vector<1x1x4x32xf32>
    %21 = vector.shape_cast %20 : vector<1x1x4x32xf32> to vector<4x32xf32>
    %cst_35 = arith.constant dense<0.000000e+00> : vector<256x32xf32>
    %22 = tpu.matmul %19, %21, %cst_35 {dimension_numbers = #tpu.dot_dimension_numbers<[1], [0], [0], [1], [0, 0, 1, 1], [], []>} : vector<256x4xf32>, vector<4x32xf32>, vector<256x32xf32> -> vector<256x32xf32>
    %23 = arith.addf %17, %22 : vector<256x32xf32>
    %c0_36 = arith.constant 0 : index
    %c2 = arith.constant 2 : index
    %c0_37 = arith.constant 0 : index
    %24 = vector.load %arg6[%c0_36, %c2, %c0_37] : memref<18x24x4xf32, #tpu.memory_space<vmem>>, vector<16x16x4xf32>
    %25 = vector.shape_cast %24 : vector<16x16x4xf32> to vector<256x4xf32>
    %c0_38 = arith.constant 0 : index
    %c2_39 = arith.constant 2 : index
    %c0_40 = arith.constant 0 : index
    %c0_41 = arith.constant 0 : index
    %26 = vector.load %arg2[%c0_38, %c2_39, %c0_40, %c0_41] : memref<3x3x4x32xf32, #tpu.memory_space<vmem>>, vector<1x1x4x32xf32>
    %27 = vector.shape_cast %26 : vector<1x1x4x32xf32> to vector<4x32xf32>
    %cst_42 = arith.constant dense<0.000000e+00> : vector<256x32xf32>
    %28 = tpu.matmul %25, %27, %cst_42 {dimension_numbers = #tpu.dot_dimension_numbers<[1], [0], [0], [1], [0, 0, 1, 1], [], []>} : vector<256x4xf32>, vector<4x32xf32>, vector<256x32xf32> -> vector<256x32xf32>
    %29 = arith.addf %23, %28 : vector<256x32xf32>
    %c1_43 = arith.constant 1 : index
    %c0_44 = arith.constant 0 : index
    %c0_45 = arith.constant 0 : index
    %30 = vector.load %arg6[%c1_43, %c0_44, %c0_45] : memref<18x24x4xf32, #tpu.memory_space<vmem>>, vector<16x16x4xf32>
    %31 = vector.shape_cast %30 : vector<16x16x4xf32> to vector<256x4xf32>
    %c1_46 = arith.constant 1 : index
    %c0_47 = arith.constant 0 : index
    %c0_48 = arith.constant 0 : index
    %c0_49 = arith.constant 0 : index
    %32 = vector.load %arg2[%c1_46, %c0_47, %c0_48, %c0_49] : memref<3x3x4x32xf32, #tpu.memory_space<vmem>>, vector<1x1x4x32xf32>
    %33 = vector.shape_cast %32 : vector<1x1x4x32xf32> to vector<4x32xf32>
    %cst_50 = arith.constant dense<0.000000e+00> : vector<256x32xf32>
    %34 = tpu.matmul %31, %33, %cst_50 {dimension_numbers = #tpu.dot_dimension_numbers<[1], [0], [0], [1], [0, 0, 1, 1], [], []>} : vector<256x4xf32>, vector<4x32xf32>, vector<256x32xf32> -> vector<256x32xf32>
    %35 = arith.addf %29, %34 : vector<256x32xf32>
    %c1_51 = arith.constant 1 : index
    %c1_52 = arith.constant 1 : index
    %c0_53 = arith.constant 0 : index
    %36 = vector.load %arg6[%c1_51, %c1_52, %c0_53] : memref<18x24x4xf32, #tpu.memory_space<vmem>>, vector<16x16x4xf32>
    %37 = vector.shape_cast %36 : vector<16x16x4xf32> to vector<256x4xf32>
    %c1_54 = arith.constant 1 : index
    %c1_55 = arith.constant 1 : index
    %c0_56 = arith.constant 0 : index
    %c0_57 = arith.constant 0 : index
    %38 = vector.load %arg2[%c1_54, %c1_55, %c0_56, %c0_57] : memref<3x3x4x32xf32, #tpu.memory_space<vmem>>, vector<1x1x4x32xf32>
    %39 = vector.shape_cast %38 : vector<1x1x4x32xf32> to vector<4x32xf32>
    %cst_58 = arith.constant dense<0.000000e+00> : vector<256x32xf32>
    %40 = tpu.matmul %37, %39, %cst_58 {dimension_numbers = #tpu.dot_dimension_numbers<[1], [0], [0], [1], [0, 0, 1, 1], [], []>} : vector<256x4xf32>, vector<4x32xf32>, vector<256x32xf32> -> vector<256x32xf32>
    %41 = arith.addf %35, %40 : vector<256x32xf32>
    %c1_59 = arith.constant 1 : index
    %c2_60 = arith.constant 2 : index
    %c0_61 = arith.constant 0 : index
    %42 = vector.load %arg6[%c1_59, %c2_60, %c0_61] : memref<18x24x4xf32, #tpu.memory_space<vmem>>, vector<16x16x4xf32>
    %43 = vector.shape_cast %42 : vector<16x16x4xf32> to vector<256x4xf32>
    %c1_62 = arith.constant 1 : index
    %c2_63 = arith.constant 2 : index
    %c0_64 = arith.constant 0 : index
    %c0_65 = arith.constant 0 : index
    %44 = vector.load %arg2[%c1_62, %c2_63, %c0_64, %c0_65] : memref<3x3x4x32xf32, #tpu.memory_space<vmem>>, vector<1x1x4x32xf32>
    %45 = vector.shape_cast %44 : vector<1x1x4x32xf32> to vector<4x32xf32>
    %cst_66 = arith.constant dense<0.000000e+00> : vector<256x32xf32>
    %46 = tpu.matmul %43, %45, %cst_66 {dimension_numbers = #tpu.dot_dimension_numbers<[1], [0], [0], [1], [0, 0, 1, 1], [], []>} : vector<256x4xf32>, vector<4x32xf32>, vector<256x32xf32> -> vector<256x32xf32>
    %47 = arith.addf %41, %46 : vector<256x32xf32>
    %c2_67 = arith.constant 2 : index
    %c0_68 = arith.constant 0 : index
    %c0_69 = arith.constant 0 : index
    %48 = vector.load %arg6[%c2_67, %c0_68, %c0_69] : memref<18x24x4xf32, #tpu.memory_space<vmem>>, vector<16x16x4xf32>
    %49 = vector.shape_cast %48 : vector<16x16x4xf32> to vector<256x4xf32>
    %c2_70 = arith.constant 2 : index
    %c0_71 = arith.constant 0 : index
    %c0_72 = arith.constant 0 : index
    %c0_73 = arith.constant 0 : index
    %50 = vector.load %arg2[%c2_70, %c0_71, %c0_72, %c0_73] : memref<3x3x4x32xf32, #tpu.memory_space<vmem>>, vector<1x1x4x32xf32>
    %51 = vector.shape_cast %50 : vector<1x1x4x32xf32> to vector<4x32xf32>
    %cst_74 = arith.constant dense<0.000000e+00> : vector<256x32xf32>
    %52 = tpu.matmul %49, %51, %cst_74 {dimension_numbers = #tpu.dot_dimension_numbers<[1], [0], [0], [1], [0, 0, 1, 1], [], []>} : vector<256x4xf32>, vector<4x32xf32>, vector<256x32xf32> -> vector<256x32xf32>
    %53 = arith.addf %47, %52 : vector<256x32xf32>
    %c2_75 = arith.constant 2 : index
    %c1_76 = arith.constant 1 : index
    %c0_77 = arith.constant 0 : index
    %54 = vector.load %arg6[%c2_75, %c1_76, %c0_77] : memref<18x24x4xf32, #tpu.memory_space<vmem>>, vector<16x16x4xf32>
    %55 = vector.shape_cast %54 : vector<16x16x4xf32> to vector<256x4xf32>
    %c2_78 = arith.constant 2 : index
    %c1_79 = arith.constant 1 : index
    %c0_80 = arith.constant 0 : index
    %c0_81 = arith.constant 0 : index
    %56 = vector.load %arg2[%c2_78, %c1_79, %c0_80, %c0_81] : memref<3x3x4x32xf32, #tpu.memory_space<vmem>>, vector<1x1x4x32xf32>
    %57 = vector.shape_cast %56 : vector<1x1x4x32xf32> to vector<4x32xf32>
    %cst_82 = arith.constant dense<0.000000e+00> : vector<256x32xf32>
    %58 = tpu.matmul %55, %57, %cst_82 {dimension_numbers = #tpu.dot_dimension_numbers<[1], [0], [0], [1], [0, 0, 1, 1], [], []>} : vector<256x4xf32>, vector<4x32xf32>, vector<256x32xf32> -> vector<256x32xf32>
    %59 = arith.addf %53, %58 : vector<256x32xf32>
    %c2_83 = arith.constant 2 : index
    %c2_84 = arith.constant 2 : index
    %c0_85 = arith.constant 0 : index
    %60 = vector.load %arg6[%c2_83, %c2_84, %c0_85] : memref<18x24x4xf32, #tpu.memory_space<vmem>>, vector<16x16x4xf32>
    %61 = vector.shape_cast %60 : vector<16x16x4xf32> to vector<256x4xf32>
    %c2_86 = arith.constant 2 : index
    %c2_87 = arith.constant 2 : index
    %c0_88 = arith.constant 0 : index
    %c0_89 = arith.constant 0 : index
    %62 = vector.load %arg2[%c2_86, %c2_87, %c0_88, %c0_89] : memref<3x3x4x32xf32, #tpu.memory_space<vmem>>, vector<1x1x4x32xf32>
    %63 = vector.shape_cast %62 : vector<1x1x4x32xf32> to vector<4x32xf32>
    %cst_90 = arith.constant dense<0.000000e+00> : vector<256x32xf32>
    %64 = tpu.matmul %61, %63, %cst_90 {dimension_numbers = #tpu.dot_dimension_numbers<[1], [0], [0], [1], [0, 0, 1, 1], [], []>} : vector<256x4xf32>, vector<4x32xf32>, vector<256x32xf32> -> vector<256x32xf32>
    %65 = arith.addf %59, %64 : vector<256x32xf32>
    %c0_91 = arith.constant 0 : index
    %c0_92 = arith.constant 0 : index
    %66 = vector.load %arg3[%c0_91, %c0_92] : memref<1x32xf32, #tpu.memory_space<vmem>>, vector<1x32xf32>
    %67 = vector.broadcast %66 : vector<1x32xf32> to vector<256x32xf32>
    %68 = arith.addf %65, %67 : vector<256x32xf32>
    %c0_93 = arith.constant 0 : index
    %c0_94 = arith.constant 0 : index
    %c0_95 = arith.constant 0 : index
    %69 = vector.load %arg4[%c0_93, %c0_94, %c0_95] : memref<1x256x32xf32, #tpu.memory_space<vmem>>, vector<1x256x32xf32>
    %70 = vector.shape_cast %69 : vector<1x256x32xf32> to vector<256x32xf32>
    %71 = vector.shape_cast %68 : vector<256x32xf32> to vector<1x256x32xf32>
    tpu.vector_store %arg4[%c0_93, %c0_94, %c0_95], %71 {strides = array<i32>} : memref<1x256x32xf32, #tpu.memory_space<vmem>>, vector<1x256x32xf32>,
    %cst_96 = arith.constant dense<0.000000e+00> : vector<32xf32>
    %72 = vector.multi_reduction <add>, %68, %cst_96 [0] : vector<256x32xf32> to vector<32xf32>
    %73 = vector.shape_cast %72 : vector<32xf32> to vector<1x32xf32>
    %cst_97 = arith.constant 3.906250e-03 : f32
    %74 = vector.broadcast %cst_97 : f32 to vector<1x32xf32>
    %75 = arith.mulf %73, %74 : vector<1x32xf32>
    %76 = vector.broadcast %75 : vector<1x32xf32> to vector<256x32xf32>
    %77 = arith.subf %68, %76 : vector<256x32xf32>
    %c0_98 = arith.constant 0 : index
    %c0_99 = arith.constant 0 : index
    %c0_100 = arith.constant 0 : index
    %78 = vector.load %arg5[%c0_98, %c0_99, %c0_100] : memref<1x2x32xf32, #tpu.memory_space<vmem>>, vector<1x1x32xf32>
    %79 = vector.shape_cast %78 : vector<1x1x32xf32> to vector<1x32xf32>
    %80 = vector.shape_cast %75 : vector<1x32xf32> to vector<1x1x32xf32>
    tpu.vector_store %arg5[%c0_98, %c0_99, %c0_100], %80 {strides = array<i32>} : memref<1x2x32xf32, #tpu.memory_space<vmem>>, vector<1x1x32xf32>,
    %81 = arith.mulf %77, %77 : vector<256x32xf32>
    %cst_101 = arith.constant dense<0.000000e+00> : vector<32xf32>
    %82 = vector.multi_reduction <add>, %81, %cst_101 [0] : vector<256x32xf32> to vector<32xf32>
    %83 = vector.shape_cast %82 : vector<32xf32> to vector<1x32xf32>
    %c0_102 = arith.constant 0 : index
    %c1_103 = arith.constant 1 : index
    %c0_104 = arith.constant 0 : index
    %84 = vector.load %arg5[%c0_102, %c1_103, %c0_104] : memref<1x2x32xf32, #tpu.memory_space<vmem>>, vector<1x1x32xf32>
    %85 = vector.shape_cast %84 : vector<1x1x32xf32> to vector<1x32xf32>
    %86 = vector.shape_cast %83 : vector<1x32xf32> to vector<1x1x32xf32>
    tpu.vector_store %arg5[%c0_102, %c1_103, %c0_104], %86 {strides = array<i32>} : memref<1x2x32xf32, #tpu.memory_space<vmem>>, vector<1x1x32xf32>,
    return
  }
  func.func @transform_0(%arg0: i32) -> (i32, i32, i32, i32) {
    %c0_i32 = arith.constant 0 : i32
    %c0_i32_0 = arith.constant 0 : i32
    %c0_i32_1 = arith.constant 0 : i32
    %c0_i32_2 = arith.constant 0 : i32
    return %arg0, %c0_i32, %c0_i32_0, %c0_i32_1 : i32, i32, i32, i32
  }
  func.func @transform_1(%arg0: i32) -> (i32, i32, i32, i32) {
    %c0_i32 = arith.constant 0 : i32
    %c0_i32_0 = arith.constant 0 : i32
    %c0_i32_1 = arith.constant 0 : i32
    %c0_i32_2 = arith.constant 0 : i32
    %c0_i32_3 = arith.constant 0 : i32
    return %c0_i32, %c0_i32_0, %c0_i32_1, %c0_i32_2 : i32, i32, i32, i32
  }
  func.func @transform_2(%arg0: i32) -> (i32, i32) {
    %c0_i32 = arith.constant 0 : i32
    %c0_i32_0 = arith.constant 0 : i32
    %c0_i32_1 = arith.constant 0 : i32
    return %c0_i32, %c0_i32_0 : i32, i32
  }
  func.func @transform_3(%arg0: i32) -> (i32, i32, i32) {
    %c0_i32 = arith.constant 0 : i32
    %c0_i32_0 = arith.constant 0 : i32
    %c0_i32_1 = arith.constant 0 : i32
    return %arg0, %c0_i32, %c0_i32_0 : i32, i32, i32
  }
  func.func @transform_4(%arg0: i32) -> (i32, i32, i32) {
    %c0_i32 = arith.constant 0 : i32
    %c0_i32_0 = arith.constant 0 : i32
    %c0_i32_1 = arith.constant 0 : i32
    return %arg0, %c0_i32, %c0_i32_0 : i32, i32, i32
  }
}

module attributes {stable_mosaic.version = 11 : i64} {
  func.func @kernel(%arg0: i32, %arg1: memref<1x256x32xf32, #tpu.memory_space<vmem>>, %arg2: memref<1x32xf32, #tpu.memory_space<vmem>>, %arg3: memref<1x32xf32, #tpu.memory_space<vmem>>, %arg4: memref<3x3x32x32xf32, #tpu.memory_space<vmem>>, %arg5: memref<1x32xf32, #tpu.memory_space<vmem>>, %arg6: memref<1x256x32xf32, #tpu.memory_space<vmem>>, %arg7: memref<1x2x32xf32, #tpu.memory_space<vmem>>, %arg8: memref<18x24x32xf32, #tpu.memory_space<vmem>>) attributes {dimension_semantics = [#tpu.dimension_semantics<parallel>], iteration_bounds = array<i64: 2>, scalar_prefetch = 0 : i64, scratch_operands = 1 : i64, tpu.core_type = #tpu.core_type<tc>, window_params = [{transform_indices = @transform_0, window_bounds = array<i64: 1, 256, 32>}, {pipeline_mode = #tpu.pipeline_mode<synchronous>, transform_indices = @transform_1, window_bounds = array<i64: 1, 32>}, {pipeline_mode = #tpu.pipeline_mode<synchronous>, transform_indices = @transform_2, window_bounds = array<i64: 1, 32>}, {pipeline_mode = #tpu.pipeline_mode<synchronous>, transform_indices = @transform_3, window_bounds = array<i64: 3, 3, 32, 32>}, {pipeline_mode = #tpu.pipeline_mode<synchronous>, transform_indices = @transform_4, window_bounds = array<i64: 1, 32>}, {transform_indices = @transform_5, window_bounds = array<i64: 1, 256, 32>}, {transform_indices = @transform_6, window_bounds = array<i64: 1, 2, 32>}]} {
    %c0 = arith.constant 0 : index
    %c0_0 = arith.constant 0 : index
    %c0_1 = arith.constant 0 : index
    %0 = vector.load %arg1[%c0, %c0_0, %c0_1] : memref<1x256x32xf32, #tpu.memory_space<vmem>>, vector<1x256x32xf32>
    %1 = vector.shape_cast %0 : vector<1x256x32xf32> to vector<256x32xf32>
    %c0_2 = arith.constant 0 : index
    %c0_3 = arith.constant 0 : index
    %2 = vector.load %arg2[%c0_2, %c0_3] : memref<1x32xf32, #tpu.memory_space<vmem>>, vector<1x32xf32>
    %3 = vector.broadcast %2 : vector<1x32xf32> to vector<256x32xf32>
    %4 = arith.mulf %1, %3 : vector<256x32xf32>
    %c0_4 = arith.constant 0 : index
    %c0_5 = arith.constant 0 : index
    %5 = vector.load %arg3[%c0_4, %c0_5] : memref<1x32xf32, #tpu.memory_space<vmem>>, vector<1x32xf32>
    %6 = vector.broadcast %5 : vector<1x32xf32> to vector<256x32xf32>
    %7 = arith.addf %4, %6 : vector<256x32xf32>
    %cst = arith.constant 0.000000e+00 : f32
    %8 = vector.broadcast %cst : f32 to vector<256x32xf32>
    %9 = arith.maximumf %7, %8 : vector<256x32xf32>
    %10 = vector.shape_cast %9 : vector<256x32xf32> to vector<16x16x32xf32>
    %cst_6 = arith.constant 0.000000e+00 : f32
    %11 = vector.broadcast %cst_6 : f32 to vector<1x24x32xf32>
    %c0_7 = arith.constant 0 : index
    %c0_8 = arith.constant 0 : index
    %c0_9 = arith.constant 0 : index
    %12 = vector.load %arg8[%c0_7, %c0_8, %c0_9] : memref<18x24x32xf32, #tpu.memory_space<vmem>>, vector<1x24x32xf32>
    tpu.vector_store %arg8[%c0_7, %c0_8, %c0_9], %11 {strides = array<i32>} : memref<18x24x32xf32, #tpu.memory_space<vmem>>, vector<1x24x32xf32>,
    %cst_10 = arith.constant 0.000000e+00 : f32
    %13 = vector.broadcast %cst_10 : f32 to vector<1x24x32xf32>
    %c17 = arith.constant 17 : index
    %c0_11 = arith.constant 0 : index
    %c0_12 = arith.constant 0 : index
    %14 = vector.load %arg8[%c17, %c0_11, %c0_12] : memref<18x24x32xf32, #tpu.memory_space<vmem>>, vector<1x24x32xf32>
    tpu.vector_store %arg8[%c17, %c0_11, %c0_12], %13 {strides = array<i32>} : memref<18x24x32xf32, #tpu.memory_space<vmem>>, vector<1x24x32xf32>,
    %cst_13 = arith.constant 0.000000e+00 : f32
    %15 = vector.broadcast %cst_13 : f32 to vector<18x1x32xf32>
    %c0_14 = arith.constant 0 : index
    %c0_15 = arith.constant 0 : index
    %c0_16 = arith.constant 0 : index
    %16 = vector.load %arg8[%c0_14, %c0_15, %c0_16] : memref<18x24x32xf32, #tpu.memory_space<vmem>>, vector<18x1x32xf32>
    tpu.vector_store %arg8[%c0_14, %c0_15, %c0_16], %15 {strides = array<i32>} : memref<18x24x32xf32, #tpu.memory_space<vmem>>, vector<18x1x32xf32>,
    %cst_17 = arith.constant 0.000000e+00 : f32
    %17 = vector.broadcast %cst_17 : f32 to vector<18x7x32xf32>
    %c0_18 = arith.constant 0 : index
    %c17_19 = arith.constant 17 : index
    %c0_20 = arith.constant 0 : index
    %18 = vector.load %arg8[%c0_18, %c17_19, %c0_20] : memref<18x24x32xf32, #tpu.memory_space<vmem>>, vector<18x7x32xf32>
    tpu.vector_store %arg8[%c0_18, %c17_19, %c0_20], %17 {strides = array<i32>} : memref<18x24x32xf32, #tpu.memory_space<vmem>>, vector<18x7x32xf32>,
    %c1 = arith.constant 1 : index
    %c1_21 = arith.constant 1 : index
    %c0_22 = arith.constant 0 : index
    %19 = vector.load %arg8[%c1, %c1_21, %c0_22] : memref<18x24x32xf32, #tpu.memory_space<vmem>>, vector<16x16x32xf32>
    tpu.vector_store %arg8[%c1, %c1_21, %c0_22], %10 {strides = array<i32>} : memref<18x24x32xf32, #tpu.memory_space<vmem>>, vector<16x16x32xf32>,
    %cst_23 = arith.constant 0.000000e+00 : f32
    %20 = vector.broadcast %cst_23 : f32 to vector<256x32xf32>
    %c0_24 = arith.constant 0 : index
    %c0_25 = arith.constant 0 : index
    %c0_26 = arith.constant 0 : index
    %21 = vector.load %arg8[%c0_24, %c0_25, %c0_26] : memref<18x24x32xf32, #tpu.memory_space<vmem>>, vector<16x16x32xf32>
    %22 = vector.shape_cast %21 : vector<16x16x32xf32> to vector<256x32xf32>
    %c0_27 = arith.constant 0 : index
    %c0_28 = arith.constant 0 : index
    %c0_29 = arith.constant 0 : index
    %c0_30 = arith.constant 0 : index
    %23 = vector.load %arg4[%c0_27, %c0_28, %c0_29, %c0_30] : memref<3x3x32x32xf32, #tpu.memory_space<vmem>>, vector<1x1x32x32xf32>
    %24 = vector.shape_cast %23 : vector<1x1x32x32xf32> to vector<32x32xf32>
    %cst_31 = arith.constant dense<0.000000e+00> : vector<256x32xf32>
    %25 = tpu.matmul %22, %24, %cst_31 {dimension_numbers = #tpu.dot_dimension_numbers<[1], [0], [0], [1], [0, 0, 1, 1], [], []>} : vector<256x32xf32>, vector<32x32xf32>, vector<256x32xf32> -> vector<256x32xf32>
    %26 = arith.addf %20, %25 : vector<256x32xf32>
    %c0_32 = arith.constant 0 : index
    %c1_33 = arith.constant 1 : index
    %c0_34 = arith.constant 0 : index
    %27 = vector.load %arg8[%c0_32, %c1_33, %c0_34] : memref<18x24x32xf32, #tpu.memory_space<vmem>>, vector<16x16x32xf32>
    %28 = vector.shape_cast %27 : vector<16x16x32xf32> to vector<256x32xf32>
    %c0_35 = arith.constant 0 : index
    %c1_36 = arith.constant 1 : index
    %c0_37 = arith.constant 0 : index
    %c0_38 = arith.constant 0 : index
    %29 = vector.load %arg4[%c0_35, %c1_36, %c0_37, %c0_38] : memref<3x3x32x32xf32, #tpu.memory_space<vmem>>, vector<1x1x32x32xf32>
    %30 = vector.shape_cast %29 : vector<1x1x32x32xf32> to vector<32x32xf32>
    %cst_39 = arith.constant dense<0.000000e+00> : vector<256x32xf32>
    %31 = tpu.matmul %28, %30, %cst_39 {dimension_numbers = #tpu.dot_dimension_numbers<[1], [0], [0], [1], [0, 0, 1, 1], [], []>} : vector<256x32xf32>, vector<32x32xf32>, vector<256x32xf32> -> vector<256x32xf32>
    %32 = arith.addf %26, %31 : vector<256x32xf32>
    %c0_40 = arith.constant 0 : index
    %c2 = arith.constant 2 : index
    %c0_41 = arith.constant 0 : index
    %33 = vector.load %arg8[%c0_40, %c2, %c0_41] : memref<18x24x32xf32, #tpu.memory_space<vmem>>, vector<16x16x32xf32>
    %34 = vector.shape_cast %33 : vector<16x16x32xf32> to vector<256x32xf32>
    %c0_42 = arith.constant 0 : index
    %c2_43 = arith.constant 2 : index
    %c0_44 = arith.constant 0 : index
    %c0_45 = arith.constant 0 : index
    %35 = vector.load %arg4[%c0_42, %c2_43, %c0_44, %c0_45] : memref<3x3x32x32xf32, #tpu.memory_space<vmem>>, vector<1x1x32x32xf32>
    %36 = vector.shape_cast %35 : vector<1x1x32x32xf32> to vector<32x32xf32>
    %cst_46 = arith.constant dense<0.000000e+00> : vector<256x32xf32>
    %37 = tpu.matmul %34, %36, %cst_46 {dimension_numbers = #tpu.dot_dimension_numbers<[1], [0], [0], [1], [0, 0, 1, 1], [], []>} : vector<256x32xf32>, vector<32x32xf32>, vector<256x32xf32> -> vector<256x32xf32>
    %38 = arith.addf %32, %37 : vector<256x32xf32>
    %c1_47 = arith.constant 1 : index
    %c0_48 = arith.constant 0 : index
    %c0_49 = arith.constant 0 : index
    %39 = vector.load %arg8[%c1_47, %c0_48, %c0_49] : memref<18x24x32xf32, #tpu.memory_space<vmem>>, vector<16x16x32xf32>
    %40 = vector.shape_cast %39 : vector<16x16x32xf32> to vector<256x32xf32>
    %c1_50 = arith.constant 1 : index
    %c0_51 = arith.constant 0 : index
    %c0_52 = arith.constant 0 : index
    %c0_53 = arith.constant 0 : index
    %41 = vector.load %arg4[%c1_50, %c0_51, %c0_52, %c0_53] : memref<3x3x32x32xf32, #tpu.memory_space<vmem>>, vector<1x1x32x32xf32>
    %42 = vector.shape_cast %41 : vector<1x1x32x32xf32> to vector<32x32xf32>
    %cst_54 = arith.constant dense<0.000000e+00> : vector<256x32xf32>
    %43 = tpu.matmul %40, %42, %cst_54 {dimension_numbers = #tpu.dot_dimension_numbers<[1], [0], [0], [1], [0, 0, 1, 1], [], []>} : vector<256x32xf32>, vector<32x32xf32>, vector<256x32xf32> -> vector<256x32xf32>
    %44 = arith.addf %38, %43 : vector<256x32xf32>
    %c1_55 = arith.constant 1 : index
    %c1_56 = arith.constant 1 : index
    %c0_57 = arith.constant 0 : index
    %45 = vector.load %arg8[%c1_55, %c1_56, %c0_57] : memref<18x24x32xf32, #tpu.memory_space<vmem>>, vector<16x16x32xf32>
    %46 = vector.shape_cast %45 : vector<16x16x32xf32> to vector<256x32xf32>
    %c1_58 = arith.constant 1 : index
    %c1_59 = arith.constant 1 : index
    %c0_60 = arith.constant 0 : index
    %c0_61 = arith.constant 0 : index
    %47 = vector.load %arg4[%c1_58, %c1_59, %c0_60, %c0_61] : memref<3x3x32x32xf32, #tpu.memory_space<vmem>>, vector<1x1x32x32xf32>
    %48 = vector.shape_cast %47 : vector<1x1x32x32xf32> to vector<32x32xf32>
    %cst_62 = arith.constant dense<0.000000e+00> : vector<256x32xf32>
    %49 = tpu.matmul %46, %48, %cst_62 {dimension_numbers = #tpu.dot_dimension_numbers<[1], [0], [0], [1], [0, 0, 1, 1], [], []>} : vector<256x32xf32>, vector<32x32xf32>, vector<256x32xf32> -> vector<256x32xf32>
    %50 = arith.addf %44, %49 : vector<256x32xf32>
    %c1_63 = arith.constant 1 : index
    %c2_64 = arith.constant 2 : index
    %c0_65 = arith.constant 0 : index
    %51 = vector.load %arg8[%c1_63, %c2_64, %c0_65] : memref<18x24x32xf32, #tpu.memory_space<vmem>>, vector<16x16x32xf32>
    %52 = vector.shape_cast %51 : vector<16x16x32xf32> to vector<256x32xf32>
    %c1_66 = arith.constant 1 : index
    %c2_67 = arith.constant 2 : index
    %c0_68 = arith.constant 0 : index
    %c0_69 = arith.constant 0 : index
    %53 = vector.load %arg4[%c1_66, %c2_67, %c0_68, %c0_69] : memref<3x3x32x32xf32, #tpu.memory_space<vmem>>, vector<1x1x32x32xf32>
    %54 = vector.shape_cast %53 : vector<1x1x32x32xf32> to vector<32x32xf32>
    %cst_70 = arith.constant dense<0.000000e+00> : vector<256x32xf32>
    %55 = tpu.matmul %52, %54, %cst_70 {dimension_numbers = #tpu.dot_dimension_numbers<[1], [0], [0], [1], [0, 0, 1, 1], [], []>} : vector<256x32xf32>, vector<32x32xf32>, vector<256x32xf32> -> vector<256x32xf32>
    %56 = arith.addf %50, %55 : vector<256x32xf32>
    %c2_71 = arith.constant 2 : index
    %c0_72 = arith.constant 0 : index
    %c0_73 = arith.constant 0 : index
    %57 = vector.load %arg8[%c2_71, %c0_72, %c0_73] : memref<18x24x32xf32, #tpu.memory_space<vmem>>, vector<16x16x32xf32>
    %58 = vector.shape_cast %57 : vector<16x16x32xf32> to vector<256x32xf32>
    %c2_74 = arith.constant 2 : index
    %c0_75 = arith.constant 0 : index
    %c0_76 = arith.constant 0 : index
    %c0_77 = arith.constant 0 : index
    %59 = vector.load %arg4[%c2_74, %c0_75, %c0_76, %c0_77] : memref<3x3x32x32xf32, #tpu.memory_space<vmem>>, vector<1x1x32x32xf32>
    %60 = vector.shape_cast %59 : vector<1x1x32x32xf32> to vector<32x32xf32>
    %cst_78 = arith.constant dense<0.000000e+00> : vector<256x32xf32>
    %61 = tpu.matmul %58, %60, %cst_78 {dimension_numbers = #tpu.dot_dimension_numbers<[1], [0], [0], [1], [0, 0, 1, 1], [], []>} : vector<256x32xf32>, vector<32x32xf32>, vector<256x32xf32> -> vector<256x32xf32>
    %62 = arith.addf %56, %61 : vector<256x32xf32>
    %c2_79 = arith.constant 2 : index
    %c1_80 = arith.constant 1 : index
    %c0_81 = arith.constant 0 : index
    %63 = vector.load %arg8[%c2_79, %c1_80, %c0_81] : memref<18x24x32xf32, #tpu.memory_space<vmem>>, vector<16x16x32xf32>
    %64 = vector.shape_cast %63 : vector<16x16x32xf32> to vector<256x32xf32>
    %c2_82 = arith.constant 2 : index
    %c1_83 = arith.constant 1 : index
    %c0_84 = arith.constant 0 : index
    %c0_85 = arith.constant 0 : index
    %65 = vector.load %arg4[%c2_82, %c1_83, %c0_84, %c0_85] : memref<3x3x32x32xf32, #tpu.memory_space<vmem>>, vector<1x1x32x32xf32>
    %66 = vector.shape_cast %65 : vector<1x1x32x32xf32> to vector<32x32xf32>
    %cst_86 = arith.constant dense<0.000000e+00> : vector<256x32xf32>
    %67 = tpu.matmul %64, %66, %cst_86 {dimension_numbers = #tpu.dot_dimension_numbers<[1], [0], [0], [1], [0, 0, 1, 1], [], []>} : vector<256x32xf32>, vector<32x32xf32>, vector<256x32xf32> -> vector<256x32xf32>
    %68 = arith.addf %62, %67 : vector<256x32xf32>
    %c2_87 = arith.constant 2 : index
    %c2_88 = arith.constant 2 : index
    %c0_89 = arith.constant 0 : index
    %69 = vector.load %arg8[%c2_87, %c2_88, %c0_89] : memref<18x24x32xf32, #tpu.memory_space<vmem>>, vector<16x16x32xf32>
    %70 = vector.shape_cast %69 : vector<16x16x32xf32> to vector<256x32xf32>
    %c2_90 = arith.constant 2 : index
    %c2_91 = arith.constant 2 : index
    %c0_92 = arith.constant 0 : index
    %c0_93 = arith.constant 0 : index
    %71 = vector.load %arg4[%c2_90, %c2_91, %c0_92, %c0_93] : memref<3x3x32x32xf32, #tpu.memory_space<vmem>>, vector<1x1x32x32xf32>
    %72 = vector.shape_cast %71 : vector<1x1x32x32xf32> to vector<32x32xf32>
    %cst_94 = arith.constant dense<0.000000e+00> : vector<256x32xf32>
    %73 = tpu.matmul %70, %72, %cst_94 {dimension_numbers = #tpu.dot_dimension_numbers<[1], [0], [0], [1], [0, 0, 1, 1], [], []>} : vector<256x32xf32>, vector<32x32xf32>, vector<256x32xf32> -> vector<256x32xf32>
    %74 = arith.addf %68, %73 : vector<256x32xf32>
    %c0_95 = arith.constant 0 : index
    %c0_96 = arith.constant 0 : index
    %75 = vector.load %arg5[%c0_95, %c0_96] : memref<1x32xf32, #tpu.memory_space<vmem>>, vector<1x32xf32>
    %76 = vector.broadcast %75 : vector<1x32xf32> to vector<256x32xf32>
    %77 = arith.addf %74, %76 : vector<256x32xf32>
    %c0_97 = arith.constant 0 : index
    %c0_98 = arith.constant 0 : index
    %c0_99 = arith.constant 0 : index
    %78 = vector.load %arg6[%c0_97, %c0_98, %c0_99] : memref<1x256x32xf32, #tpu.memory_space<vmem>>, vector<1x256x32xf32>
    %79 = vector.shape_cast %78 : vector<1x256x32xf32> to vector<256x32xf32>
    %80 = vector.shape_cast %77 : vector<256x32xf32> to vector<1x256x32xf32>
    tpu.vector_store %arg6[%c0_97, %c0_98, %c0_99], %80 {strides = array<i32>} : memref<1x256x32xf32, #tpu.memory_space<vmem>>, vector<1x256x32xf32>,
    %cst_100 = arith.constant dense<0.000000e+00> : vector<32xf32>
    %81 = vector.multi_reduction <add>, %77, %cst_100 [0] : vector<256x32xf32> to vector<32xf32>
    %82 = vector.shape_cast %81 : vector<32xf32> to vector<1x32xf32>
    %cst_101 = arith.constant 3.906250e-03 : f32
    %83 = vector.broadcast %cst_101 : f32 to vector<1x32xf32>
    %84 = arith.mulf %82, %83 : vector<1x32xf32>
    %85 = vector.broadcast %84 : vector<1x32xf32> to vector<256x32xf32>
    %86 = arith.subf %77, %85 : vector<256x32xf32>
    %c0_102 = arith.constant 0 : index
    %c0_103 = arith.constant 0 : index
    %c0_104 = arith.constant 0 : index
    %87 = vector.load %arg7[%c0_102, %c0_103, %c0_104] : memref<1x2x32xf32, #tpu.memory_space<vmem>>, vector<1x1x32xf32>
    %88 = vector.shape_cast %87 : vector<1x1x32xf32> to vector<1x32xf32>
    %89 = vector.shape_cast %84 : vector<1x32xf32> to vector<1x1x32xf32>
    tpu.vector_store %arg7[%c0_102, %c0_103, %c0_104], %89 {strides = array<i32>} : memref<1x2x32xf32, #tpu.memory_space<vmem>>, vector<1x1x32xf32>,
    %90 = arith.mulf %86, %86 : vector<256x32xf32>
    %cst_105 = arith.constant dense<0.000000e+00> : vector<32xf32>
    %91 = vector.multi_reduction <add>, %90, %cst_105 [0] : vector<256x32xf32> to vector<32xf32>
    %92 = vector.shape_cast %91 : vector<32xf32> to vector<1x32xf32>
    %c0_106 = arith.constant 0 : index
    %c1_107 = arith.constant 1 : index
    %c0_108 = arith.constant 0 : index
    %93 = vector.load %arg7[%c0_106, %c1_107, %c0_108] : memref<1x2x32xf32, #tpu.memory_space<vmem>>, vector<1x1x32xf32>
    %94 = vector.shape_cast %93 : vector<1x1x32xf32> to vector<1x32xf32>
    %95 = vector.shape_cast %92 : vector<1x32xf32> to vector<1x1x32xf32>
    tpu.vector_store %arg7[%c0_106, %c1_107, %c0_108], %95 {strides = array<i32>} : memref<1x2x32xf32, #tpu.memory_space<vmem>>, vector<1x1x32xf32>,
    return
  }
  func.func @transform_0(%arg0: i32) -> (i32, i32, i32) {
    %c0_i32 = arith.constant 0 : i32
    %c0_i32_0 = arith.constant 0 : i32
    %c0_i32_1 = arith.constant 0 : i32
    return %arg0, %c0_i32, %c0_i32_0 : i32, i32, i32
  }
  func.func @transform_1(%arg0: i32) -> (i32, i32) {
    %c0_i32 = arith.constant 0 : i32
    %c0_i32_0 = arith.constant 0 : i32
    %c0_i32_1 = arith.constant 0 : i32
    return %c0_i32, %c0_i32_0 : i32, i32
  }
  func.func @transform_2(%arg0: i32) -> (i32, i32) {
    %c0_i32 = arith.constant 0 : i32
    %c0_i32_0 = arith.constant 0 : i32
    %c0_i32_1 = arith.constant 0 : i32
    return %c0_i32, %c0_i32_0 : i32, i32
  }
  func.func @transform_3(%arg0: i32) -> (i32, i32, i32, i32) {
    %c0_i32 = arith.constant 0 : i32
    %c0_i32_0 = arith.constant 0 : i32
    %c0_i32_1 = arith.constant 0 : i32
    %c0_i32_2 = arith.constant 0 : i32
    %c0_i32_3 = arith.constant 0 : i32
    return %c0_i32, %c0_i32_0, %c0_i32_1, %c0_i32_2 : i32, i32, i32, i32
  }
  func.func @transform_4(%arg0: i32) -> (i32, i32) {
    %c0_i32 = arith.constant 0 : i32
    %c0_i32_0 = arith.constant 0 : i32
    %c0_i32_1 = arith.constant 0 : i32
    return %c0_i32, %c0_i32_0 : i32, i32
  }
  func.func @transform_5(%arg0: i32) -> (i32, i32, i32) {
    %c0_i32 = arith.constant 0 : i32
    %c0_i32_0 = arith.constant 0 : i32
    %c0_i32_1 = arith.constant 0 : i32
    return %arg0, %c0_i32, %c0_i32_0 : i32, i32, i32
  }
  func.func @transform_6(%arg0: i32) -> (i32, i32, i32) {
    %c0_i32 = arith.constant 0 : i32
    %c0_i32_0 = arith.constant 0 : i32
    %c0_i32_1 = arith.constant 0 : i32
    return %arg0, %c0_i32, %c0_i32_0 : i32, i32, i32
  }
}

module attributes {stable_mosaic.version = 11 : i64} {
  func.func @_affine_relu_kernel(%arg0: i32, %arg1: memref<128x128xf32, #tpu.memory_space<vmem>>, %arg2: memref<1x128xf32, #tpu.memory_space<vmem>>, %arg3: memref<1x128xf32, #tpu.memory_space<vmem>>, %arg4: memref<128x128xf32, #tpu.memory_space<vmem>>) attributes {dimension_semantics = [#tpu.dimension_semantics<parallel>], iteration_bounds = array<i64: 1>, scalar_prefetch = 0 : i64, scratch_operands = 0 : i64, tpu.core_type = #tpu.core_type<tc>, window_params = [{transform_indices = @transform_0, window_bounds = array<i64: 128, 128>}, {pipeline_mode = #tpu.pipeline_mode<synchronous>, transform_indices = @transform_1, window_bounds = array<i64: 1, 128>}, {pipeline_mode = #tpu.pipeline_mode<synchronous>, transform_indices = @transform_2, window_bounds = array<i64: 1, 128>}, {transform_indices = @transform_3, window_bounds = array<i64: 128, 128>}]} {
    %c0 = arith.constant 0 : index
    %c0_0 = arith.constant 0 : index
    %0 = vector.load %arg1[%c0, %c0_0] : memref<128x128xf32, #tpu.memory_space<vmem>>, vector<128x128xf32>
    %c0_1 = arith.constant 0 : index
    %c0_2 = arith.constant 0 : index
    %1 = vector.load %arg2[%c0_1, %c0_2] : memref<1x128xf32, #tpu.memory_space<vmem>>, vector<1x128xf32>
    %2 = vector.broadcast %1 : vector<1x128xf32> to vector<128x128xf32>
    %3 = arith.mulf %0, %2 : vector<128x128xf32>
    %c0_3 = arith.constant 0 : index
    %c0_4 = arith.constant 0 : index
    %4 = vector.load %arg3[%c0_3, %c0_4] : memref<1x128xf32, #tpu.memory_space<vmem>>, vector<1x128xf32>
    %5 = vector.broadcast %4 : vector<1x128xf32> to vector<128x128xf32>
    %6 = arith.addf %3, %5 : vector<128x128xf32>
    %cst = arith.constant 0.000000e+00 : f32
    %7 = vector.broadcast %cst : f32 to vector<128x128xf32>
    %8 = arith.maximumf %6, %7 : vector<128x128xf32>
    %c0_5 = arith.constant 0 : index
    %c0_6 = arith.constant 0 : index
    %9 = vector.load %arg4[%c0_5, %c0_6] : memref<128x128xf32, #tpu.memory_space<vmem>>, vector<128x128xf32>
    tpu.vector_store %arg4[%c0_5, %c0_6], %8 {strides = array<i32>} : memref<128x128xf32, #tpu.memory_space<vmem>>, vector<128x128xf32>,
    return
  }
  func.func @transform_0(%arg0: i32) -> (i32, i32) {
    %c0_i32 = arith.constant 0 : i32
    %c0_i32_0 = arith.constant 0 : i32
    return %arg0, %c0_i32 : i32, i32
  }
  func.func @transform_1(%arg0: i32) -> (i32, i32) {
    %c0_i32 = arith.constant 0 : i32
    %c0_i32_0 = arith.constant 0 : i32
    %c0_i32_1 = arith.constant 0 : i32
    return %c0_i32, %c0_i32_0 : i32, i32
  }
  func.func @transform_2(%arg0: i32) -> (i32, i32) {
    %c0_i32 = arith.constant 0 : i32
    %c0_i32_0 = arith.constant 0 : i32
    %c0_i32_1 = arith.constant 0 : i32
    return %c0_i32, %c0_i32_0 : i32, i32
  }
  func.func @transform_3(%arg0: i32) -> (i32, i32) {
    %c0_i32 = arith.constant 0 : i32
    %c0_i32_0 = arith.constant 0 : i32
    return %arg0, %c0_i32 : i32, i32
  }
}

</mosaic_0001>

<bundles_post_ra>
// kernel: unet_module.5
= control target key start
LH: loop header
LB: loop body
LE: loop exit
PB: predicated region body
PF: predicated region fallthrough
CT: control target
= control target key end

     0   :  { %s254_s0 = inlined_call_operand.vmem [shape: f32[128,128], index: 0, kind: input, shape index: {}]   ;;  %s255_s1 = inlined_call_operand.vmem [shape: f32[1,128], index: 1, kind: input, shape index: {}]   ;;  %s256_s2 = inlined_call_operand.vmem [shape: f32[1,128], index: 2, kind: input, shape index: {}]   ;;  %s257_s3 = inlined_call_operand.vmem [shape: f32[128,128], index: 3, kind: output, shape index: {}]  }
   0x1   :  { %v14_v0 = vld [vmem:[%s254_s0] sm:$0xff]  ;;  %v15_v4 = vld [vmem:[%s254_s0 + $0x8] sm:$0xff]  ;;  %v16_v5 = vld [vmem:[%s254_s0 + $0x10] sm:$0xff] }
   0x2   :  { %v112_v1 = vld [vmem:[%s255_s1] ss:$0 sm:$0xff]  ;;  %v17_v6 = vld [vmem:[%s254_s0 + $0x18] sm:$0xff]  ;;  %v19_v11 = vld [vmem:[%s254_s0 + $0x28] sm:$0xff] }
   0x3   :  { %v143_v2 = vld [vmem:[%s256_s2] ss:$0 sm:$0xff]  ;;  %v37_v3 = vmul.f32 %v112_v1, %v14_v0  ;;  %v38_v7 = vmul.f32 %v112_v1, %v15_v4  ;;  %v39_v8 = vmul.f32 %v112_v1, %v16_v5  ;;  %v40_v9 = vmul.f32 %v112_v1, %v17_v6  ;;  %v20_v12 = vld [vmem:[%s254_s0 + $0x30] sm:$0xff]  ;;  %v21_v17 = vld [vmem:[%s254_s0 + $0x38] sm:$0xff] }
   0x4   :  { %v18_v10 = vld [vmem:[%s254_s0 + $0x20] sm:$0xff]  ;;  %v42_v15 = vmul.f32 %v112_v1, %v19_v11  ;;  %v43_v16 = vmul.f32 %v112_v1, %v20_v12  ;;  %v44_v21 = vmul.f32 %v112_v1, %v21_v17  ;;  %v23_v27 = vld [vmem:[%s254_s0 + $0x48] sm:$0xff]  ;;  %v24_v28 = vld [vmem:[%s254_s0 + $0x50] sm:$0xff] }
   0x5   :  { %v60_v13 = vadd.f32 %v143_v2, %v37_v3  ;;  %v41_v14 = vmul.f32 %v112_v1, %v18_v10  ;;  %v61_v18 = vadd.f32 %v143_v2, %v38_v7  ;;  %v62_v19 = vadd.f32 %v143_v2, %v39_v8  ;;  %v22_v22 = vld [vmem:[%s254_s0 + $0x40] sm:$0xff]  ;;  %v25_v29 = vld [vmem:[%s254_s0 + $0x58] sm:$0xff]  ;;  %v27_v35 = vld [vmem:[%s254_s0 + $0x68] sm:$0xff] }
   0x6   :  { %v63_v20 = vadd.f32 %v143_v2, %v40_v9  ;;  %v65_v25 = vadd.f32 %v143_v2, %v42_v15  ;;  %v66_v26 = vadd.f32 %v143_v2, %v43_v16  ;;  %v67_v33 = vadd.f32 %v143_v2, %v44_v21  ;;  %v26_v34 = vld [vmem:[%s254_s0 + $0x60] sm:$0xff]  ;;  %v28_v36 = vld [vmem:[%s254_s0 + $0x70] sm:$0xff]  ;;  %v29_v41 = vld [vmem:[%s254_s0 + $0x78] sm:$0xff] }
   0x7   :  { %v76_v23 = vmax.f32 %v60_v13, 0.0  ;;  %v64_v24 = vadd.f32 %v143_v2, %v41_v14  ;;  %v77_v30 = vmax.f32 %v61_v18, 0.0  ;;  %v78_v31 = vmax.f32 %v62_v19, 0.0 }
   0x8   :  { %v79_v32 = vmax.f32 %v63_v20, 0.0  ;;  %v81_v38 = vmax.f32 %v65_v25, 0.0  ;;  %v82_v39 = vmax.f32 %v66_v26, 0.0  ;;  %v45_v40 = vmul.f32 %v112_v1, %v22_v22 }
   0x9   :  { %92 = vst [vmem:[%s257_s3] sm:$0xff] %v76_v23  ;;  %v80_v37 = vmax.f32 %v64_v24, 0.0  ;;  %93 = vst [vmem:[%s257_s3 + $0x8] sm:$0xff] %v77_v30  ;;  %v83_v42 = vmax.f32 %v67_v33, 0.0  ;;  %v46_v43 = vmul.f32 %v112_v1, %v23_v27  ;;  %v47_v44 = vmul.f32 %v112_v1, %v24_v28 }
   0xa   :  { %94 = vst [vmem:[%s257_s3 + $0x10] sm:$0xff] %v78_v31  ;;  %95 = vst [vmem:[%s257_s3 + $0x18] sm:$0xff] %v79_v32  ;;  %v48_v45 = vmul.f32 %v112_v1, %v25_v29  ;;  %v68_v46 = vadd.f32 %v143_v2, %v45_v40  ;;  %v49_v47 = vmul.f32 %v112_v1, %v26_v34 }
   0xb   :  { %96 = vst [vmem:[%s257_s3 + $0x20] sm:$0xff] %v80_v37  ;;  %97 = vst [vmem:[%s257_s3 + $0x28] sm:$0xff] %v81_v38  ;;  %v50_v48 = vmul.f32 %v112_v1, %v27_v35  ;;  %v51_v49 = vmul.f32 %v112_v1, %v28_v36  ;;  %v69_v50 = vadd.f32 %v143_v2, %v46_v43 }
   0xc   :  { %98 = vst [vmem:[%s257_s3 + $0x30] sm:$0xff] %v82_v39  ;;  %99 = vst [vmem:[%s257_s3 + $0x38] sm:$0xff] %v83_v42  ;;  %v70_v51 = vadd.f32 %v143_v2, %v47_v44  ;;  %v71_v52 = vadd.f32 %v143_v2, %v48_v45  ;;  %v52_v53 = vmul.f32 %v112_v1, %v29_v41  ;;  %v84_v54 = vmax.f32 %v68_v46, 0.0 }
   0xd   :  { %v72_v55 = vadd.f32 %v143_v2, %v49_v47  ;;  %v73_v56 = vadd.f32 %v143_v2, %v50_v48  ;;  %v74_v57 = vadd.f32 %v143_v2, %v51_v49  ;;  %v85_v58 = vmax.f32 %v69_v50, 0.0 }
   0xe   :  { %v86_v59 = vmax.f32 %v70_v51, 0.0  ;;  %v87_v60 = vmax.f32 %v71_v52, 0.0  ;;  %v75_v61 = vadd.f32 %v143_v2, %v52_v53  ;;  %100 = vst [vmem:[%s257_s3 + $0x40] sm:$0xff] %v84_v54 }
   0xf   :  { %v88_v62 = vmax.f32 %v72_v55, 0.0  ;;  %v89_v63 = vmax.f32 %v73_v56, 0.0  ;;  %v90_v0 = vmax.f32 %v74_v57, 0.0  ;;  %101 = vst [vmem:[%s257_s3 + $0x48] sm:$0xff] %v85_v58 }
  0x10   :  { %102 = vst [vmem:[%s257_s3 + $0x50] sm:$0xff] %v86_v59  ;;  %103 = vst [vmem:[%s257_s3 + $0x58] sm:$0xff] %v87_v60  ;;  %v91_v1 = vmax.f32 %v75_v61, 0.0 }
  0x11   :  { %104 = vst [vmem:[%s257_s3 + $0x60] sm:$0xff] %v88_v62  ;;  %105 = vst [vmem:[%s257_s3 + $0x68] sm:$0xff] %v89_v63 }
  0x12   :  { %106 = vst [vmem:[%s257_s3 + $0x70] sm:$0xff] %v90_v0  ;;  %107 = vst [vmem:[%s257_s3 + $0x78] sm:$0xff] %v91_v1 }

// kernel: unet_module.3
= control target key start
LH: loop header
LB: loop body
LE: loop exit
PB: predicated region body
PF: predicated region fallthrough
CT: control target
= control target key end

     0   :  { %s5499_s15 = smov 0   ;;  %s6872_s0 = inlined_call_operand.vmem [shape: f32[2,16,16,4], index: 0, kind: input, shape index: {}]   ;;  %s6873_s1 = inlined_call_operand.vmem [shape: f32[3,3,4,32], index: 1, kind: input, shape index: {}]   ;;  %s6874_s2 = inlined_call_operand.vmem [shape: f32[1,32], index: 2, kind: input, shape index: {}]   ;;  %s6875_s3 = inlined_call_operand.vmem [shape: f32[2,256,32], index: 3, kind: output, shape index: {0}]   ;;  %s6876_s4 = inlined_call_operand.vmem [shape: f32[2,2,32], index: 4, kind: output, shape index: {1}]  }
   0x1 LB: > { %s4131_s16 = sadd.s32 4294967295, %s5471_s15   ;;  %p4135_p0 = scmp.ge.s32.totalorder %s5471_s15, 1  ;;  %s5471_s15 = sphi %s5499_s15, %s15_s15  }
   0x2   : > { %p165_p1 = scmp.lt.s32.totalorder %s5471_s15, 3 }
   0x4   : > { %p166_p2 = pnand %p4135_p0, %p165_p1 }
   0x6   : > { %169 = sbr.rel (%p166_p2) target bundleno = 649 (0x289), region = 32 }
   0xd   : > { %v4141_v0 = vld [vmem:[%s6873_s1 + $0x4] sm:$0xf]  ;;  %vm483_vm0 = vcmask 1043456   ;;  %vm241_vm1 = vcmask 31744   ;;  %vm268_vm2 = vcmask 30720   ;;  %v5473_v1 = vmov 0.0  }
   0xe   : > { %4748 = vmatprep.subr.msk.mxu1 %vm483_vm0, %v4141_v0  ;;  %242 = vst.msk [vmem:[#allocation2] sm:$0xff] %vm241_vm1, %v5473_v1  ;;  %243 = vst.msk [vmem:[#allocation2 + $0x8] sm:$0xff] %vm241_vm1, %v5473_v1  ;;  %v5536_v2 = vld [vmem:[%s6873_s1 + $0x10] sm:$0xf]  ;;  %p5540_p3 = scmp.lt.s32.totalorder %s4131_s16, 1  ;;  %vm249_vm3 = vcmask 24576  }
   0xf   : > { %244 = vst.msk [vmem:[#allocation2 + $0x10] sm:$0xff] %vm241_vm1, %v5473_v1  ;;  %246 = vst.msk [vmem:[#allocation2 + $0x198] sm:$0xff] %vm241_vm1, %v5473_v1  ;;  %v352_v3 = vld [vmem:[%s6873_s1] sm:$0xf]  ;;  %4749 = vmatpush3.msk.msra.mxu1 %vm483_vm0, %v4141_v0  ;;  %4948 = vmatprep.subr.msk.mxu0 %vm483_vm0, %v5536_v2  ;;  %v5555_v4 = vld [vmem:[%s6873_s1 + $0x14] sm:$0xf] }
  0x10   : > { %247 = vst.msk [vmem:[#allocation2 + $0x1a0] sm:$0xff] %vm241_vm1, %v5473_v1  ;;  %248 = vst.msk [vmem:[#allocation2 + $0x1a8] sm:$0xff] %vm241_vm1, %v5473_v1  ;;  %4949 = vmatpush3.msk.msra.mxu0 %vm483_vm0, %v5536_v2  ;;  %s6987_s16 = smov (!%p5540_p3, %s4131_s16), 1  ;;  %4798 = vmatprep.subr.msk.mxu1 %vm483_vm0, %v352_v3  ;;  %v5600_v8 = vld [vmem:[%s6873_s1 + $0x8] sm:$0xf]  ;;  %vm3806_vm4 = vcmask 261120  }
  0x11   : > { %270 = vst.msk [vmem:[#allocation2 + $0x29] sm:$0x7f] %vm268_vm2, %v5473_v1  ;;  %271 = vst.msk [vmem:[#allocation2 + $0x41] sm:$0x7f] %vm268_vm2, %v5473_v1  ;;  %4998 = vmatprep.subr.msk.mxu0 %vm483_vm0, %v5555_v4  ;;  %s4449_s26 = sshll.u32 %s6987_s16, 8  ;;  %s4140_s21 = sshll.u32 %s6987_s16, 1 }
  0x12   : > { %272 = vst.msk [vmem:[#allocation2 + $0x59] sm:$0x7f] %vm268_vm2, %v5473_v1  ;;  %273 = vst.msk [vmem:[#allocation2 + $0x71] sm:$0x7f] %vm268_vm2, %v5473_v1  ;;  %s5592_s29 = scalar_lea.vmem %s6872_s0, %s4449_s26  ;;  %v5655_v33 = vld [vmem:[%s6873_s1 + $0x18] sm:$0xf]  ;;  %s6480_s20 = scalar_lea.vmem %s6875_s3, %s4449_s26 }
  0x13   : > { %274 = vst.msk [vmem:[#allocation2 + $0x89] sm:$0x7f] %vm268_vm2, %v5473_v1  ;;  %275 = vst.msk [vmem:[#allocation2 + $0xa1] sm:$0x7f] %vm268_vm2, %v5473_v1  ;;  %v209_v5 = vld [vmem:[%s5592_s29] sm:$0xff]  ;;  %v210_v6 = vld [vmem:[%s5592_s29 + $0x8] sm:$0xff]  ;;  %s6728_s24 = scalar_lea.vmem %s6876_s4, %s4140_s21 }
  0x14   : > { %276 = vst.msk [vmem:[#allocation2 + $0xb9] sm:$0x7f] %vm268_vm2, %v5473_v1  ;;  %277 = vst.msk [vmem:[#allocation2 + $0xd1] sm:$0x7f] %vm268_vm2, %v5473_v1  ;;  %v211_v7 = vld [vmem:[%s5592_s29 + $0x10] sm:$0xff]  ;;  %v212_v11 = vld [vmem:[%s5592_s29 + $0x18] sm:$0xff] }
  0x15   : > { %278 = vst.msk [vmem:[#allocation2 + $0xe9] sm:$0x7f] %vm268_vm2, %v5473_v1  ;;  %279 = vst.msk [vmem:[#allocation2 + $0x101] sm:$0x7f] %vm268_vm2, %v5473_v1  ;;  %v353_v9 = vld [vmem:[#allocation2 + $0x1] sm:$0xff]  ;;  %v215_v14 = vld [vmem:[%s5592_s29 + $0x30] sm:$0xff] }
  0x16   : > { %280 = vst.msk [vmem:[#allocation2 + $0x119] sm:$0x7f] %vm268_vm2, %v5473_v1  ;;  %281 = vst.msk [vmem:[#allocation2 + $0x131] sm:$0x7f] %vm268_vm2, %v5473_v1  ;;  %v354_v10 = vld [vmem:[#allocation2 + $0x9] sm:$0xff]  ;;  %4750 = vmatprep.mubr.msk.f32.mxu1 %vm241_vm1, %v353_v9  ;;  %v213_v12 = vld [vmem:[%s5592_s29 + $0x20] sm:$0xff] }
  0x17   : > { %282 = vst.msk [vmem:[#allocation2 + $0x149] sm:$0x7f] %vm268_vm2, %v5473_v1  ;;  %283 = vst.msk [vmem:[#allocation2 + $0x161] sm:$0x7f] %vm268_vm2, %v5473_v1  ;;  %v214_v13 = vld [vmem:[%s5592_s29 + $0x28] sm:$0xff]  ;;  %4751 = vmatmul.mubr.msk.f32.vlgmr.msra.gmra.mrb[0].mxu1 %vm241_vm1, %v354_v10  ;;  %v216_v15 = vld [vmem:[%s5592_s29 + $0x38] sm:$0xff] }
  0x18   : > { %284 = vst.msk [vmem:[#allocation2 + $0x179] sm:$0x7f] %vm268_vm2, %v5473_v1  ;;  %285 = vst.msk [vmem:[#allocation2 + $0x191] sm:$0x7f] %vm268_vm2, %v5473_v1  ;;  %v217_v16 = vld [vmem:[%s5592_s29 + $0x40] sm:$0xff]  ;;  %v218_v17 = vld [vmem:[%s5592_s29 + $0x48] sm:$0xff]  ;;  %4799 = vmatpush3.msk.msra.mxu1 %vm483_vm0, %v352_v3 }
  0x19   : > { %269 = vst.msk [vmem:[#allocation2 + $0x11] sm:$0x7f] %vm268_vm2, %v5473_v1  ;;  %286 = vst.msk [vmem:[#allocation2 + $0x1a9] sm:$0x7f] %vm268_vm2, %v5473_v1  ;;  %v219_v18 = vld [vmem:[%s5592_s29 + $0x50] sm:$0xff]  ;;  %v220_v19 = vld [vmem:[%s5592_s29 + $0x58] sm:$0xff]  ;;  %4848 = vmatprep.subr.msk.mxu1 %vm483_vm0, %v5600_v8 }
  0x1a   : > { %250 = vst.msk [vmem:[#allocation2] sm:$0x1] %vm249_vm3, %v5473_v1  ;;  %251 = vst.msk [vmem:[#allocation2 + $0x18] sm:$0x1] %vm249_vm3, %v5473_v1  ;;  %v221_v20 = vld [vmem:[%s5592_s29 + $0x60] sm:$0xff]  ;;  %v222_v21 = vld [vmem:[%s5592_s29 + $0x68] sm:$0xff] }
  0x1b   : > { %252 = vst.msk [vmem:[#allocation2 + $0x30] sm:$0x1] %vm249_vm3, %v5473_v1  ;;  %253 = vst.msk [vmem:[#allocation2 + $0x48] sm:$0x1] %vm249_vm3, %v5473_v1  ;;  %v223_v22 = vld [vmem:[%s5592_s29 + $0x70] sm:$0xff]  ;;  %v224_v23 = vld [vmem:[%s5592_s29 + $0x78] sm:$0xff] }
  0x1c   : > { %254 = vst.msk [vmem:[#allocation2 + $0x60] sm:$0x1] %vm249_vm3, %v5473_v1  ;;  %255 = vst.msk [vmem:[#allocation2 + $0x78] sm:$0x1] %vm249_vm3, %v5473_v1  ;;  %v225_v24 = vld [vmem:[%s5592_s29 + $0x80] sm:$0xff]  ;;  %v226_v25 = vld [vmem:[%s5592_s29 + $0x88] sm:$0xff] }
  0x1d   : > { %256 = vst.msk [vmem:[#allocation2 + $0x90] sm:$0x1] %vm249_vm3, %v5473_v1  ;;  %257 = vst.msk [vmem:[#allocation2 + $0xa8] sm:$0x1] %vm249_vm3, %v5473_v1  ;;  %v227_v26 = vld [vmem:[%s5592_s29 + $0x90] sm:$0xff]  ;;  %v228_v27 = vld [vmem:[%s5592_s29 + $0x98] sm:$0xff] }
  0x1e   : > { %258 = vst.msk [vmem:[#allocation2 + $0xc0] sm:$0x1] %vm249_vm3, %v5473_v1  ;;  %259 = vst.msk [vmem:[#allocation2 + $0xd8] sm:$0x1] %vm249_vm3, %v5473_v1  ;;  %v229_v28 = vld [vmem:[%s5592_s29 + $0xa0] sm:$0xff]  ;;  %v230_v29 = vld [vmem:[%s5592_s29 + $0xa8] sm:$0xff] }
  0x1f   : > { %260 = vst.msk [vmem:[#allocation2 + $0xf0] sm:$0x1] %vm249_vm3, %v5473_v1  ;;  %261 = vst.msk [vmem:[#allocation2 + $0x108] sm:$0x1] %vm249_vm3, %v5473_v1  ;;  %v231_v38 = vld [vmem:[%s5592_s29 + $0xb0] sm:$0xff]  ;;  %v232_v39 = vld [vmem:[%s5592_s29 + $0xb8] sm:$0xff] }
  0x20   : > { %262 = vst.msk [vmem:[#allocation2 + $0x120] sm:$0x1] %vm249_vm3, %v5473_v1  ;;  %263 = vst.msk [vmem:[#allocation2 + $0x138] sm:$0x1] %vm249_vm3, %v5473_v1  ;;  %v233_v40 = vld [vmem:[%s5592_s29 + $0xc0] sm:$0xff]  ;;  %v234_v42 = vld [vmem:[%s5592_s29 + $0xc8] sm:$0xff] }
  0x21   : > { %264 = vst.msk [vmem:[#allocation2 + $0x150] sm:$0x1] %vm249_vm3, %v5473_v1  ;;  %265 = vst.msk [vmem:[#allocation2 + $0x168] sm:$0x1] %vm249_vm3, %v5473_v1  ;;  %v235_v44 = vld [vmem:[%s5592_s29 + $0xd0] sm:$0xff]  ;;  %v236_v45 = vld [vmem:[%s5592_s29 + $0xd8] sm:$0xff] }
  0x22   : > { %266 = vst.msk [vmem:[#allocation2 + $0x180] sm:$0x1] %vm249_vm3, %v5473_v1  ;;  %267 = vst.msk [vmem:[#allocation2 + $0x198] sm:$0x1] %vm249_vm3, %v5473_v1  ;;  %v237_v46 = vld [vmem:[%s5592_s29 + $0xe0] sm:$0xff]  ;;  %v238_v47 = vld [vmem:[%s5592_s29 + $0xe8] sm:$0xff] }
  0x23   : > { %288 = vst.msk [vmem:[#allocation2 + $0x19] sm:$0xff] %vm241_vm1, %v209_v5  ;;  %289 = vst.msk [vmem:[#allocation2 + $0x21] sm:$0xff] %vm241_vm1, %v210_v6  ;;  %v239_v57 = vld [vmem:[%s5592_s29 + $0xf0] sm:$0xff]  ;;  %v240_v58 = vld [vmem:[%s5592_s29 + $0xf8] sm:$0xff]  ;;  %vm3941_vm5 = vcmask 253952  }
  0x24   : > { %290 = vst.msk [vmem:[#allocation2 + $0x31] sm:$0xff] %vm241_vm1, %v211_v7  ;;  %291 = vst.msk [vmem:[#allocation2 + $0x39] sm:$0xff] %vm241_vm1, %v212_v11  ;;  %v5784_v63 = vld [vmem:[%s6873_s1 + $0x1c] sm:$0xf] }
  0x25   : > { %292 = vst.msk [vmem:[#allocation2 + $0x49] sm:$0xff] %vm241_vm1, %v213_v12  ;;  %293 = vst.msk [vmem:[#allocation2 + $0x51] sm:$0xff] %vm241_vm1, %v214_v13 }
  0x26   : > { %294 = vst.msk [vmem:[#allocation2 + $0x61] sm:$0xff] %vm241_vm1, %v215_v14  ;;  %295 = vst.msk [vmem:[#allocation2 + $0x69] sm:$0xff] %vm241_vm1, %v216_v15 }
  0x27   : > { %296 = vst.msk [vmem:[#allocation2 + $0x79] sm:$0xff] %vm241_vm1, %v217_v16  ;;  %297 = vst.msk [vmem:[#allocation2 + $0x81] sm:$0xff] %vm241_vm1, %v218_v17 }
  0x28   : > { %298 = vst.msk [vmem:[#allocation2 + $0x91] sm:$0xff] %vm241_vm1, %v219_v18  ;;  %299 = vst.msk [vmem:[#allocation2 + $0x99] sm:$0xff] %vm241_vm1, %v220_v19 }
  0x29   : > { %300 = vst.msk [vmem:[#allocation2 + $0xa9] sm:$0xff] %vm241_vm1, %v221_v20  ;;  %301 = vst.msk [vmem:[#allocation2 + $0xb1] sm:$0xff] %vm241_vm1, %v222_v21 }
  0x2a   : > { %302 = vst.msk [vmem:[#allocation2 + $0xc1] sm:$0xff] %vm241_vm1, %v223_v22  ;;  %303 = vst.msk [vmem:[#allocation2 + $0xc9] sm:$0xff] %vm241_vm1, %v224_v23  ;;  %v355_v30 = vld [vmem:[#allocation2 + $0x19] sm:$0xff]  ;;  %v356_v31 = vld [vmem:[#allocation2 + $0x21] sm:$0xff] }
  0x2b   : > { %304 = vst.msk [vmem:[#allocation2 + $0xd9] sm:$0xff] %vm241_vm1, %v225_v24  ;;  %305 = vst.msk [vmem:[#allocation2 + $0xe1] sm:$0xff] %vm241_vm1, %v226_v25  ;;  %v5645_v32 = vld [vmem:[#allocation2 + $0x31] sm:$0xff]  ;;  %4753 = vmatprep.mubr.msk.f32.mxu1 %vm241_vm1, %v355_v30  ;;  %4950 = vmatprep.mubr.msk.f32.mxu0 %vm241_vm1, %v355_v30  ;;  %v5663_v34 = vld [vmem:[#allocation2 + $0x39] sm:$0xff] }
  0x2c   : > { %306 = vst.msk [vmem:[#allocation2 + $0xf1] sm:$0xff] %vm241_vm1, %v227_v26  ;;  %307 = vst.msk [vmem:[#allocation2 + $0xf9] sm:$0xff] %vm241_vm1, %v228_v27  ;;  %4754 = vmatmul.mubr.msk.f32.gmra.mrb[2].mxu1 %vm241_vm1, %v356_v31  ;;  %4951 = vmatmul.mubr.msk.f32.vlgmr.msra.gmra.mrb[0].mxu0 %vm241_vm1, %v356_v31  ;;  %v5667_v35 = vld [vmem:[#allocation2 + $0x49] sm:$0xff]  ;;  %v5679_v36 = vld [vmem:[#allocation2 + $0x51] sm:$0xff] }
  0x2d   : > { %308 = vst.msk [vmem:[#allocation2 + $0x109] sm:$0xff] %vm241_vm1, %v229_v28  ;;  %309 = vst.msk [vmem:[#allocation2 + $0x111] sm:$0xff] %vm241_vm1, %v230_v29  ;;  %4999 = vmatpush3.msk.msra.mxu0 %vm483_vm0, %v5555_v4  ;;  %4756 = vmatprep.mubr.msk.f32.mxu1 %vm241_vm1, %v5645_v32  ;;  %v5681_v37 = vld [vmem:[#allocation2 + $0x61] sm:$0xff]  ;;  %v5695_v41 = vld [vmem:[#allocation2 + $0x69] sm:$0xff] }
  0x2e   : > { %4953 = vmatprep.mubr.msk.f32.mxu0 %vm241_vm1, %v5645_v32  ;;  %5048 = vmatprep.subr.msk.mxu0 %vm483_vm0, %v5655_v33  ;;  %310 = vst.msk [vmem:[#allocation2 + $0x121] sm:$0xff] %vm241_vm1, %v231_v38  ;;  %311 = vst.msk [vmem:[#allocation2 + $0x129] sm:$0xff] %vm241_vm1, %v232_v39  ;;  %v5700_v43 = vld [vmem:[#allocation2 + $0x79] sm:$0xff]  ;;  %v5718_v48 = vld [vmem:[#allocation2 + $0x81] sm:$0xff] }
  0x2f   : > { %312 = vst.msk [vmem:[#allocation2 + $0x139] sm:$0xff] %vm241_vm1, %v233_v40  ;;  %313 = vst.msk [vmem:[#allocation2 + $0x141] sm:$0xff] %vm241_vm1, %v234_v42  ;;  %v5721_v49 = vld [vmem:[#allocation2 + $0x91] sm:$0xff]  ;;  %v5731_v50 = vld [vmem:[#allocation2 + $0x99] sm:$0xff] }
  0x30   : > { %4757 = vmatmul.mubr.msk.f32.gmra.mrb[4].mxu1 %vm241_vm1, %v5663_v34  ;;  %4954 = vmatmul.mubr.msk.f32.gmra.mrb[2].mxu0 %vm241_vm1, %v5663_v34  ;;  %314 = vst.msk [vmem:[#allocation2 + $0x151] sm:$0xff] %vm241_vm1, %v235_v44  ;;  %315 = vst.msk [vmem:[#allocation2 + $0x159] sm:$0xff] %vm241_vm1, %v236_v45  ;;  %v5733_v51 = vld [vmem:[#allocation2 + $0xa9] sm:$0xff]  ;;  %v5743_v52 = vld [vmem:[#allocation2 + $0xb1] sm:$0xff] }
  0x31   : > { %4759 = vmatprep.mubr.msk.f32.mxu1 %vm241_vm1, %v5667_v35  ;;  %4956 = vmatprep.mubr.msk.f32.mxu0 %vm241_vm1, %v5667_v35  ;;  %316 = vst.msk [vmem:[#allocation2 + $0x169] sm:$0xff] %vm241_vm1, %v237_v46  ;;  %317 = vst.msk [vmem:[#allocation2 + $0x171] sm:$0xff] %vm241_vm1, %v238_v47  ;;  %v5745_v53 = vld [vmem:[#allocation2 + $0xc1] sm:$0xff]  ;;  %v5755_v54 = vld [vmem:[#allocation2 + $0xc9] sm:$0xff] }
  0x32   : > { %6924 = vst [vmem:[#allocation3_spill] sm:$0xff] %v5755_v54  ;;  %v5757_v55 = vld [vmem:[#allocation2 + $0x1a] sm:$0xff]  ;;  %318 = vst.msk [vmem:[#allocation2 + $0x181] sm:$0xff] %vm241_vm1, %v239_v57  ;;  %v5775_v60 = vld [vmem:[#allocation2 + $0x22] sm:$0xff] }
  0x33   : > { %v5759_v56 = vld [vmem:[#allocation2 + $0xd9] sm:$0xff]  ;;  %319 = vst.msk [vmem:[#allocation2 + $0x189] sm:$0xff] %vm241_vm1, %v240_v58  ;;  %v5773_v59 = vld [vmem:[#allocation2 + $0xe1] sm:$0xff]  ;;  %v5777_v61 = vld [vmem:[#allocation2 + $0xf1] sm:$0xff] }
  0x34   : > { %4760 = vmatmul.mubr.msk.f32.gmra.mrb[6].mxu1 %vm241_vm1, %v5679_v36  ;;  %4957 = vmatmul.mubr.msk.f32.gmra.mrb[4].mxu0 %vm241_vm1, %v5679_v36  ;;  %6925 = vst [vmem:[#allocation4_spill] sm:$0xff] %v5759_v56  ;;  %6926 = vst [vmem:[#allocation5_spill] sm:$0xff] %v5773_v59  ;;  %v5779_v62 = vld [vmem:[#allocation2 + $0x32] sm:$0xff]  ;;  %v5796_v1 = vld [vmem:[#allocation2 + $0x3a] sm:$0xff] }
  0x35   : > { %4762 = vmatprep.mubr.msk.f32.mxu1 %vm241_vm1, %v5681_v37  ;;  %4959 = vmatprep.mubr.msk.f32.mxu0 %vm241_vm1, %v5681_v37  ;;  %6927 = vst [vmem:[#allocation6_spill] sm:$0xff] %v5777_v61  ;;  %v5794_v0 = vld [vmem:[#allocation2 + $0xf9] sm:$0xff]  ;;  %v5800_v3 = vld [vmem:[#allocation2 + $0x109] sm:$0xff]  ;;  %v5814_v5 = vld [vmem:[#allocation2 + $0x111] sm:$0xff] }
  0x36   : > { %6928 = vst [vmem:[#allocation7_spill] sm:$0xff] %v5794_v0  ;;  %6929 = vst [vmem:[#allocation8_spill] sm:$0xff] %v5800_v3  ;;  %v5802_v4 = vld [vmem:[#allocation2 + $0x4a] sm:$0xff]  ;;  %v5816_v6 = vld [vmem:[#allocation2 + $0x52] sm:$0xff] }
  0x37   : > { %6930 = vst [vmem:[#allocation9_spill] sm:$0xff] %v5814_v5  ;;  %v5818_v7 = vld [vmem:[#allocation2 + $0x121] sm:$0xff]  ;;  %v5830_v10 = vld [vmem:[#allocation2 + $0x129] sm:$0xff]  ;;  %v5834_v12 = vld [vmem:[#allocation2 + $0x139] sm:$0xff] }
  0x38   : > { %4763 = vmatmul.mubr.msk.f32.gmra.mrb[8].mxu1 %vm241_vm1, %v5695_v41  ;;  %4960 = vmatmul.mubr.msk.f32.gmra.mrb[6].mxu0 %vm241_vm1, %v5695_v41  ;;  %6931 = vst [vmem:[#allocation10_spill] sm:$0xff] %v5818_v7  ;;  %v5820_v9 = vld [vmem:[#allocation2 + $0x62] sm:$0xff]  ;;  %6932 = vst [vmem:[#allocation11_spill] sm:$0xff] %v5830_v10  ;;  %v5832_v11 = vld [vmem:[#allocation2 + $0x6a] sm:$0xff] }
  0x39   : > { %4765 = vmatprep.mubr.msk.f32.mxu1 %vm241_vm1, %v5700_v43  ;;  %4962 = vmatprep.mubr.msk.f32.mxu0 %vm241_vm1, %v5700_v43  ;;  %6933 = vst [vmem:[#allocation12_spill] sm:$0xff] %v5834_v12  ;;  %v5836_v13 = vld [vmem:[#allocation2 + $0x7a] sm:$0xff]  ;;  %v5848_v15 = vld [vmem:[#allocation2 + $0x82] sm:$0xff]  ;;  %v5850_v16 = vld [vmem:[#allocation2 + $0x151] sm:$0xff] }
  0x3a   : > { %v5846_v14 = vld [vmem:[#allocation2 + $0x141] sm:$0xff]  ;;  %6935 = vst [vmem:[#allocation14_spill] sm:$0xff] %v5850_v16  ;;  %v5852_v17 = vld [vmem:[#allocation2 + $0x92] sm:$0xff]  ;;  %v5866_v20 = vld [vmem:[#allocation2 + $0x169] sm:$0xff] }
  0x3b   : > { %6934 = vst [vmem:[#allocation13_spill] sm:$0xff] %v5846_v14  ;;  %v5862_v18 = vld [vmem:[#allocation2 + $0x159] sm:$0xff]  ;;  %6937 = vst [vmem:[#allocation16_spill] sm:$0xff] %v5866_v20  ;;  %v5868_v21 = vld [vmem:[#allocation2 + $0xaa] sm:$0xff] }
  0x3c   : > { %4766 = vmatmul.mubr.msk.f32.gmra.mrb[10].mxu1 %vm241_vm1, %v5718_v48  ;;  %4963 = vmatmul.mubr.msk.f32.gmra.mrb[8].mxu0 %vm241_vm1, %v5718_v48  ;;  %6936 = vst [vmem:[#allocation15_spill] sm:$0xff] %v5862_v18  ;;  %v5864_v19 = vld [vmem:[#allocation2 + $0x9a] sm:$0xff]  ;;  %v5878_v22 = vld [vmem:[#allocation2 + $0x171] sm:$0xff]  ;;  %v5882_v25 = vld [vmem:[#allocation2 + $0xc2] sm:$0xff] }
  0x3d   : > { %4768 = vmatprep.mubr.msk.f32.mxu1 %vm241_vm1, %v5721_v49  ;;  %4965 = vmatprep.mubr.msk.f32.mxu0 %vm241_vm1, %v5721_v49  ;;  %6938 = vst [vmem:[#allocation17_spill] sm:$0xff] %v5878_v22  ;;  %v5880_v23 = vld [vmem:[#allocation2 + $0xb2] sm:$0xff]  ;;  %v320_v24 = vld [vmem:[#allocation2] sm:$0xff]  ;;  %v321_v26 = vld [vmem:[#allocation2 + $0x8] sm:$0xff] }
  0x3e   : > { %v5891_v27 = vld [vmem:[#allocation2 + $0xca] sm:$0xff]  ;;  %v5893_v28 = vld [vmem:[#allocation2 + $0x18] sm:$0xff]  ;;  %v5909_v31 = vld [vmem:[#allocation2 + $0x20] sm:$0xff] }
  0x3f   : > { %6939 = vst [vmem:[#allocation18_spill] sm:$0xff] %v5893_v28  ;;  %v5895_v29 = vld [vmem:[#allocation2 + $0xda] sm:$0xff]  ;;  %v5903_v30 = vld [vmem:[%s6873_s1 + $0xc] sm:$0xf]  ;;  %6940 = vst [vmem:[#allocation19_spill] sm:$0xff] %v5909_v31 }
  0x40   : > { %4769 = vmatmul.mubr.msk.f32.gmra.mrb[12].mxu1 %vm241_vm1, %v5731_v50  ;;  %4966 = vmatmul.mubr.msk.f32.gmra.mrb[10].mxu0 %vm241_vm1, %v5731_v50  ;;  %v5915_v38 = vld [vmem:[#allocation2 + $0x30] sm:$0xff]  ;;  %v5931_v40 = vld [vmem:[#allocation2 + $0xfa] sm:$0xff]  ;;  %v5933_v42 = vld [vmem:[#allocation2 + $0x48] sm:$0xff] }
  0x41   : > { %4771 = vmatprep.mubr.msk.f32.mxu1 %vm241_vm1, %v5733_v51  ;;  %4968 = vmatprep.mubr.msk.f32.mxu0 %vm241_vm1, %v5733_v51  ;;  %6941 = vst [vmem:[#allocation20_spill] sm:$0xff] %v5915_v38  ;;  %v5917_v39 = vld [vmem:[#allocation2 + $0xf2] sm:$0xff]  ;;  %6943 = vst [vmem:[#allocation22_spill] sm:$0xff] %v5933_v42  ;;  %v5935_v44 = vld [vmem:[#allocation2 + $0x10a] sm:$0xff] }
  0x42   : > { %v5945_v45 = vld [vmem:[#allocation2 + $0x50] sm:$0xff]  ;;  %v5949_v47 = vld [vmem:[#allocation2 + $0x60] sm:$0xff]  ;;  %v5961_v58 = vld [vmem:[#allocation2 + $0x68] sm:$0xff] }
  0x43   : > { %6944 = vst [vmem:[#allocation23_spill] sm:$0xff] %v5945_v45  ;;  %v5947_v46 = vld [vmem:[#allocation2 + $0x112] sm:$0xff]  ;;  %6945 = vst [vmem:[#allocation24_spill] sm:$0xff] %v5949_v47  ;;  %v5951_v57 = vld [vmem:[#allocation2 + $0x122] sm:$0xff] }
  0x44   : > { %4772 = vmatmul.mubr.msk.f32.gmra.mrb[14].mxu1 %vm241_vm1, %v5743_v52  ;;  %4969 = vmatmul.mubr.msk.f32.gmra.mrb[12].mxu0 %vm241_vm1, %v5743_v52  ;;  %6946 = vst [vmem:[#allocation25_spill] sm:$0xff] %v5961_v58 }
  0x45   : > { %4774 = vmatprep.mubr.msk.f32.mxu1 %vm241_vm1, %v5745_v53  ;;  %4971 = vmatprep.mubr.msk.f32.mxu0 %vm241_vm1, %v5745_v53 }
  0x48   : > { %4775 = vmatmul.mubr.msk.f32.gmra.mrb[16].mxu1 %vm241_vm1, %v5755_v54  ;;  %4972 = vmatmul.mubr.msk.f32.gmra.mrb[14].mxu0 %vm241_vm1, %v5755_v54  ;;  %v6039_v54 = vld [vmem:[#allocation2 + $0xe0] sm:$0xff] }
  0x49   : > { %4777 = vmatprep.mubr.msk.f32.mxu1 %vm241_vm1, %v5759_v56  ;;  %5000 = vmatprep.mubr.msk.f32.mxu0 %vm241_vm1, %v5757_v55  ;;  %v6027_v56 = vld [vmem:[#allocation2 + $0x18a] sm:$0xff] }
  0x4a   : > { %6954 = vst [vmem:[#allocation33_spill] sm:$0xff] %v6027_v56 }
  0x4c   : > { %4778 = vmatmul.mubr.msk.f32.gmra.mrb[18].mxu1 %vm241_vm1, %v5773_v59  ;;  %5001 = vmatmul.mubr.msk.f32.vlgmr.msra.gmra.mrb[0].mxu0 %vm241_vm1, %v5775_v60  ;;  %v6015_v59 = vld [vmem:[#allocation2 + $0x182] sm:$0xff] }
  0x4d   : > { %5049 = vmatpush3.msk.msra.mxu0 %vm483_vm0, %v5655_v33  ;;  %4780 = vmatprep.mubr.msk.f32.mxu1 %vm241_vm1, %v5777_v61  ;;  %v5911_v33 = vld [vmem:[#allocation2 + $0xe2] sm:$0xff]  ;;  %6953 = vst [vmem:[#allocation32_spill] sm:$0xff] %v6015_v59 }
  0x4e   : > { %5003 = vmatprep.mubr.msk.f32.mxu0 %vm241_vm1, %v5779_v62  ;;  %5098 = vmatprep.subr.msk.mxu0 %vm483_vm0, %v5784_v63  ;;  %v6013_v61 = vld [vmem:[#allocation2 + $0xc0] sm:$0xff] }
  0x50   : > { %4781 = vmatmul.mubr.msk.f32.gmra.mrb[20].mxu1 %vm241_vm1, %v5794_v0  ;;  %5004 = vmatmul.mubr.msk.f32.gmra.mrb[2].mxu0 %vm241_vm1, %v5796_v1  ;;  %v6011_v0 = vld [vmem:[#allocation2 + $0x172] sm:$0xff] }
  0x51   : > { %4783 = vmatprep.mubr.msk.f32.mxu1 %vm241_vm1, %v5800_v3  ;;  %5006 = vmatprep.mubr.msk.f32.mxu0 %vm241_vm1, %v5802_v4  ;;  %v6009_v3 = vld [vmem:[#allocation2 + $0xb0] sm:$0xff]  ;;  %6952 = vst [vmem:[#allocation31_spill] sm:$0xff] %v6011_v0 }
  0x52   : > { %6951 = vst [vmem:[#allocation30_spill] sm:$0xff] %v6009_v3 }
  0x54   : > { %4784 = vmatmul.mubr.msk.f32.gmra.mrb[22].mxu1 %vm241_vm1, %v5814_v5  ;;  %5007 = vmatmul.mubr.msk.f32.gmra.mrb[4].mxu0 %vm241_vm1, %v5816_v6  ;;  %v5999_v5 = vld [vmem:[#allocation2 + $0x16a] sm:$0xff] }
  0x55   : > { %4786 = vmatprep.mubr.msk.f32.mxu1 %vm241_vm1, %v5818_v7  ;;  %5009 = vmatprep.mubr.msk.f32.mxu0 %vm241_vm1, %v5820_v9  ;;  %v5997_v7 = vld [vmem:[#allocation2 + $0xa8] sm:$0xff] }
  0x58   : > { %4787 = vmatmul.mubr.msk.f32.gmra.mrb[24].mxu1 %vm241_vm1, %v5830_v10  ;;  %5010 = vmatmul.mubr.msk.f32.gmra.mrb[6].mxu0 %vm241_vm1, %v5832_v11  ;;  %v5995_v10 = vld [vmem:[#allocation2 + $0x15a] sm:$0xff] }
  0x59   : > { %4789 = vmatprep.mubr.msk.f32.mxu1 %vm241_vm1, %v5834_v12  ;;  %5012 = vmatprep.mubr.msk.f32.mxu0 %vm241_vm1, %v5836_v13  ;;  %v5993_v12 = vld [vmem:[#allocation2 + $0x98] sm:$0xff] }
  0x5a   : > { %6950 = vst [vmem:[#allocation29_spill] sm:$0xff] %v5993_v12 }
  0x5c   : > { %4790 = vmatmul.mubr.msk.f32.gmra.mrb[26].mxu1 %vm241_vm1, %v5846_v14  ;;  %5013 = vmatmul.mubr.msk.f32.gmra.mrb[8].mxu0 %vm241_vm1, %v5848_v15  ;;  %v5983_v14 = vld [vmem:[#allocation2 + $0x152] sm:$0xff] }
  0x5d   : > { %4792 = vmatprep.mubr.msk.f32.mxu1 %vm241_vm1, %v5850_v16  ;;  %5015 = vmatprep.mubr.msk.f32.mxu0 %vm241_vm1, %v5852_v17  ;;  %v5981_v16 = vld [vmem:[#allocation2 + $0x90] sm:$0xff] }
  0x5e   : > { %6949 = vst [vmem:[#allocation28_spill] sm:$0xff] %v5981_v16 }
  0x60   : > { %4793 = vmatmul.mubr.msk.f32.gmra.mrb[28].mxu1 %vm241_vm1, %v5862_v18  ;;  %5016 = vmatmul.mubr.msk.f32.gmra.mrb[10].mxu0 %vm241_vm1, %v5864_v19  ;;  %v5979_v18 = vld [vmem:[#allocation2 + $0x142] sm:$0xff] }
  0x61   : > { %4795 = vmatprep.mubr.msk.f32.mxu1 %vm241_vm1, %v5866_v20  ;;  %5018 = vmatprep.mubr.msk.f32.mxu0 %vm241_vm1, %v5868_v21  ;;  %v5977_v20 = vld [vmem:[#allocation2 + $0x80] sm:$0xff] }
  0x62   : > { %6948 = vst [vmem:[#allocation27_spill] sm:$0xff] %v5977_v20 }
  0x64   : > { %4796 = vmatmul.mubr.msk.f32.gmra.mrb[30].mxu1 %vm241_vm1, %v5878_v22  ;;  %5019 = vmatmul.mubr.msk.f32.gmra.mrb[12].mxu0 %vm241_vm1, %v5880_v23  ;;  %v5967_v22 = vld [vmem:[#allocation2 + $0x13a] sm:$0xff] }
  0x65   : > { %4800 = vmatprep.mubr.msk.f32.mxu1 %vm241_vm1, %v320_v24  ;;  %5021 = vmatprep.mubr.msk.f32.mxu0 %vm241_vm1, %v5882_v25  ;;  %v5963_v24 = vld [vmem:[#allocation2 + $0x12a] sm:$0xff] }
  0x68   : > { %4801 = vmatmul.mubr.msk.f32.vlgmr.msra.gmra.mrb[0].mxu1 %vm241_vm1, %v321_v26  ;;  %5022 = vmatmul.mubr.msk.f32.gmra.mrb[14].mxu0 %vm241_vm1, %v5891_v27  ;;  %v5965_v26 = vld [vmem:[#allocation2 + $0x78] sm:$0xff] }
  0x69   : > { %4803 = vmatprep.mubr.msk.f32.mxu1 %vm241_vm1, %v5893_v28  ;;  %5024 = vmatprep.mubr.msk.f32.mxu0 %vm241_vm1, %v5895_v29  ;;  %6947 = vst [vmem:[#allocation26_spill] sm:$0xff] %v5965_v26  ;;  %v6029_v28 = vld [vmem:[#allocation2 + $0xd8] sm:$0xff] }
  0x6a   : > { %4849 = vmatpush3.msk.msra.mxu1 %vm483_vm0, %v5600_v8  ;;  %v5929_v8 = vld [vmem:[#allocation2 + $0x38] sm:$0xff] }
  0x6b   : > { %4898 = vmatprep.subr.msk.mxu1 %vm483_vm0, %v5903_v30  ;;  %6942 = vst [vmem:[#allocation21_spill] sm:$0xff] %v5929_v8 }
  0x6c   : > { %4804 = vmatmul.mubr.msk.f32.gmra.mrb[2].mxu1 %vm241_vm1, %v5909_v31  ;;  %5025 = vmatmul.mubr.msk.f32.gmra.mrb[16].mxu0 %vm241_vm1, %v5911_v33  ;;  %v6025_v31 = vld [vmem:[#allocation2 + $0xc8] sm:$0xff] }
  0x6d   : > { %4806 = vmatprep.mubr.msk.f32.mxu1 %vm241_vm1, %v5915_v38  ;;  %5027 = vmatprep.mubr.msk.f32.mxu0 %vm241_vm1, %v5917_v39 }
  0x70   : > { %4807 = vmatmul.mubr.msk.f32.gmra.mrb[4].mxu1 %vm241_vm1, %v5929_v8  ;;  %5028 = vmatmul.mubr.msk.f32.gmra.mrb[18].mxu0 %vm241_vm1, %v5931_v40 }
  0x71   : > { %4809 = vmatprep.mubr.msk.f32.mxu1 %vm241_vm1, %v5933_v42  ;;  %5030 = vmatprep.mubr.msk.f32.mxu0 %vm241_vm1, %v5935_v44 }
  0x74   : > { %4810 = vmatmul.mubr.msk.f32.gmra.mrb[6].mxu1 %vm241_vm1, %v5945_v45  ;;  %5031 = vmatmul.mubr.msk.f32.gmra.mrb[20].mxu0 %vm241_vm1, %v5947_v46 }
  0x75   : > { %4812 = vmatprep.mubr.msk.f32.mxu1 %vm241_vm1, %v5949_v47  ;;  %5033 = vmatprep.mubr.msk.f32.mxu0 %vm241_vm1, %v5951_v57 }
  0x78   : > { %4813 = vmatmul.mubr.msk.f32.gmra.mrb[8].mxu1 %vm241_vm1, %v5961_v58  ;;  %5034 = vmatmul.mubr.msk.f32.gmra.mrb[22].mxu0 %vm241_vm1, %v5963_v24 }
  0x79   : > { %4815 = vmatprep.mubr.msk.f32.mxu1 %vm241_vm1, %v5965_v26  ;;  %5036 = vmatprep.mubr.msk.f32.mxu0 %vm241_vm1, %v5967_v22 }
  0x7c   : > { %4816 = vmatmul.mubr.msk.f32.gmra.mrb[10].mxu1 %vm241_vm1, %v5977_v20  ;;  %5037 = vmatmul.mubr.msk.f32.gmra.mrb[24].mxu0 %vm241_vm1, %v5979_v18 }
  0x7d   : > { %4818 = vmatprep.mubr.msk.f32.mxu1 %vm241_vm1, %v5981_v16  ;;  %5039 = vmatprep.mubr.msk.f32.mxu0 %vm241_vm1, %v5983_v14 }
  0x80   : > { %4819 = vmatmul.mubr.msk.f32.gmra.mrb[12].mxu1 %vm241_vm1, %v5993_v12  ;;  %5040 = vmatmul.mubr.msk.f32.gmra.mrb[26].mxu0 %vm241_vm1, %v5995_v10 }
  0x81   : > { %4821 = vmatprep.mubr.msk.f32.mxu1 %vm241_vm1, %v5997_v7  ;;  %5042 = vmatprep.mubr.msk.f32.mxu0 %vm241_vm1, %v5999_v5 }
  0x84   : > { %4822 = vmatmul.mubr.msk.f32.gmra.mrb[14].mxu1 %vm241_vm1, %v6009_v3  ;;  %5043 = vmatmul.mubr.msk.f32.gmra.mrb[28].mxu0 %vm241_vm1, %v6011_v0  ;;  %v6046_v0 = vld [vmem:[%s6873_s1 + $0x20] sm:$0xf] }
  0x85   : > { %4824 = vmatprep.mubr.msk.f32.mxu1 %vm241_vm1, %v6013_v61  ;;  %5045 = vmatprep.mubr.msk.f32.mxu0 %vm241_vm1, %v6015_v59  ;;  %v6041_v59 = vld [vmem:[#allocation2 + $0xf0] sm:$0xff] }
  0x88   : > { %4825 = vmatmul.mubr.msk.f32.gmra.mrb[16].mxu1 %vm241_vm1, %v6025_v31  ;;  %5046 = vmatmul.mubr.msk.f32.gmra.mrb[30].mxu0 %vm241_vm1, %v6027_v56  ;;  %v6056_v56 = vld [vmem:[#allocation2 + $0xf8] sm:$0xff] }
  0x89   : > { %4827 = vmatprep.mubr.msk.f32.mxu1 %vm241_vm1, %v6029_v28  ;;  %5050 = vmatprep.mubr.msk.f32.mxu0 %vm241_vm1, %v5915_v38  ;;  %v6060_v38 = vld [vmem:[#allocation2 + $0x108] sm:$0xff] }
  0x8c   : > { %4828 = vmatmul.mubr.msk.f32.gmra.mrb[18].mxu1 %vm241_vm1, %v6039_v54  ;;  %5051 = vmatmul.mubr.msk.f32.vlgmr.msra.gmra.mrb[0].mxu0 %vm241_vm1, %v5929_v8  ;;  %v6086_v8 = vld [vmem:[#allocation2 + $0x138] sm:$0xff] }
  0x8d   : > { %5099 = vmatpush3.msk.msra.mxu0 %vm483_vm0, %v5784_v63  ;;  %4830 = vmatprep.mubr.msk.f32.mxu1 %vm241_vm1, %v6041_v59  ;;  %v6072_v63 = vld [vmem:[#allocation2 + $0x110] sm:$0xff] }
  0x8e   : > { %5053 = vmatprep.mubr.msk.f32.mxu0 %vm241_vm1, %v5933_v42  ;;  %5148 = vmatprep.subr.msk.mxu0 %vm483_vm0, %v6046_v0  ;;  %v6074_v42 = vld [vmem:[#allocation2 + $0x120] sm:$0xff] }
  0x90   : > { %4831 = vmatmul.mubr.msk.f32.gmra.mrb[20].mxu1 %vm241_vm1, %v6056_v56  ;;  %5054 = vmatmul.mubr.msk.f32.gmra.mrb[2].mxu0 %vm241_vm1, %v5945_v45  ;;  %v6084_v45 = vld [vmem:[#allocation2 + $0x128] sm:$0xff] }
  0x91   : > { %4833 = vmatprep.mubr.msk.f32.mxu1 %vm241_vm1, %v6060_v38  ;;  %5056 = vmatprep.mubr.msk.f32.mxu0 %vm241_vm1, %v5949_v47  ;;  %v6098_v47 = vld [vmem:[#allocation2 + $0x150] sm:$0xff] }
  0x94   : > { %4834 = vmatmul.mubr.msk.f32.gmra.mrb[22].mxu1 %vm241_vm1, %v6072_v63  ;;  %5057 = vmatmul.mubr.msk.f32.gmra.mrb[4].mxu0 %vm241_vm1, %v5961_v58  ;;  %v6096_v58 = vld [vmem:[#allocation2 + $0x140] sm:$0xff] }
  0x95   : > { %4836 = vmatprep.mubr.msk.f32.mxu1 %vm241_vm1, %v6074_v42  ;;  %5059 = vmatprep.mubr.msk.f32.mxu0 %vm241_vm1, %v5965_v26  ;;  %v6110_v26 = vld [vmem:[#allocation2 + $0x168] sm:$0xff] }
  0x98   : > { %4837 = vmatmul.mubr.msk.f32.gmra.mrb[24].mxu1 %vm241_vm1, %v6084_v45  ;;  %5060 = vmatmul.mubr.msk.f32.gmra.mrb[6].mxu0 %vm241_vm1, %v5977_v20  ;;  %v6108_v20 = vld [vmem:[#allocation2 + $0x158] sm:$0xff] }
  0x99   : > { %4839 = vmatprep.mubr.msk.f32.mxu1 %vm241_vm1, %v6086_v8  ;;  %5062 = vmatprep.mubr.msk.f32.mxu0 %vm241_vm1, %v5981_v16  ;;  %v1036_v16 = vld [vmem:[#allocation2 + $0x2] sm:$0xff] }
  0x9c   : > { %4840 = vmatmul.mubr.msk.f32.gmra.mrb[26].mxu1 %vm241_vm1, %v6096_v58  ;;  %5063 = vmatmul.mubr.msk.f32.gmra.mrb[8].mxu0 %vm241_vm1, %v5993_v12  ;;  %v6120_v12 = vld [vmem:[#allocation2 + $0x170] sm:$0xff] }
  0x9d   : > { %4842 = vmatprep.mubr.msk.f32.mxu1 %vm241_vm1, %v6098_v47  ;;  %5065 = vmatprep.mubr.msk.f32.mxu0 %vm241_vm1, %v5997_v7 }
  0xa0   : > { %4843 = vmatmul.mubr.msk.f32.gmra.mrb[28].mxu1 %vm241_vm1, %v6108_v20  ;;  %5066 = vmatmul.mubr.msk.f32.gmra.mrb[10].mxu0 %vm241_vm1, %v6009_v3  ;;  %v1037_v3 = vld [vmem:[#allocation2 + $0xa] sm:$0xff] }
  0xa1   : > { %4845 = vmatprep.mubr.msk.f32.mxu1 %vm241_vm1, %v6110_v26  ;;  %5068 = vmatprep.mubr.msk.f32.mxu0 %vm241_vm1, %v6013_v61 }
  0xa4   : > { %4846 = vmatmul.mubr.msk.f32.gmra.mrb[30].mxu1 %vm241_vm1, %v6120_v12  ;;  %5069 = vmatmul.mubr.msk.f32.gmra.mrb[12].mxu0 %vm241_vm1, %v6025_v31 }
  0xa5   : > { %4850 = vmatprep.mubr.msk.f32.mxu1 %vm241_vm1, %v1036_v16  ;;  %5071 = vmatprep.mubr.msk.f32.mxu0 %vm241_vm1, %v6029_v28  ;;  %v2628_v16 = vld [vmem:[#allocation2 + $0x1a0] sm:$0xff] }
  0xa8   : > { %4851 = vmatmul.mubr.msk.f32.vlgmr.msra.gmra.mrb[0].mxu1 %vm241_vm1, %v1037_v3  ;;  %5072 = vmatmul.mubr.msk.f32.gmra.mrb[14].mxu0 %vm241_vm1, %v6039_v54  ;;  %v2627_v3 = vld [vmem:[#allocation2 + $0x198] sm:$0xff] }
  0xa9   : > { %4853 = vmatprep.mubr.msk.f32.mxu1 %vm241_vm1, %v5757_v55  ;;  %5074 = vmatprep.mubr.msk.f32.mxu0 %vm241_vm1, %v6041_v59  ;;  %v6180_v55 = vld [vmem:[#allocation2 + $0x180] sm:$0xff] }
  0xaa   : > { %4899 = vmatpush3.msk.msra.mxu1 %vm483_vm0, %v5903_v30  ;;  %v6969_v30 = vld [vmem:[#allocation24_spill] sm:$0xff] }
  0xab   : > { %5198 = vmatprep.subr.msk.mxu1 %vm483_vm0, %v5536_v2 }
  0xac   : > { %4854 = vmatmul.mubr.msk.f32.gmra.mrb[2].mxu1 %vm241_vm1, %v5775_v60  ;;  %5075 = vmatmul.mubr.msk.f32.gmra.mrb[16].mxu0 %vm241_vm1, %v6056_v56  ;;  %v6190_v60 = vld [vmem:[#allocation2 + $0x188] sm:$0xff] }
  0xad   : > { %4856 = vmatprep.mubr.msk.f32.mxu1 %vm241_vm1, %v5779_v62  ;;  %5077 = vmatprep.mubr.msk.f32.mxu0 %vm241_vm1, %v6060_v38 }
  0xb0   : > { %4857 = vmatmul.mubr.msk.f32.gmra.mrb[4].mxu1 %vm241_vm1, %v5796_v1  ;;  %5078 = vmatmul.mubr.msk.f32.gmra.mrb[18].mxu0 %vm241_vm1, %v6072_v63 }
  0xb1   : > { %4859 = vmatprep.mubr.msk.f32.mxu1 %vm241_vm1, %v5802_v4  ;;  %5080 = vmatprep.mubr.msk.f32.mxu0 %vm241_vm1, %v6074_v42 }
  0xb4   : > { %4860 = vmatmul.mubr.msk.f32.gmra.mrb[6].mxu1 %vm241_vm1, %v5816_v6  ;;  %5081 = vmatmul.mubr.msk.f32.gmra.mrb[20].mxu0 %vm241_vm1, %v6084_v45 }
  0xb5   : > { %4862 = vmatprep.mubr.msk.f32.mxu1 %vm241_vm1, %v5820_v9  ;;  %5083 = vmatprep.mubr.msk.f32.mxu0 %vm241_vm1, %v6086_v8 }
  0xb8   : > { %4863 = vmatmul.mubr.msk.f32.gmra.mrb[8].mxu1 %vm241_vm1, %v5832_v11  ;;  %5084 = vmatmul.mubr.msk.f32.gmra.mrb[22].mxu0 %vm241_vm1, %v6096_v58 }
  0xb9   : > { %4865 = vmatprep.mubr.msk.f32.mxu1 %vm241_vm1, %v5836_v13  ;;  %5086 = vmatprep.mubr.msk.f32.mxu0 %vm241_vm1, %v6098_v47 }
  0xbc   : > { %4866 = vmatmul.mubr.msk.f32.gmra.mrb[10].mxu1 %vm241_vm1, %v5848_v15  ;;  %5087 = vmatmul.mubr.msk.f32.gmra.mrb[24].mxu0 %vm241_vm1, %v6108_v20 }
  0xbd   : > { %4868 = vmatprep.mubr.msk.f32.mxu1 %vm241_vm1, %v5852_v17  ;;  %5089 = vmatprep.mubr.msk.f32.mxu0 %vm241_vm1, %v6110_v26 }
  0xc0   : > { %4869 = vmatmul.mubr.msk.f32.gmra.mrb[12].mxu1 %vm241_vm1, %v5864_v19  ;;  %5090 = vmatmul.mubr.msk.f32.gmra.mrb[26].mxu0 %vm241_vm1, %v6120_v12 }
  0xc1   : > { %4871 = vmatprep.mubr.msk.f32.mxu1 %vm241_vm1, %v5868_v21  ;;  %5092 = vmatprep.mubr.msk.f32.mxu0 %vm241_vm1, %v6180_v55 }
  0xc4   : > { %4872 = vmatmul.mubr.msk.f32.gmra.mrb[14].mxu1 %vm241_vm1, %v5880_v23  ;;  %5093 = vmatmul.mubr.msk.f32.gmra.mrb[28].mxu0 %vm241_vm1, %v6190_v60 }
  0xc5   : > { %4874 = vmatprep.mubr.msk.f32.mxu1 %vm241_vm1, %v5882_v25  ;;  %5095 = vmatprep.mubr.msk.f32.mxu0 %vm241_vm1, %v2627_v3  ;;  %v6971_v3 = vld [vmem:[#allocation25_spill] sm:$0xff] }
  0xc8   : > { %4875 = vmatmul.mubr.msk.f32.gmra.mrb[16].mxu1 %vm241_vm1, %v5891_v27  ;;  %5096 = vmatmul.mubr.msk.f32.gmra.mrb[30].mxu0 %vm241_vm1, %v2628_v16  ;;  %v6972_v16 = vld [vmem:[#allocation11_spill] sm:$0xff] }
  0xc9   : > { %4877 = vmatprep.mubr.msk.f32.mxu1 %vm241_vm1, %v5895_v29  ;;  %5100 = vmatprep.mubr.msk.f32.mxu0 %vm241_vm1, %v5645_v32  ;;  %v6955_v32 = vld [vmem:[#allocation31_spill] sm:$0xff] }
  0xcc   : > { %4878 = vmatmul.mubr.msk.f32.gmra.mrb[18].mxu1 %vm241_vm1, %v5911_v33  ;;  %5101 = vmatmul.mubr.msk.f32.vlgmr.msra.gmra.mrb[0].mxu0 %vm241_vm1, %v5663_v34  ;;  %v6956_v34 = vld [vmem:[#allocation3_spill] sm:$0xff] }
  0xcd   : > { %5149 = vmatpush3.msk.msra.mxu0 %vm483_vm0, %v6046_v0  ;;  %4880 = vmatprep.mubr.msk.f32.mxu1 %vm241_vm1, %v5917_v39  ;;  %v6968_v0 = vld [vmem:[#allocation9_spill] sm:$0xff] }
  0xce   : > { %5103 = vmatprep.mubr.msk.f32.mxu0 %vm241_vm1, %v5667_v35  ;;  %v6957_v35 = vld [vmem:[#allocation18_spill] sm:$0xff] }
  0xd0   : > { %4881 = vmatmul.mubr.msk.f32.gmra.mrb[20].mxu1 %vm241_vm1, %v5931_v40  ;;  %5104 = vmatmul.mubr.msk.f32.gmra.mrb[2].mxu0 %vm241_vm1, %v5679_v36  ;;  %v6958_v36 = vld [vmem:[#allocation4_spill] sm:$0xff] }
  0xd1   : > { %4883 = vmatprep.mubr.msk.f32.mxu1 %vm241_vm1, %v5935_v44  ;;  %5106 = vmatprep.mubr.msk.f32.mxu0 %vm241_vm1, %v5681_v37  ;;  %v6959_v37 = vld [vmem:[#allocation19_spill] sm:$0xff] }
  0xd4   : > { %4884 = vmatmul.mubr.msk.f32.gmra.mrb[22].mxu1 %vm241_vm1, %v5947_v46  ;;  %5107 = vmatmul.mubr.msk.f32.gmra.mrb[4].mxu0 %vm241_vm1, %v5695_v41  ;;  %v6960_v41 = vld [vmem:[#allocation5_spill] sm:$0xff] }
  0xd5   : > { %4886 = vmatprep.mubr.msk.f32.mxu1 %vm241_vm1, %v5951_v57  ;;  %5109 = vmatprep.mubr.msk.f32.mxu0 %vm241_vm1, %v5700_v43  ;;  %v6961_v43 = vld [vmem:[#allocation20_spill] sm:$0xff] }
  0xd8   : > { %4887 = vmatmul.mubr.msk.f32.gmra.mrb[24].mxu1 %vm241_vm1, %v5963_v24  ;;  %5110 = vmatmul.mubr.msk.f32.gmra.mrb[6].mxu0 %vm241_vm1, %v5718_v48  ;;  %v6962_v48 = vld [vmem:[#allocation6_spill] sm:$0xff] }
  0xd9   : > { %4889 = vmatprep.mubr.msk.f32.mxu1 %vm241_vm1, %v5967_v22  ;;  %5112 = vmatprep.mubr.msk.f32.mxu0 %vm241_vm1, %v5721_v49  ;;  %v6963_v49 = vld [vmem:[#allocation21_spill] sm:$0xff] }
  0xdc   : > { %4890 = vmatmul.mubr.msk.f32.gmra.mrb[26].mxu1 %vm241_vm1, %v5979_v18  ;;  %5113 = vmatmul.mubr.msk.f32.gmra.mrb[8].mxu0 %vm241_vm1, %v5731_v50  ;;  %v6964_v50 = vld [vmem:[#allocation7_spill] sm:$0xff] }
  0xdd   : > { %4892 = vmatprep.mubr.msk.f32.mxu1 %vm241_vm1, %v5983_v14  ;;  %5115 = vmatprep.mubr.msk.f32.mxu0 %vm241_vm1, %v5733_v51  ;;  %v6965_v51 = vld [vmem:[#allocation22_spill] sm:$0xff] }
  0xe0   : > { %4893 = vmatmul.mubr.msk.f32.gmra.mrb[28].mxu1 %vm241_vm1, %v5995_v10  ;;  %5116 = vmatmul.mubr.msk.f32.gmra.mrb[10].mxu0 %vm241_vm1, %v5743_v52  ;;  %v6966_v52 = vld [vmem:[#allocation8_spill] sm:$0xff] }
  0xe1   : > { %4895 = vmatprep.mubr.msk.f32.mxu1 %vm241_vm1, %v5999_v5  ;;  %5118 = vmatprep.mubr.msk.f32.mxu0 %vm241_vm1, %v5745_v53  ;;  %v6967_v53 = vld [vmem:[#allocation23_spill] sm:$0xff] }
  0xe4   : > { %4896 = vmatmul.mubr.msk.f32.gmra.mrb[30].mxu1 %vm241_vm1, %v6955_v32  ;;  %5119 = vmatmul.mubr.msk.f32.gmra.mrb[12].mxu0 %vm241_vm1, %v6956_v34  ;;  %v6973_v34 = vld [vmem:[#allocation26_spill] sm:$0xff] }
  0xe5   : > { %4900 = vmatprep.mubr.msk.f32.mxu1 %vm241_vm1, %v6957_v35  ;;  %5121 = vmatprep.mubr.msk.f32.mxu0 %vm241_vm1, %v6958_v36  ;;  %v6974_v35 = vld [vmem:[#allocation12_spill] sm:$0xff] }
  0xe8   : > { %4901 = vmatmul.mubr.msk.f32.vlgmr.msra.gmra.mrb[0].mxu1 %vm241_vm1, %v6959_v37  ;;  %5122 = vmatmul.mubr.msk.f32.gmra.mrb[14].mxu0 %vm241_vm1, %v6960_v41  ;;  %v6975_v37 = vld [vmem:[#allocation27_spill] sm:$0xff] }
  0xe9   : > { %4903 = vmatprep.mubr.msk.f32.mxu1 %vm241_vm1, %v6961_v43  ;;  %5124 = vmatprep.mubr.msk.f32.mxu0 %vm241_vm1, %v6962_v48  ;;  %v6976_v43 = vld [vmem:[#allocation13_spill] sm:$0xff] }
  0xea   : > { %5199 = vmatpush3.msk.msra.mxu1 %vm483_vm0, %v5536_v2  ;;  %v6970_v2 = vld [vmem:[#allocation10_spill] sm:$0xff] }
  0xec   : > { %4904 = vmatmul.mubr.msk.f32.gmra.mrb[2].mxu1 %vm241_vm1, %v6963_v49  ;;  %5125 = vmatmul.mubr.msk.f32.gmra.mrb[16].mxu0 %vm241_vm1, %v6964_v50  ;;  %v6977_v49 = vld [vmem:[#allocation28_spill] sm:$0xff] }
  0xed   : > { %4906 = vmatprep.mubr.msk.f32.mxu1 %vm241_vm1, %v6965_v51  ;;  %5127 = vmatprep.mubr.msk.f32.mxu0 %vm241_vm1, %v6966_v52  ;;  %v6978_v51 = vld [vmem:[#allocation14_spill] sm:$0xff] }
  0xf0   : > { %4907 = vmatmul.mubr.msk.f32.gmra.mrb[4].mxu1 %vm241_vm1, %v6967_v53  ;;  %5128 = vmatmul.mubr.msk.f32.gmra.mrb[18].mxu0 %vm241_vm1, %v6968_v0  ;;  %v6979_v53 = vld [vmem:[#allocation29_spill] sm:$0xff] }
  0xf1   : > { %4909 = vmatprep.mubr.msk.f32.mxu1 %vm241_vm1, %v6969_v30  ;;  %5130 = vmatprep.mubr.msk.f32.mxu0 %vm241_vm1, %v6970_v2  ;;  %v6980_v30 = vld [vmem:[#allocation15_spill] sm:$0xff] }
  0xf4   : > { %4910 = vmatmul.mubr.msk.f32.gmra.mrb[6].mxu1 %vm241_vm1, %v6971_v3  ;;  %5131 = vmatmul.mubr.msk.f32.gmra.mrb[20].mxu0 %vm241_vm1, %v6972_v16  ;;  %v6981_v3 = vld [vmem:[#allocation16_spill] sm:$0xff] }
  0xf5   : > { %4912 = vmatprep.mubr.msk.f32.mxu1 %vm241_vm1, %v6973_v34  ;;  %5133 = vmatprep.mubr.msk.f32.mxu0 %vm241_vm1, %v6974_v35  ;;  %v6314_v34 = vld [vmem:[#allocation2 + $0x181] sm:$0xff] }
  0xf8   : > { %4913 = vmatmul.mubr.msk.f32.gmra.mrb[8].mxu1 %vm241_vm1, %v6975_v37  ;;  %5134 = vmatmul.mubr.msk.f32.gmra.mrb[22].mxu0 %vm241_vm1, %v6976_v43  ;;  %v6982_v37 = vld [vmem:[#allocation30_spill] sm:$0xff] }
  0xf9   : > { %4915 = vmatprep.mubr.msk.f32.mxu1 %vm241_vm1, %v6977_v49  ;;  %5136 = vmatprep.mubr.msk.f32.mxu0 %vm241_vm1, %v6978_v51  ;;  %v6983_v49 = vld [vmem:[#allocation17_spill] sm:$0xff] }
  0xfc   : > { %4916 = vmatmul.mubr.msk.f32.gmra.mrb[10].mxu1 %vm241_vm1, %v6979_v53  ;;  %5137 = vmatmul.mubr.msk.f32.gmra.mrb[24].mxu0 %vm241_vm1, %v6980_v30  ;;  %v6324_v53 = vld [vmem:[#allocation2 + $0x189] sm:$0xff] }
  0xfd   : > { %4918 = vmatprep.mubr.msk.f32.mxu1 %vm241_vm1, %v5997_v7  ;;  %5139 = vmatprep.mubr.msk.f32.mxu0 %vm241_vm1, %v6981_v3  ;;  %v3017_v7 = vld [vmem:[#allocation2 + $0x199] sm:$0xff] }
 0x100   : > { %4919 = vmatmul.mubr.msk.f32.gmra.mrb[12].mxu1 %vm241_vm1, %v6982_v37  ;;  %5140 = vmatmul.mubr.msk.f32.gmra.mrb[26].mxu0 %vm241_vm1, %v6983_v49  ;;  %v3018_v37 = vld [vmem:[#allocation2 + $0x1a1] sm:$0xff] }
 0x101   : > { %4921 = vmatprep.mubr.msk.f32.mxu1 %vm241_vm1, %v6013_v61  ;;  %5142 = vmatprep.mubr.msk.f32.mxu0 %vm241_vm1, %v6314_v34  ;;  %v3408_v61 = vld [vmem:[#allocation2 + $0x1a2] sm:$0xff] }
 0x104   : > { %4922 = vmatmul.mubr.msk.f32.gmra.mrb[14].mxu1 %vm241_vm1, %v6025_v31  ;;  %5143 = vmatmul.mubr.msk.f32.gmra.mrb[28].mxu0 %vm241_vm1, %v6324_v53 }
 0x105   : > { %4924 = vmatprep.mubr.msk.f32.mxu1 %vm241_vm1, %v6029_v28  ;;  %5145 = vmatprep.mubr.msk.f32.mxu0 %vm241_vm1, %v3017_v7 }
 0x108   : > { %4925 = vmatmul.mubr.msk.f32.gmra.mrb[16].mxu1 %vm241_vm1, %v6039_v54  ;;  %5146 = vmatmul.mubr.msk.f32.gmra.mrb[30].mxu0 %vm241_vm1, %v3018_v37  ;;  %v6984_v54 = vld [vmem:[#allocation32_spill] sm:$0xff] }
 0x109   : > { %4927 = vmatprep.mubr.msk.f32.mxu1 %vm241_vm1, %v6041_v59  ;;  %5150 = vmatprep.mubr.msk.f32.mxu0 %vm241_vm1, %v5779_v62  ;;  %v6985_v59 = vld [vmem:[#allocation33_spill] sm:$0xff] }
 0x10c   : > { %4928 = vmatmul.mubr.msk.f32.gmra.mrb[18].mxu1 %vm241_vm1, %v6056_v56  ;;  %5151 = vmatmul.mubr.msk.f32.vlgmr.msra.gmra.mrb[0].mxu0 %vm241_vm1, %v5796_v1  ;;  %v3407_v56 = vld [vmem:[#allocation2 + $0x19a] sm:$0xff] }
 0x10d   : > { %4930 = vmatprep.mubr.msk.f32.mxu1 %vm241_vm1, %v6060_v38  ;;  %5153 = vmatprep.mubr.msk.f32.mxu0 %vm241_vm1, %v5802_v4 }
 0x110   : > { %4931 = vmatmul.mubr.msk.f32.gmra.mrb[20].mxu1 %vm241_vm1, %v6072_v63  ;;  %5154 = vmatmul.mubr.msk.f32.gmra.mrb[2].mxu0 %vm241_vm1, %v5816_v6 }
 0x111   : > { %4933 = vmatprep.mubr.msk.f32.mxu1 %vm241_vm1, %v6074_v42  ;;  %5156 = vmatprep.mubr.msk.f32.mxu0 %vm241_vm1, %v5820_v9 }
 0x114   : > { %4934 = vmatmul.mubr.msk.f32.gmra.mrb[22].mxu1 %vm241_vm1, %v6084_v45  ;;  %5157 = vmatmul.mubr.msk.f32.gmra.mrb[4].mxu0 %vm241_vm1, %v5832_v11 }
 0x115   : > { %4936 = vmatprep.mubr.msk.f32.mxu1 %vm241_vm1, %v6086_v8  ;;  %5159 = vmatprep.mubr.msk.f32.mxu0 %vm241_vm1, %v5836_v13 }
 0x118   : > { %4937 = vmatmul.mubr.msk.f32.gmra.mrb[24].mxu1 %vm241_vm1, %v6096_v58  ;;  %5160 = vmatmul.mubr.msk.f32.gmra.mrb[6].mxu0 %vm241_vm1, %v5848_v15 }
 0x119   : > { %4939 = vmatprep.mubr.msk.f32.mxu1 %vm241_vm1, %v6098_v47  ;;  %5162 = vmatprep.mubr.msk.f32.mxu0 %vm241_vm1, %v5852_v17 }
 0x11c   : > { %4940 = vmatmul.mubr.msk.f32.gmra.mrb[26].mxu1 %vm241_vm1, %v6108_v20  ;;  %5163 = vmatmul.mubr.msk.f32.gmra.mrb[8].mxu0 %vm241_vm1, %v5864_v19 }
 0x11d   : > { %4942 = vmatprep.mubr.msk.f32.mxu1 %vm241_vm1, %v6110_v26  ;;  %5165 = vmatprep.mubr.msk.f32.mxu0 %vm241_vm1, %v5868_v21 }
 0x120   : > { %4943 = vmatmul.mubr.msk.f32.gmra.mrb[28].mxu1 %vm241_vm1, %v6120_v12  ;;  %5166 = vmatmul.mubr.msk.f32.gmra.mrb[10].mxu0 %vm241_vm1, %v5880_v23 }
 0x121   : > { %4945 = vmatprep.mubr.msk.f32.mxu1 %vm241_vm1, %v6180_v55  ;;  %5168 = vmatprep.mubr.msk.f32.mxu0 %vm241_vm1, %v5882_v25 }
 0x124   : > { %4946 = vmatmul.mubr.msk.f32.gmra.mrb[30].mxu1 %vm241_vm1, %v6190_v60  ;;  %5169 = vmatmul.mubr.msk.f32.gmra.mrb[12].mxu0 %vm241_vm1, %v5891_v27 }
 0x125   : > { %4974 = vmatprep.mubr.msk.f32.mxu1 %vm241_vm1, %v6958_v36  ;;  %5171 = vmatprep.mubr.msk.f32.mxu0 %vm241_vm1, %v5895_v29 }
 0x128   : > { %4975 = vmatmul.mubr.msk.f32.vlgmr.msra.gmra.mrb[16].mxu1 %vm241_vm1, %v6960_v41  ;;  %5172 = vmatmul.mubr.msk.f32.gmra.mrb[14].mxu0 %vm241_vm1, %v5911_v33 }
 0x129   : > { %4977 = vmatprep.mubr.msk.f32.mxu1 %vm241_vm1, %v6962_v48  ;;  %5174 = vmatprep.mubr.msk.f32.mxu0 %vm241_vm1, %v5917_v39 }
 0x12c   : > { %4978 = vmatmul.mubr.msk.f32.gmra.mrb[18].mxu1 %vm241_vm1, %v6964_v50  ;;  %5175 = vmatmul.mubr.msk.f32.gmra.mrb[16].mxu0 %vm241_vm1, %v5931_v40 }
 0x12d   : > { %4980 = vmatprep.mubr.msk.f32.mxu1 %vm241_vm1, %v6966_v52  ;;  %5177 = vmatprep.mubr.msk.f32.mxu0 %vm241_vm1, %v5935_v44 }
 0x130   : > { %4981 = vmatmul.mubr.msk.f32.gmra.mrb[20].mxu1 %vm241_vm1, %v6968_v0  ;;  %5178 = vmatmul.mubr.msk.f32.gmra.mrb[18].mxu0 %vm241_vm1, %v5947_v46 }
 0x131   : > { %4983 = vmatprep.mubr.msk.f32.mxu1 %vm241_vm1, %v6970_v2  ;;  %5180 = vmatprep.mubr.msk.f32.mxu0 %vm241_vm1, %v5951_v57 }
 0x134   : > { %4984 = vmatmul.mubr.msk.f32.gmra.mrb[22].mxu1 %vm241_vm1, %v6972_v16  ;;  %5181 = vmatmul.mubr.msk.f32.gmra.mrb[20].mxu0 %vm241_vm1, %v5963_v24 }
 0x135   : > { %4986 = vmatprep.mubr.msk.f32.mxu1 %vm241_vm1, %v6974_v35  ;;  %5183 = vmatprep.mubr.msk.f32.mxu0 %vm241_vm1, %v5967_v22  ;;  %v6473_v22 = vld [vmem:[%s6874_s2] ss:$0 sm:$0xff] }
 0x138   : > { %4987 = vmatmul.mubr.msk.f32.gmra.mrb[24].mxu1 %vm241_vm1, %v6976_v43  ;;  %5184 = vmatmul.mubr.msk.f32.gmra.mrb[22].mxu0 %vm241_vm1, %v5979_v18 }
 0x139   : > { %4989 = vmatprep.mubr.msk.f32.mxu1 %vm241_vm1, %v6978_v51  ;;  %5186 = vmatprep.mubr.msk.f32.mxu0 %vm241_vm1, %v5983_v14 }
 0x13c   : > { %4990 = vmatmul.mubr.msk.f32.gmra.mrb[26].mxu1 %vm241_vm1, %v6980_v30  ;;  %5187 = vmatmul.mubr.msk.f32.gmra.mrb[24].mxu0 %vm241_vm1, %v5995_v10 }
 0x13d   : > { %4992 = vmatprep.mubr.msk.f32.mxu1 %vm241_vm1, %v6981_v3  ;;  %5189 = vmatprep.mubr.msk.f32.mxu0 %vm241_vm1, %v5999_v5 }
 0x140   : > { %4993 = vmatmul.mubr.msk.f32.gmra.mrb[28].mxu1 %vm241_vm1, %v6983_v49  ;;  %5190 = vmatmul.mubr.msk.f32.gmra.mrb[26].mxu0 %vm241_vm1, %v6955_v32 }
 0x141   : > { %4995 = vmatprep.mubr.msk.f32.mxu1 %vm241_vm1, %v6314_v34  ;;  %5192 = vmatprep.mubr.msk.f32.mxu0 %vm241_vm1, %v6984_v54 }
 0x144   : > { %4996 = vmatmul.mubr.msk.f32.gmra.mrb[30].mxu1 %vm241_vm1, %v6324_v53  ;;  %5193 = vmatmul.mubr.msk.f32.gmra.mrb[28].mxu0 %vm241_vm1, %v6985_v59 }
 0x145   : > { %5195 = vmatprep.mubr.msk.f32.mxu0 %vm241_vm1, %v3407_v56 }
 0x148   : > { %5196 = vmatmul.mubr.msk.f32.gmra.mrb[30].mxu0 %vm241_vm1, %v3408_v61 }
 0x1bb   : > { %v4902_v62 = vpop.f32.mrb[0].mxu1 }
 0x1bc   : > { %v1625_v1 = vpop.f32.mrb[1].mxu1 }
 0x1bf   : > { %v4905_v4 = vpop.f32.mrb[2].mxu1 }
 0x1c0   : > { %v1635_v5 = vpop.f32.mrb[3].mxu1 }
 0x1c3   : > { %v4908_v6 = vpop.f32.mrb[4].mxu1 }
 0x1c4   : > { %v1645_v9 = vpop.f32.mrb[5].mxu1 }
 0x1c7   : > { %v4911_v10 = vpop.f32.mrb[6].mxu1 }
 0x1c8   : > { %v1655_v11 = vpop.f32.mrb[7].mxu1 }
 0x1cb   : > { %v4914_v12 = vpop.f32.mrb[8].mxu1 }
 0x1cc   : > { %v1665_v13 = vpop.f32.mrb[9].mxu1 }
 0x1cf   : > { %v6458_v14 = vpop.f32.mrb[10].mxu1 }
 0x1d0   : > { %v6460_v15 = vpop.f32.mrb[11].mxu1 }
 0x1d3   : > { %v6462_v17 = vpop.f32.mrb[12].mxu1 }
 0x1d4   : > { %v6464_v18 = vpop.f32.mrb[13].mxu1 }
 0x1d7   : > { %v6466_v19 = vpop.f32.mrb[14].mxu1 }
 0x1d8   : > { %v6468_v20 = vpop.f32.mrb[15].mxu1 }
 0x1df   : > { %v5152_v21 = vpop.f32.mrb[0].mxu0 }
 0x1e0   : > { %v5200_v23 = vadd.f32 %v5152_v21, %v4902_v62  ;;  %v3576_v25 = vpop.f32.mrb[1].mxu0 }
 0x1e1   : > { %v5201_v27 = vadd.f32 %v3576_v25, %v1625_v1 }
 0x1e2   : > { %v6483_v28 = vadd.f32 %v5200_v23, %v6473_v22 }
 0x1e3   : > { %v6486_v29 = vadd.f32 %v5201_v27, %v6473_v22  ;;  %v5155_v31 = vpop.f32.mrb[2].mxu0 }
 0x1e4   : > { %3808 = vst.msk [vmem:[%s6480_s20 + $0x8] sm:$0xff] %vm3806_vm4, %v6483_v28  ;;  %v5202_v33 = vadd.f32 %v5155_v31, %v4905_v4  ;;  %v3586_v38 = vpop.f32.mrb[3].mxu0  ;;  %v3840_v39 = vsel %vm3806_vm4, %v6483_v28, 0.0 }
 0x1e5   : > { %3807 = vst.msk [vmem:[%s6480_s20] sm:$0xff] %vm3806_vm4, %v6486_v29  ;;  %v3839_v8 = vsel %vm3806_vm4, %v6486_v29, 0.0  ;;  %v5203_v40 = vadd.f32 %v3586_v38, %v1635_v5 }
 0x1e6   : > { %v6499_v42 = vadd.f32 %v5202_v33, %v6473_v22  ;;  %v3841_v46 = vadd.f32 %v3840_v39, %v3839_v8 }
 0x1e7   : > { %v6502_v44 = vadd.f32 %v5203_v40, %v6473_v22  ;;  %v5158_v45 = vpop.f32.mrb[4].mxu0 }
 0x1e8   : > { %3810 = vst.msk [vmem:[%s6480_s20 + $0x18] sm:$0xff] %vm3806_vm4, %v6499_v42  ;;  %v5204_v47 = vadd.f32 %v5158_v45, %v4908_v6  ;;  %v3596_v57 = vpop.f32.mrb[5].mxu0  ;;  %v3844_v55 = vsel %vm3806_vm4, %v6499_v42, 0.0 }
 0x1e9   : > { %3809 = vst.msk [vmem:[%s6480_s20 + $0x10] sm:$0xff] %vm3806_vm4, %v6502_v44  ;;  %v3842_v58 = vsel %vm3806_vm4, %v6502_v44, 0.0  ;;  %v5205_v24 = vadd.f32 %v3596_v57, %v1645_v9 }
 0x1ea   : > { %v3843_v26 = vadd.f32 %v3842_v58, %v3841_v46  ;;  %v6513_v63 = vadd.f32 %v5204_v47, %v6473_v22 }
 0x1eb   : > { %v6518_v60 = vadd.f32 %v5205_v24, %v6473_v22  ;;  %v5161_v32 = vpop.f32.mrb[6].mxu0 }
 0x1ec   : > { %3812 = vst.msk [vmem:[%s6480_s20 + $0x28] sm:$0xff] %vm3806_vm4, %v6513_v63  ;;  %v3845_v36 = vadd.f32 %v3844_v55, %v3843_v26  ;;  %v5206_v41 = vadd.f32 %v5161_v32, %v4911_v10  ;;  %v3606_v48 = vpop.f32.mrb[7].mxu0  ;;  %v3848_v16 = vsel %vm3806_vm4, %v6513_v63, 0.0 }
 0x1ed   : > { %3811 = vst.msk [vmem:[%s6480_s20 + $0x20] sm:$0xff] %vm3806_vm4, %v6518_v60  ;;  %v3846_v50 = vsel %vm3806_vm4, %v6518_v60, 0.0  ;;  %v5207_v52 = vadd.f32 %v3606_v48, %v1655_v11 }
 0x1ee   : > { %v3847_v0 = vadd.f32 %v3846_v50, %v3845_v36  ;;  %v6529_v2 = vadd.f32 %v5206_v41, %v6473_v22 }
 0x1ef   : > { %v6534_v35 = vadd.f32 %v5207_v52, %v6473_v22  ;;  %v5164_v43 = vpop.f32.mrb[8].mxu0 }
 0x1f0   : > { %3814 = vst.msk [vmem:[%s6480_s20 + $0x38] sm:$0xff] %vm3806_vm4, %v6529_v2  ;;  %v3849_v51 = vadd.f32 %v3848_v16, %v3847_v0  ;;  %v5208_v30 = vadd.f32 %v5164_v43, %v4914_v12  ;;  %v3616_v3 = vpop.f32.mrb[9].mxu0  ;;  %v3852_v37 = vsel %vm3806_vm4, %v6529_v2, 0.0 }
 0x1f1   : > { %3813 = vst.msk [vmem:[%s6480_s20 + $0x30] sm:$0xff] %vm3806_vm4, %v6534_v35  ;;  %v3850_v34 = vsel %vm3806_vm4, %v6534_v35, 0.0  ;;  %v5209_v49 = vadd.f32 %v3616_v3, %v1665_v13 }
 0x1f2   : > { %v3851_v53 = vadd.f32 %v3850_v34, %v3849_v51  ;;  %v6545_v7 = vadd.f32 %v5208_v30, %v6473_v22 }
 0x1f3   : > { %v6550_v54 = vadd.f32 %v5209_v49, %v6473_v22  ;;  %v5167_v56 = vpop.f32.mrb[10].mxu0 }
 0x1f4   : > { %3816 = vst.msk [vmem:[%s6480_s20 + $0x48] sm:$0xff] %vm3806_vm4, %v6545_v7  ;;  %v3853_v59 = vadd.f32 %v3852_v37, %v3851_v53  ;;  %v5210_v61 = vadd.f32 %v5167_v56, %v6458_v14  ;;  %v3626_v62 = vpop.f32.mrb[11].mxu0  ;;  %v3856_v9 = vsel %vm3806_vm4, %v6545_v7, 0.0 }
 0x1f5   : > { %3815 = vst.msk [vmem:[%s6480_s20 + $0x40] sm:$0xff] %vm3806_vm4, %v6550_v54  ;;  %v3854_v1 = vsel %vm3806_vm4, %v6550_v54, 0.0  ;;  %v5211_v4 = vadd.f32 %v3626_v62, %v6460_v15 }
 0x1f6   : > { %v3855_v5 = vadd.f32 %v3854_v1, %v3853_v59  ;;  %v6563_v6 = vadd.f32 %v5210_v61, %v6473_v22 }
 0x1f7   : > { %v6568_v10 = vadd.f32 %v5211_v4, %v6473_v22  ;;  %v5170_v11 = vpop.f32.mrb[12].mxu0 }
 0x1f8   : > { %3818 = vst.msk [vmem:[%s6480_s20 + $0x58] sm:$0xff] %vm3806_vm4, %v6563_v6  ;;  %v3857_v12 = vadd.f32 %v3856_v9, %v3855_v5  ;;  %v5212_v13 = vadd.f32 %v5170_v11, %v6462_v17  ;;  %v3636_v14 = vpop.f32.mrb[13].mxu0  ;;  %v3860_v27 = vsel %vm3806_vm4, %v6563_v6, 0.0 }
 0x1f9   : > { %3817 = vst.msk [vmem:[%s6480_s20 + $0x50] sm:$0xff] %vm3806_vm4, %v6568_v10  ;;  %v3858_v15 = vsel %vm3806_vm4, %v6568_v10, 0.0  ;;  %v5213_v21 = vadd.f32 %v3636_v14, %v6464_v18 }
 0x1fa   : > { %v3859_v23 = vadd.f32 %v3858_v15, %v3857_v12  ;;  %v6581_v25 = vadd.f32 %v5212_v13, %v6473_v22 }
 0x1fb   : > { %v6586_v31 = vadd.f32 %v5213_v21, %v6473_v22  ;;  %v4976_v17 = vpop.f32.mrb[16].mxu1  ;;  %v5173_v33 = vpop.f32.mrb[14].mxu0 }
 0x1fc   : > { %3820 = vst.msk [vmem:[%s6480_s20 + $0x68] sm:$0xff] %vm3806_vm4, %v6581_v25  ;;  %v3861_v38 = vadd.f32 %v3860_v27, %v3859_v23  ;;  %v5214_v39 = vadd.f32 %v5173_v33, %v6466_v19  ;;  %v2095_v18 = vpop.f32.mrb[17].mxu1  ;;  %v3646_v8 = vpop.f32.mrb[15].mxu0  ;;  %v3864_v57 = vsel %vm3806_vm4, %v6581_v25, 0.0 }
 0x1fd   : > { %3819 = vst.msk [vmem:[%s6480_s20 + $0x60] sm:$0xff] %vm3806_vm4, %v6586_v31  ;;  %v3862_v40 = vsel %vm3806_vm4, %v6586_v31, 0.0  ;;  %v5215_v45 = vadd.f32 %v3646_v8, %v6468_v20 }
 0x1fe   : > { %v3863_v46 = vadd.f32 %v3862_v40, %v3861_v38  ;;  %v6599_v47 = vadd.f32 %v5214_v39, %v6473_v22 }
 0x1ff   : > { %v6604_v19 = vadd.f32 %v5215_v45, %v6473_v22  ;;  %v4979_v58 = vpop.f32.mrb[18].mxu1  ;;  %v5176_v24 = vpop.f32.mrb[16].mxu0 }
 0x200   : > { %3822 = vst.msk [vmem:[%s6480_s20 + $0x78] sm:$0xff] %vm3806_vm4, %v6599_v47  ;;  %v3865_v26 = vadd.f32 %v3864_v57, %v3863_v46  ;;  %v5216_v55 = vadd.f32 %v5176_v24, %v4976_v17  ;;  %v2105_v32 = vpop.f32.mrb[19].mxu1  ;;  %v3656_v20 = vpop.f32.mrb[17].mxu0  ;;  %v3868_v52 = vsel %vm3806_vm4, %v6599_v47, 0.0 }
 0x201   : > { %3821 = vst.msk [vmem:[%s6480_s20 + $0x70] sm:$0xff] %vm3806_vm4, %v6604_v19  ;;  %v3866_v36 = vsel %vm3806_vm4, %v6604_v19, 0.0  ;;  %v5217_v41 = vadd.f32 %v3656_v20, %v2095_v18 }
 0x202   : > { %v3867_v48 = vadd.f32 %v3866_v36, %v3865_v26  ;;  %v6615_v50 = vadd.f32 %v5216_v55, %v6473_v22 }
 0x203   : > { %v6620_v0 = vadd.f32 %v5217_v41, %v6473_v22  ;;  %v4982_v16 = vpop.f32.mrb[20].mxu1  ;;  %v5179_v43 = vpop.f32.mrb[18].mxu0 }
 0x204   : > { %3824 = vst.msk [vmem:[%s6480_s20 + $0x88] sm:$0xff] %vm3806_vm4, %v6615_v50  ;;  %v3869_v51 = vadd.f32 %v3868_v52, %v3867_v48  ;;  %v5218_v30 = vadd.f32 %v5179_v43, %v4979_v58  ;;  %v2115_v3 = vpop.f32.mrb[21].mxu1  ;;  %v3666_v34 = vpop.f32.mrb[19].mxu0  ;;  %v3872_v59 = vsel %vm3806_vm4, %v6615_v50, 0.0 }
 0x205   : > { %3823 = vst.msk [vmem:[%s6480_s20 + $0x80] sm:$0xff] %vm3806_vm4, %v6620_v0  ;;  %v3870_v49 = vsel %vm3806_vm4, %v6620_v0, 0.0  ;;  %v5219_v53 = vadd.f32 %v3666_v34, %v2105_v32 }
 0x206   : > { %v3871_v37 = vadd.f32 %v3870_v49, %v3869_v51  ;;  %v6631_v56 = vadd.f32 %v5218_v30, %v6473_v22 }
 0x207   : > { %v6636_v61 = vadd.f32 %v5219_v53, %v6473_v22  ;;  %v4985_v62 = vpop.f32.mrb[22].mxu1  ;;  %v5182_v1 = vpop.f32.mrb[20].mxu0 }
 0x208   : > { %3826 = vst.msk [vmem:[%s6480_s20 + $0x98] sm:$0xff] %vm3806_vm4, %v6631_v56  ;;  %v3873_v4 = vadd.f32 %v3872_v59, %v3871_v37  ;;  %v5220_v5 = vadd.f32 %v5182_v1, %v4982_v16  ;;  %v2125_v9 = vpop.f32.mrb[23].mxu1  ;;  %v3676_v11 = vpop.f32.mrb[21].mxu0  ;;  %v3876_v21 = vsel %vm3806_vm4, %v6631_v56, 0.0 }
 0x209   : > { %3825 = vst.msk [vmem:[%s6480_s20 + $0x90] sm:$0xff] %vm3806_vm4, %v6636_v61  ;;  %v3874_v12 = vsel %vm3806_vm4, %v6636_v61, 0.0  ;;  %v5221_v13 = vadd.f32 %v3676_v11, %v2115_v3 }
 0x20a   : > { %v3875_v14 = vadd.f32 %v3874_v12, %v3873_v4  ;;  %v6647_v15 = vadd.f32 %v5220_v5, %v6473_v22 }
 0x20b   : > { %v6652_v23 = vadd.f32 %v5221_v13, %v6473_v22  ;;  %v4988_v27 = vpop.f32.mrb[24].mxu1  ;;  %v5185_v17 = vpop.f32.mrb[22].mxu0 }
 0x20c   : > { %3828 = vst.msk [vmem:[%s6480_s20 + $0xa8] sm:$0xff] %vm3806_vm4, %v6647_v15  ;;  %v3877_v33 = vadd.f32 %v3876_v21, %v3875_v14  ;;  %v5222_v38 = vadd.f32 %v5185_v17, %v4985_v62  ;;  %v2135_v39 = vpop.f32.mrb[25].mxu1  ;;  %v3686_v18 = vpop.f32.mrb[23].mxu0  ;;  %v3880_v57 = vsel %vm3806_vm4, %v6647_v15, 0.0 }
 0x20d   : > { %3827 = vst.msk [vmem:[%s6480_s20 + $0xa0] sm:$0xff] %vm3806_vm4, %v6652_v23  ;;  %v3878_v8 = vsel %vm3806_vm4, %v6652_v23, 0.0  ;;  %v5223_v40 = vadd.f32 %v3686_v18, %v2125_v9 }
 0x20e   : > { %v3879_v45 = vadd.f32 %v3878_v8, %v3877_v33  ;;  %v6663_v46 = vadd.f32 %v5222_v38, %v6473_v22 }
 0x20f   : > { %v6668_v58 = vadd.f32 %v5223_v40, %v6473_v22  ;;  %v4991_v24 = vpop.f32.mrb[26].mxu1  ;;  %v5188_v26 = vpop.f32.mrb[24].mxu0 }
 0x210   : > { %3830 = vst.msk [vmem:[%s6480_s20 + $0xb8] sm:$0xff] %vm3806_vm4, %v6663_v46  ;;  %v3881_v55 = vadd.f32 %v3880_v57, %v3879_v45  ;;  %v5224_v32 = vadd.f32 %v5188_v26, %v4988_v27  ;;  %v2145_v20 = vpop.f32.mrb[27].mxu1  ;;  %v3696_v36 = vpop.f32.mrb[25].mxu0  ;;  %v3884_v43 = vsel %vm3806_vm4, %v6663_v46, 0.0 }
 0x211   : > { %3829 = vst.msk [vmem:[%s6480_s20 + $0xb0] sm:$0xff] %vm3806_vm4, %v6668_v58  ;;  %v3882_v41 = vsel %vm3806_vm4, %v6668_v58, 0.0  ;;  %v5225_v48 = vadd.f32 %v3696_v36, %v2135_v39 }
 0x212   : > { %v3883_v52 = vadd.f32 %v3882_v41, %v3881_v55  ;;  %v6679_v16 = vadd.f32 %v5224_v32, %v6473_v22 }
 0x213   : > { %v6684_v51 = vadd.f32 %v5225_v48, %v6473_v22  ;;  %v4994_v30 = vpop.f32.mrb[28].mxu1  ;;  %v5191_v3 = vpop.f32.mrb[26].mxu0 }
 0x214   : > { %3832 = vst.msk [vmem:[%s6480_s20 + $0xc8] sm:$0xff] %vm3806_vm4, %v6679_v16  ;;  %v3885_v34 = vadd.f32 %v3884_v43, %v3883_v52  ;;  %v5226_v49 = vadd.f32 %v5191_v3, %v4991_v24  ;;  %v2155_v53 = vpop.f32.mrb[29].mxu1  ;;  %v3706_v37 = vpop.f32.mrb[27].mxu0  ;;  %v3888_v5 = vsel %vm3806_vm4, %v6679_v16, 0.0 }
 0x215   : > { %3831 = vst.msk [vmem:[%s6480_s20 + $0xc0] sm:$0xff] %vm3806_vm4, %v6684_v51  ;;  %v3886_v59 = vsel %vm3806_vm4, %v6684_v51, 0.0  ;;  %v5227_v62 = vadd.f32 %v3706_v37, %v2145_v20 }
 0x216   : > { %v3887_v1 = vadd.f32 %v3886_v59, %v3885_v34  ;;  %v6695_v4 = vadd.f32 %v5226_v49, %v6473_v22 }
 0x217   : > { %v3800_v9 = vadd.f32 %v5227_v62, %v6473_v22  ;;  %v4997_v11 = vpop.f32.mrb[30].mxu1  ;;  %v5194_v12 = vpop.f32.mrb[28].mxu0 }
 0x218   : > { %3834 = vst.msk [vmem:[%s6480_s20 + $0xd8] sm:$0xff] %vm3806_vm4, %v6695_v4  ;;  %v3889_v13 = vadd.f32 %v3888_v5, %v3887_v1  ;;  %v5228_v14 = vadd.f32 %v5194_v12, %v4994_v30  ;;  %v2165_v21 = vpop.f32.mrb[31].mxu1  ;;  %v3716_v27 = vpop.f32.mrb[29].mxu0  ;;  %v3892_v18 = vsel %vm3806_vm4, %v6695_v4, 0.0 }
 0x219   : > { %3833 = vst.msk [vmem:[%s6480_s20 + $0xd0] sm:$0xff] %vm3806_vm4, %v3800_v9  ;;  %v3890_v17 = vsel %vm3806_vm4, %v3800_v9, 0.0  ;;  %v5229_v33 = vadd.f32 %v3716_v27, %v2155_v53 }
 0x21a   : > { %v3891_v38 = vadd.f32 %v3890_v17, %v3889_v13  ;;  %v3803_v39 = vadd.f32 %v5228_v14, %v6473_v22 }
 0x21b   : > { %v3802_v8 = vadd.f32 %v5229_v33, %v6473_v22  ;;  %v5197_v40 = vpop.f32.mrb[30].mxu0 }
 0x21c   : > { %3836 = vst.msk [vmem:[%s6480_s20 + $0xe8] sm:$0xff] %vm3806_vm4, %v3803_v39  ;;  %v3893_v45 = vadd.f32 %v3892_v18, %v3891_v38  ;;  %v5230_v57 = vadd.f32 %v5197_v40, %v4997_v11  ;;  %v3726_v24 = vpop.f32.mrb[31].mxu0  ;;  %v3896_v36 = vsel %vm3806_vm4, %v3803_v39, 0.0 }
 0x21d   : > { %3835 = vst.msk [vmem:[%s6480_s20 + $0xe0] sm:$0xff] %vm3806_vm4, %v3802_v8  ;;  %v3894_v26 = vsel %vm3806_vm4, %v3802_v8, 0.0  ;;  %v5231_v55 = vadd.f32 %v3726_v24, %v2165_v21 }
 0x21e   : > { %v3895_v32 = vadd.f32 %v3894_v26, %v3893_v45  ;;  %v3805_v20 = vadd.f32 %v5230_v57, %v6473_v22 }
 0x21f   : > { %v3804_v41 = vadd.f32 %v5231_v55, %v6473_v22 }
 0x220   : > { %3838 = vst.msk [vmem:[%s6480_s20 + $0xf8] sm:$0xff] %vm3806_vm4, %v3805_v20  ;;  %v3897_v48 = vadd.f32 %v3896_v36, %v3895_v32  ;;  %v3900_v30 = vsel %vm3806_vm4, %v3805_v20, 0.0 }
 0x221   : > { %3837 = vst.msk [vmem:[%s6480_s20 + $0xf0] sm:$0xff] %vm3806_vm4, %v3804_v41  ;;  %v3898_v52 = vsel %vm3806_vm4, %v3804_v41, 0.0 }
 0x222   : > { %v3899_v43 = vadd.f32 %v3898_v52, %v3897_v48 }
 0x224   : > { %v3901_v3 = vadd.f32 %v3900_v30, %v3899_v43 }
 0x226   : > { %v3902_v34 = vrot.slane %v3901_v3, 4 }
 0x228   : > { %v3903_v49 = vadd.f32 %v3902_v34, %v3901_v3 }
 0x22a   : > { %v3904_v53 = vrot.slane %v3903_v49, 2 }
 0x22c   : > { %v3905_v37 = vadd.f32 %v3904_v53, %v3903_v49 }
 0x22e   : > { %v3906_v59 = vrot.slane %v3905_v37, 1 }
 0x230   : > { %v3907_v62 = vadd.f32 %v3906_v59, %v3905_v37 }
 0x232   : > { %v3908_v22 = vmul.f32 0.00390625, %v3907_v62 }
 0x234   : > { %3942 = vst.msk [vmem:[%s6728_s24] sm:$0x1] %vm3941_vm5, %v3908_v22  ;;  %v3919_v1 = vsub.f32 %v6568_v10, %v3908_v22  ;;  %v3920_v5 = vsub.f32 %v6563_v6, %v3908_v22  ;;  %v3921_v11 = vsub.f32 %v6586_v31, %v3908_v22  ;;  %v6736_v12 = vsub.f32 %v6581_v25, %v3908_v22 }
 0x235   : > { %v6739_v13 = vsub.f32 %v6604_v19, %v3908_v22  ;;  %v6742_v14 = vsub.f32 %v6599_v47, %v3908_v22  ;;  %v6745_v21 = vsub.f32 %v6620_v0, %v3908_v22  ;;  %v6748_v27 = vsub.f32 %v6615_v50, %v3908_v22 }
 0x236   : > { %v6751_v10 = vsub.f32 %v6636_v61, %v3908_v22  ;;  %v6754_v6 = vsub.f32 %v6631_v56, %v3908_v22  ;;  %v6757_v25 = vsub.f32 %v6652_v23, %v3908_v22  ;;  %v6760_v31 = vsub.f32 %v6647_v15, %v3908_v22 }
 0x237   : > { %v6763_v47 = vsub.f32 %v6668_v58, %v3908_v22  ;;  %v6766_v19 = vsub.f32 %v6663_v46, %v3908_v22  ;;  %v6769_v50 = vsub.f32 %v6684_v51, %v3908_v22  ;;  %v6772_v0 = vsub.f32 %v6679_v16, %v3908_v22 }
 0x238   : > { %v6774_v56 = vsub.f32 %v3800_v9, %v3908_v22  ;;  %v6777_v61 = vsub.f32 %v6695_v4, %v3908_v22  ;;  %v6779_v23 = vsub.f32 %v3802_v8, %v3908_v22  ;;  %v6781_v15 = vsub.f32 %v3803_v39, %v3908_v22 }
 0x239   : > { %v6783_v58 = vsub.f32 %v3804_v41, %v3908_v22  ;;  %v6785_v17 = vsub.f32 %v3805_v20, %v3908_v22  ;;  %v3909_v46 = vsub.f32 %v6486_v29, %v3908_v22  ;;  %v3910_v51 = vsub.f32 %v6483_v28, %v3908_v22 }
 0x23a   : > { %v3911_v16 = vsub.f32 %v6502_v44, %v3908_v22  ;;  %v3912_v9 = vsub.f32 %v6499_v42, %v3908_v22  ;;  %v3913_v4 = vsub.f32 %v6518_v60, %v3908_v22  ;;  %v3914_v39 = vsub.f32 %v6513_v63, %v3908_v22 }
 0x23b   : > { %v3943_v33 = vmul.f32 %v3909_v46, %v3909_v46  ;;  %v3944_v38 = vmul.f32 %v3910_v51, %v3910_v51  ;;  %v3915_v29 = vsub.f32 %v6534_v35, %v3908_v22  ;;  %v3916_v42 = vsub.f32 %v6529_v2, %v3908_v22 }
 0x23c   : > { %v3945_v18 = vmul.f32 %v3911_v16, %v3911_v16  ;;  %v3946_v8 = vmul.f32 %v3912_v9, %v3912_v9  ;;  %v3947_v28 = vmul.f32 %v3913_v4, %v3913_v4  ;;  %v3948_v26 = vmul.f32 %v3914_v39, %v3914_v39 }
 0x23d   : > { %v3975_v40 = vsel %vm3806_vm4, %v3943_v33, 0.0  ;;  %v3976_v45 = vsel %vm3806_vm4, %v3944_v38, 0.0  ;;  %v3917_v63 = vsub.f32 %v6550_v54, %v3908_v22  ;;  %v3949_v32 = vmul.f32 %v3915_v29, %v3915_v29 }
 0x23e   : > { %v3977_v57 = vadd.f32 %v3976_v45, %v3975_v40  ;;  %v3978_v44 = vsel %vm3806_vm4, %v3945_v18, 0.0  ;;  %v3980_v60 = vsel %vm3806_vm4, %v3946_v8, 0.0  ;;  %v3982_v20 = vsel %vm3806_vm4, %v3947_v28, 0.0 }
 0x23f   : > { %v3918_v41 = vsub.f32 %v6545_v7, %v3908_v22  ;;  %v3950_v48 = vmul.f32 %v3916_v42, %v3916_v42  ;;  %v3984_v35 = vsel %vm3806_vm4, %v3948_v26, 0.0  ;;  %v3951_v43 = vmul.f32 %v3917_v63, %v3917_v63 }
 0x240   : > { %v3979_v24 = vadd.f32 %v3978_v44, %v3977_v57  ;;  %v3986_v30 = vsel %vm3806_vm4, %v3949_v32, 0.0  ;;  %v3953_v53 = vmul.f32 %v3919_v1, %v3919_v1  ;;  %v3954_v59 = vmul.f32 %v3920_v5, %v3920_v5 }
 0x241   : > { %v3952_v3 = vmul.f32 %v3918_v41, %v3918_v41  ;;  %v3988_v34 = vsel %vm3806_vm4, %v3950_v48, 0.0  ;;  %v3990_v54 = vsel %vm3806_vm4, %v3951_v43, 0.0  ;;  %v3955_v22 = vmul.f32 %v3921_v11, %v3921_v11 }
 0x242   : > { %v3981_v55 = vadd.f32 %v3980_v60, %v3979_v24  ;;  %v3994_v46 = vsel %vm3806_vm4, %v3953_v53, 0.0  ;;  %v3956_v16 = vmul.f32 %v6736_v12, %v6736_v12  ;;  %v3996_v9 = vsel %vm3806_vm4, %v3954_v59, 0.0 }
 0x243   : > { %v3992_v62 = vsel %vm3806_vm4, %v3952_v3, 0.0  ;;  %v3957_v1 = vmul.f32 %v6739_v13, %v6739_v13  ;;  %v3998_v38 = vsel %vm3806_vm4, %v3955_v22, 0.0  ;;  %v3958_v5 = vmul.f32 %v6742_v14, %v6742_v14 }
 0x244   : > { %v3983_v36 = vadd.f32 %v3982_v20, %v3981_v55  ;;  %v4000_v11 = vsel %vm3806_vm4, %v3956_v16, 0.0  ;;  %v3959_v39 = vmul.f32 %v6745_v21, %v6745_v21  ;;  %v3960_v40 = vmul.f32 %v6748_v27, %v6748_v27 }
 0x245   : > { %v4002_v12 = vsel %vm3806_vm4, %v3957_v1, 0.0  ;;  %v4004_v13 = vsel %vm3806_vm4, %v3958_v5, 0.0  ;;  %v3961_v57 = vmul.f32 %v6751_v10, %v6751_v10  ;;  %v3962_v28 = vmul.f32 %v6754_v6, %v6754_v6 }
 0x246   : > { %v3985_v52 = vadd.f32 %v3984_v35, %v3983_v36  ;;  %v4006_v14 = vsel %vm3806_vm4, %v3959_v39, 0.0  ;;  %v4008_v21 = vsel %vm3806_vm4, %v3960_v40, 0.0  ;;  %v3963_v24 = vmul.f32 %v6757_v25, %v6757_v25 }
 0x247   : > { %v4010_v27 = vsel %vm3806_vm4, %v3961_v57, 0.0  ;;  %v3964_v26 = vmul.f32 %v6760_v31, %v6760_v31  ;;  %v4012_v10 = vsel %vm3806_vm4, %v3962_v28, 0.0  ;;  %v3965_v55 = vmul.f32 %v6763_v47, %v6763_v47 }
 0x248   : > { %v3987_v2 = vadd.f32 %v3986_v30, %v3985_v52  ;;  %v4014_v6 = vsel %vm3806_vm4, %v3963_v24, 0.0  ;;  %v3966_v32 = vmul.f32 %v6766_v19, %v6766_v19  ;;  %v3967_v36 = vmul.f32 %v6769_v50, %v6769_v50 }
 0x249   : > { %v4016_v25 = vsel %vm3806_vm4, %v3964_v26, 0.0  ;;  %v4018_v31 = vsel %vm3806_vm4, %v3965_v55, 0.0  ;;  %v3968_v48 = vmul.f32 %v6772_v0, %v6772_v0  ;;  %v3969_v52 = vmul.f32 %v6774_v56, %v6774_v56 }
 0x24a   : > { %v3989_v49 = vadd.f32 %v3988_v34, %v3987_v2  ;;  %v4020_v47 = vsel %vm3806_vm4, %v3966_v32, 0.0  ;;  %v4022_v19 = vsel %vm3806_vm4, %v3967_v36, 0.0  ;;  %v3970_v30 = vmul.f32 %v6777_v61, %v6777_v61 }
 0x24b   : > { %v4024_v50 = vsel %vm3806_vm4, %v3968_v48, 0.0  ;;  %v3971_v3 = vmul.f32 %v6779_v23, %v6779_v23  ;;  %v4026_v0 = vsel %vm3806_vm4, %v3969_v52, 0.0  ;;  %v3974_v59 = vmul.f32 %v6785_v17, %v6785_v17 }
 0x24c   : > { %v3991_v37 = vadd.f32 %v3990_v54, %v3989_v49  ;;  %v3972_v49 = vmul.f32 %v6781_v15, %v6781_v15  ;;  %v4028_v56 = vsel %vm3806_vm4, %v3970_v30, 0.0  ;;  %v3973_v54 = vmul.f32 %v6783_v58, %v6783_v58 }
 0x24d   : > { %v4030_v61 = vsel %vm3806_vm4, %v3971_v3, 0.0  ;;  %v4036_v15 = vsel %vm3806_vm4, %v3974_v59, 0.0 }
 0x24e   : > { %v3993_v7 = vadd.f32 %v3992_v62, %v3991_v37  ;;  %v4032_v23 = vsel %vm3806_vm4, %v3972_v49, 0.0 }
 0x250   : > { %v3995_v51 = vadd.f32 %v3994_v46, %v3993_v7  ;;  %v4034_v7 = vsel %vm3806_vm4, %v3973_v54, 0.0 }
 0x252   : > { %v3997_v33 = vadd.f32 %v3996_v9, %v3995_v51 }
 0x254   : > { %v3999_v4 = vadd.f32 %v3998_v38, %v3997_v33 }
 0x256   : > { %v4001_v18 = vadd.f32 %v4000_v11, %v3999_v4 }
 0x258   : > { %v4003_v8 = vadd.f32 %v4002_v12, %v4001_v18 }
 0x25a   : > { %v4005_v45 = vadd.f32 %v4004_v13, %v4003_v8 }
 0x25c   : > { %v4007_v29 = vadd.f32 %v4006_v14, %v4005_v45 }
 0x25e   : > { %v4009_v44 = vadd.f32 %v4008_v21, %v4007_v29 }
 0x260   : > { %v4011_v42 = vadd.f32 %v4010_v27, %v4009_v44 }
 0x262   : > { %v4013_v60 = vadd.f32 %v4012_v10, %v4011_v42 }
 0x264   : > { %v4015_v63 = vadd.f32 %v4014_v6, %v4013_v60 }
 0x266   : > { %v4017_v20 = vadd.f32 %v4016_v25, %v4015_v63 }
 0x268   : > { %v4019_v41 = vadd.f32 %v4018_v31, %v4017_v20 }
 0x26a   : > { %v4021_v35 = vadd.f32 %v4020_v47, %v4019_v41 }
 0x26c   : > { %v4023_v43 = vadd.f32 %v4022_v19, %v4021_v35 }
 0x26e   : > { %v4025_v2 = vadd.f32 %v4024_v50, %v4023_v43 }
 0x270   : > { %v4027_v34 = vadd.f32 %v4026_v0, %v4025_v2 }
 0x272   : > { %v4029_v53 = vadd.f32 %v4028_v56, %v4027_v34 }
 0x274   : > { %v4031_v37 = vadd.f32 %v4030_v61, %v4029_v53 }
 0x276   : > { %v4033_v62 = vadd.f32 %v4032_v23, %v4031_v37 }
 0x278   : > { %v4035_v22 = vadd.f32 %v4034_v7, %v4033_v62 }
 0x27a   : > { %v4037_v46 = vadd.f32 %v4036_v15, %v4035_v22 }
 0x27c   : > { %v4038_v51 = vrot.slane %v4037_v46, 4 }
 0x27e   : > { %v4039_v16 = vadd.f32 %v4038_v51, %v4037_v46 }
 0x280   : > { %v4040_v9 = vrot.slane %v4039_v16, 2 }
 0x282   : > { %v4041_v58 = vadd.f32 %v4040_v9, %v4039_v16 }
 0x284   : > { %v4042_v33 = vrot.slane %v4041_v58, 1 }
 0x286   : > { %v4043_v1 = vadd.f32 %v4042_v33, %v4041_v58 }
 0x288   : > { %4044 = vst.msk [vmem:[%s6728_s24 + $0x1] sm:$0x1] %vm3941_vm5, %v4043_v1 }
 0x289 PF: > { %s15_s15 = sadd.s32 1, %s5471_s15  }
 0x28a   : > { %p12_p4 = scmp.ge.s32.totalorder %s15_s15, 4  }
 0x28c   :  { %14 = sbr.rel (!%p12_p4) target bundleno = 1 (0x1), region = 85 }

// kernel: unet_module.4
= control target key start
LH: loop header
LB: loop body
LE: loop exit
PB: predicated region body
PF: predicated region fallthrough
CT: control target
= control target key end

     0   :  { %s5842_s21 = smov 0   ;;  %s7321_s0 = inlined_call_operand.vmem [shape: f32[2,256,32], index: 0, kind: input, shape index: {}]   ;;  %s7322_s1 = inlined_call_operand.vmem [shape: f32[1,32], index: 1, kind: input, shape index: {}]   ;;  %s7323_s2 = inlined_call_operand.vmem [shape: f32[1,32], index: 2, kind: input, shape index: {}]   ;;  %s7324_s3 = inlined_call_operand.vmem [shape: f32[3,3,32,32], index: 3, kind: input, shape index: {}]   ;;  %s7325_s4 = inlined_call_operand.vmem [shape: f32[1,32], index: 4, kind: input, shape index: {}]   ;;  %s7326_s5 = inlined_call_operand.vmem [shape: f32[2,256,32], index: 5, kind: output, shape index: {0}]   ;;  %s7327_s6 = inlined_call_operand.vmem [shape: f32[2,2,32], index: 6, kind: output, shape index: {1}]  }
   0x1 LB: > { %s4292_s22 = sadd.s32 4294967295, %s5804_s21   ;;  %p4296_p0 = scmp.ge.s32.totalorder %s5804_s21, 1  ;;  %s5804_s21 = sphi %s5842_s21, %s17_s21  }
   0x2   : > { %p215_p1 = scmp.lt.s32.totalorder %s5804_s21, 3 }
   0x4   : > { %p216_p2 = pnand %p4296_p0, %p215_p1 }
   0x6   : > { %219 = sbr.rel (%p216_p2) target bundleno = 650 (0x28a), region = 40 }
   0xd   : > { %v4304_v0 = vld [vmem:[%s7324_s3 + $0x20] sm:$0xff]  ;;  %v4305_v1 = vld [vmem:[%s7324_s3 + $0x28] sm:$0xff]  ;;  %vm405_vm0 = vcmask 261120   ;;  %vm432_vm1 = vcmask 260096   ;;  %v4306_v5 = vld [vmem:[%s7324_s3 + $0x30] sm:$0xff]  ;;  %v5806_v7 = vmov 0.0  }
   0xe   : > { %v4444_v2 = vld [vmem:[%s7324_s3 + $0x80] sm:$0xff]  ;;  %v5457_v3 = vpack.c.bf16 %v4305_v1, %v4304_v0  ;;  %v4445_v4 = vld [vmem:[%s7324_s3 + $0x88] sm:$0xff]  ;;  %v4307_v6 = vld [vmem:[%s7324_s3 + $0x38] sm:$0xff]  ;;  %406 = vst.msk [vmem:[#allocation2] sm:$0xff] %vm405_vm0, %v5806_v7  ;;  %p5892_p3 = scmp.lt.s32.totalorder %s4292_s22, 1  ;;  %vm413_vm2 = vcmask 253952  }
   0xf   : > { %407 = vst.msk [vmem:[#allocation2 + $0x8] sm:$0xff] %vm405_vm0, %v5806_v7  ;;  %408 = vst.msk [vmem:[#allocation2 + $0x10] sm:$0xff] %vm405_vm0, %v5806_v7  ;;  %v5896_v8 = vpack.c.bf16 %v4445_v4, %v4444_v2  ;;  %v5461_v9 = vpack.c.bf16 %v4307_v6, %v4306_v5  ;;  %v4446_v10 = vld [vmem:[%s7324_s3 + $0x90] sm:$0xff]  ;;  %v4447_v11 = vld [vmem:[%s7324_s3 + $0x98] sm:$0xff] }
  0x10   : > { %410 = vst.msk [vmem:[#allocation2 + $0x198] sm:$0xff] %vm405_vm0, %v5806_v7  ;;  %411 = vst.msk [vmem:[#allocation2 + $0x1a0] sm:$0xff] %vm405_vm0, %v5806_v7  ;;  %5458 = vmatprep.subr.bf16.mxu1 %v5457_v3  ;;  %v5924_v12 = vpack.c.bf16 %v4447_v11, %v4446_v10  ;;  %s7427_s22 = smov (!%p5892_p3, %s4292_s22), 1  ;;  %v516_v13 = vld [vmem:[%s7324_s3] sm:$0xff]  ;;  %v517_v14 = vld [vmem:[%s7324_s3 + $0x8] sm:$0xff] }
  0x11   : > { %412 = vst.msk [vmem:[#allocation2 + $0x1a8] sm:$0xff] %vm405_vm0, %v5806_v7  ;;  %5460 = vmatpush3.bf16.msra.mxu1 %v5457_v3  ;;  %5490 = vmatprep.subr.bf16.mxu0 %v5896_v8  ;;  %v5942_v15 = vld [vmem:[%s7322_s1] ss:$0 sm:$0xff]  ;;  %v4481_v17 = vld [vmem:[%s7324_s3 + $0xa8] sm:$0xff]  ;;  %s4627_s28 = sshll.u32 %s7427_s22, 8  ;;  %v4482_v19 = vld [vmem:[%s7324_s3 + $0xb0] sm:$0xff]  ;;  %v5465_v22 = vpack.c.bf16 %v517_v14, %v516_v13 }
  0x12   : > { %434 = vst.msk [vmem:[#allocation2 + $0x29] sm:$0x7f] %vm432_vm1, %v5806_v7  ;;  %435 = vst.msk [vmem:[#allocation2 + $0x41] sm:$0x7f] %vm432_vm1, %v5806_v7  ;;  %v4480_v16 = vld [vmem:[%s7324_s3 + $0xa0] sm:$0xff]  ;;  %5462 = vmatprep.subr.bf16.mxu1 %v5461_v9  ;;  %5492 = vmatpush3.bf16.msra.mxu0 %v5896_v8  ;;  %v4483_v20 = vld [vmem:[%s7324_s3 + $0xb8] sm:$0xff]  ;;  %s5972_s15 = scalar_lea.vmem %s7321_s0, %s4627_s28  ;;  %s6929_s20 = scalar_lea.vmem %s7326_s5, %s4627_s28 }
  0x13   : > { %436 = vst.msk [vmem:[#allocation2 + $0x59] sm:$0x7f] %vm432_vm1, %v5806_v7  ;;  %437 = vst.msk [vmem:[#allocation2 + $0x71] sm:$0x7f] %vm432_vm1, %v5806_v7  ;;  %v5955_v18 = vld [vmem:[%s7323_s2] ss:$0 sm:$0xff]  ;;  %5494 = vmatprep.subr.bf16.mxu0 %v5924_v12  ;;  %v5974_v23 = vpack.c.bf16 %v4481_v17, %v4480_v16  ;;  %v5992_v36 = vpack.c.bf16 %v4483_v20, %v4482_v19 }
  0x14   : > { %438 = vst.msk [vmem:[#allocation2 + $0x89] sm:$0x7f] %vm432_vm1, %v5806_v7  ;;  %439 = vst.msk [vmem:[#allocation2 + $0xa1] sm:$0x7f] %vm432_vm1, %v5806_v7  ;;  %v518_v21 = vld [vmem:[%s7324_s3 + $0x10] sm:$0xff]  ;;  %v519_v24 = vld [vmem:[%s7324_s3 + $0x18] sm:$0xff] }
  0x15   : > { %440 = vst.msk [vmem:[#allocation2 + $0xb9] sm:$0x7f] %vm432_vm1, %v5806_v7  ;;  %441 = vst.msk [vmem:[#allocation2 + $0xd1] sm:$0x7f] %vm432_vm1, %v5806_v7  ;;  %v4516_v25 = vld [vmem:[%s7324_s3 + $0xc0] sm:$0xff]  ;;  %v4517_v26 = vld [vmem:[%s7324_s3 + $0xc8] sm:$0xff]  ;;  %5464 = vmatpush3.bf16.msra.mxu1 %v5461_v9  ;;  %v5469_v41 = vpack.c.bf16 %v519_v24, %v518_v21 }
  0x16   : > { %442 = vst.msk [vmem:[#allocation2 + $0xe9] sm:$0x7f] %vm432_vm1, %v5806_v7  ;;  %443 = vst.msk [vmem:[#allocation2 + $0x101] sm:$0x7f] %vm432_vm1, %v5806_v7  ;;  %v263_v27 = vld [vmem:[%s5972_s15] sm:$0xff]  ;;  %v264_v28 = vld [vmem:[%s5972_s15 + $0x8] sm:$0xff]  ;;  %5496 = vmatpush3.bf16.msra.mxu0 %v5924_v12  ;;  %v6000_v42 = vpack.c.bf16 %v4517_v26, %v4516_v25  ;;  %5466 = vmatprep.subr.bf16.mxu1 %v5465_v22 }
  0x17   : > { %444 = vst.msk [vmem:[#allocation2 + $0x119] sm:$0x7f] %vm432_vm1, %v5806_v7  ;;  %445 = vst.msk [vmem:[#allocation2 + $0x131] sm:$0x7f] %vm432_vm1, %v5806_v7  ;;  %v265_v29 = vld [vmem:[%s5972_s15 + $0x10] sm:$0xff]  ;;  %v520_v30 = vld [vmem:[#allocation2 + $0x1] sm:$0xff]  ;;  %v302_v32 = vmul.f32 %v5942_v15, %v263_v27  ;;  %v303_v33 = vmul.f32 %v5942_v15, %v264_v28  ;;  %5498 = vmatprep.subr.bf16.mxu0 %v5974_v23 }
  0x18   : > { %446 = vst.msk [vmem:[#allocation2 + $0x149] sm:$0x7f] %vm432_vm1, %v5806_v7  ;;  %447 = vst.msk [vmem:[#allocation2 + $0x161] sm:$0x7f] %vm432_vm1, %v5806_v7  ;;  %v521_v31 = vld [vmem:[#allocation2 + $0x9] sm:$0xff]  ;;  %v304_v34 = vmul.f32 %v5942_v15, %v265_v29  ;;  %v266_v35 = vld [vmem:[%s5972_s15 + $0x18] sm:$0xff]  ;;  %4961 = vmatprep.mubr.msk.f32.mxu1 %vm405_vm0, %v520_v30 }
  0x19   : > { %448 = vst.msk [vmem:[#allocation2 + $0x179] sm:$0x7f] %vm432_vm1, %v5806_v7  ;;  %449 = vst.msk [vmem:[#allocation2 + $0x191] sm:$0x7f] %vm432_vm1, %v5806_v7  ;;  %v305_v37 = vmul.f32 %v5942_v15, %v266_v35  ;;  %v267_v38 = vld [vmem:[%s5972_s15 + $0x20] sm:$0xff]  ;;  %v268_v39 = vld [vmem:[%s5972_s15 + $0x28] sm:$0xff]  ;;  %v341_v43 = vadd.f32 %v5955_v18, %v302_v32  ;;  %v342_v44 = vadd.f32 %v5955_v18, %v303_v33  ;;  %4962 = vmatmul.mubr.msk.f32.vlgmr.msra.gmra.mrb[0].mxu1 %vm405_vm0, %v521_v31 }
  0x1a   : > { %433 = vst.msk [vmem:[#allocation2 + $0x11] sm:$0x7f] %vm432_vm1, %v5806_v7  ;;  %450 = vst.msk [vmem:[#allocation2 + $0x1a9] sm:$0x7f] %vm432_vm1, %v5806_v7  ;;  %v269_v40 = vld [vmem:[%s5972_s15 + $0x30] sm:$0xff]  ;;  %v343_v45 = vadd.f32 %v5955_v18, %v304_v34  ;;  %v270_v46 = vld [vmem:[%s5972_s15 + $0x38] sm:$0xff]  ;;  %v306_v48 = vmul.f32 %v5942_v15, %v267_v38  ;;  %v307_v49 = vmul.f32 %v5942_v15, %v268_v39  ;;  %5468 = vmatpush3.bf16.msra.mxu1 %v5465_v22 }
  0x1b   : > { %414 = vst.msk [vmem:[#allocation2] sm:$0x1] %vm413_vm2, %v5806_v7  ;;  %415 = vst.msk [vmem:[#allocation2 + $0x18] sm:$0x1] %vm413_vm2, %v5806_v7  ;;  %v344_v47 = vadd.f32 %v5955_v18, %v305_v37  ;;  %v308_v50 = vmul.f32 %v5942_v15, %v269_v40  ;;  %v271_v51 = vld [vmem:[%s5972_s15 + $0x40] sm:$0xff]  ;;  %v272_v52 = vld [vmem:[%s5972_s15 + $0x48] sm:$0xff]  ;;  %v309_v57 = vmul.f32 %v5942_v15, %v270_v46  ;;  %5470 = vmatprep.subr.bf16.mxu1 %v5469_v41 }
  0x1c   : > { %416 = vst.msk [vmem:[#allocation2 + $0x30] sm:$0x1] %vm413_vm2, %v5806_v7  ;;  %417 = vst.msk [vmem:[#allocation2 + $0x48] sm:$0x1] %vm413_vm2, %v5806_v7  ;;  %v273_v53 = vld [vmem:[%s5972_s15 + $0x50] sm:$0xff]  ;;  %v373_v54 = vmax.f32 %v341_v43, 0.0  ;;  %v345_v60 = vadd.f32 %v5955_v18, %v306_v48  ;;  %v346_v61 = vadd.f32 %v5955_v18, %v307_v49  ;;  %v310_v0 = vmul.f32 %v5942_v15, %v271_v51 }
  0x1d   : > { %418 = vst.msk [vmem:[#allocation2 + $0x60] sm:$0x1] %vm413_vm2, %v5806_v7  ;;  %419 = vst.msk [vmem:[#allocation2 + $0x78] sm:$0x1] %vm413_vm2, %v5806_v7  ;;  %v374_v55 = vmax.f32 %v342_v44, 0.0  ;;  %v375_v56 = vmax.f32 %v343_v45, 0.0  ;;  %v347_v62 = vadd.f32 %v5955_v18, %v308_v50  ;;  %v348_v63 = vadd.f32 %v5955_v18, %v309_v57 }
  0x1e   : > { %420 = vst.msk [vmem:[#allocation2 + $0x90] sm:$0x1] %vm413_vm2, %v5806_v7  ;;  %421 = vst.msk [vmem:[#allocation2 + $0xa8] sm:$0x1] %vm413_vm2, %v5806_v7  ;;  %v274_v58 = vld [vmem:[%s5972_s15 + $0x58] sm:$0xff]  ;;  %v376_v59 = vmax.f32 %v344_v47, 0.0  ;;  %v311_v1 = vmul.f32 %v5942_v15, %v272_v52  ;;  %v312_v2 = vmul.f32 %v5942_v15, %v273_v53  ;;  %v349_v14 = vadd.f32 %v5955_v18, %v310_v0 }
  0x1f   : > { %422 = vst.msk [vmem:[#allocation2 + $0xc0] sm:$0x1] %vm413_vm2, %v5806_v7  ;;  %423 = vst.msk [vmem:[#allocation2 + $0xd8] sm:$0x1] %vm413_vm2, %v5806_v7  ;;  %v275_v3 = vld [vmem:[%s5972_s15 + $0x60] sm:$0xff]  ;;  %v276_v4 = vld [vmem:[%s5972_s15 + $0x68] sm:$0xff]  ;;  %v313_v10 = vmul.f32 %v5942_v15, %v274_v58  ;;  %5472 = vmatpush3.bf16.msra.mxu1 %v5469_v41 }
  0x20   : > { %424 = vst.msk [vmem:[#allocation2 + $0xf0] sm:$0x1] %vm413_vm2, %v5806_v7  ;;  %425 = vst.msk [vmem:[#allocation2 + $0x108] sm:$0x1] %vm413_vm2, %v5806_v7  ;;  %v277_v5 = vld [vmem:[%s5972_s15 + $0x70] sm:$0xff]  ;;  %v377_v6 = vmax.f32 %v345_v60, 0.0  ;;  %v350_v16 = vadd.f32 %v5955_v18, %v311_v1  ;;  %v351_v17 = vadd.f32 %v5955_v18, %v312_v2  ;;  %v314_v20 = vmul.f32 %v5942_v15, %v275_v3 }
  0x21   : > { %426 = vst.msk [vmem:[#allocation2 + $0x120] sm:$0x1] %vm413_vm2, %v5806_v7  ;;  %427 = vst.msk [vmem:[#allocation2 + $0x138] sm:$0x1] %vm413_vm2, %v5806_v7  ;;  %v379_v9 = vmax.f32 %v347_v62, 0.0  ;;  %v278_v11 = vld [vmem:[%s5972_s15 + $0x78] sm:$0xff]  ;;  %v352_v19 = vadd.f32 %v5955_v18, %v313_v10  ;;  %v315_v21 = vmul.f32 %v5942_v15, %v276_v4  ;;  %v316_v22 = vmul.f32 %v5942_v15, %v277_v5 }
  0x22   : > { %428 = vst.msk [vmem:[#allocation2 + $0x150] sm:$0x1] %vm413_vm2, %v5806_v7  ;;  %429 = vst.msk [vmem:[#allocation2 + $0x168] sm:$0x1] %vm413_vm2, %v5806_v7  ;;  %v380_v13 = vmax.f32 %v348_v63, 0.0  ;;  %v279_v24 = vld [vmem:[%s5972_s15 + $0x80] sm:$0xff]  ;;  %v317_v30 = vmul.f32 %v5942_v15, %v278_v11  ;;  %v353_v33 = vadd.f32 %v5955_v18, %v314_v20 }
  0x23   : > { %430 = vst.msk [vmem:[#allocation2 + $0x180] sm:$0x1] %vm413_vm2, %v5806_v7  ;;  %431 = vst.msk [vmem:[#allocation2 + $0x198] sm:$0x1] %vm413_vm2, %v5806_v7  ;;  %v378_v7 = vmax.f32 %v346_v61, 0.0  ;;  %v280_v25 = vld [vmem:[%s5972_s15 + $0x88] sm:$0xff]  ;;  %v354_v34 = vadd.f32 %v5955_v18, %v315_v21  ;;  %v355_v35 = vadd.f32 %v5955_v18, %v316_v22  ;;  %v318_v38 = vmul.f32 %v5942_v15, %v279_v24 }
  0x24   : > { %7362 = vst [vmem:[#allocation3_spill] sm:$0xff] %v5924_v12  ;;  %452 = vst.msk [vmem:[#allocation2 + $0x19] sm:$0xff] %vm405_vm0, %v373_v54  ;;  %v281_v26 = vld [vmem:[%s5972_s15 + $0x90] sm:$0xff]  ;;  %v381_v27 = vmax.f32 %v349_v14, 0.0  ;;  %v382_v28 = vmax.f32 %v350_v16, 0.0  ;;  %v383_v29 = vmax.f32 %v351_v17, 0.0  ;;  %v356_v37 = vadd.f32 %v5955_v18, %v317_v30 }
  0x25   : > { %453 = vst.msk [vmem:[#allocation2 + $0x21] sm:$0xff] %vm405_vm0, %v374_v55  ;;  %454 = vst.msk [vmem:[#allocation2 + $0x31] sm:$0xff] %vm405_vm0, %v375_v56  ;;  %v282_v31 = vld [vmem:[%s5972_s15 + $0x98] sm:$0xff]  ;;  %v384_v32 = vmax.f32 %v352_v19, 0.0  ;;  %v319_v39 = vmul.f32 %v5942_v15, %v280_v25  ;;  %v320_v40 = vmul.f32 %v5942_v15, %v281_v26  ;;  %v283_v41 = vld [vmem:[%s5972_s15 + $0xa0] sm:$0xff]  ;;  %v385_v48 = vmax.f32 %v353_v33, 0.0 }
  0x26   : > { %455 = vst.msk [vmem:[#allocation2 + $0x39] sm:$0xff] %vm405_vm0, %v376_v59  ;;  %456 = vst.msk [vmem:[#allocation2 + $0x49] sm:$0xff] %vm405_vm0, %v377_v6  ;;  %v284_v43 = vld [vmem:[%s5972_s15 + $0xa8] sm:$0xff]  ;;  %v285_v44 = vld [vmem:[%s5972_s15 + $0xb0] sm:$0xff]  ;;  %v386_v49 = vmax.f32 %v354_v34, 0.0  ;;  %v387_v50 = vmax.f32 %v355_v35, 0.0  ;;  %v321_v51 = vmul.f32 %v5942_v15, %v282_v31  ;;  %v357_v53 = vadd.f32 %v5955_v18, %v318_v38 }
  0x27   : > { %457 = vst.msk [vmem:[#allocation2 + $0x51] sm:$0xff] %vm405_vm0, %v378_v7  ;;  %458 = vst.msk [vmem:[#allocation2 + $0x61] sm:$0xff] %vm405_vm0, %v379_v9  ;;  %v388_v52 = vmax.f32 %v356_v37, 0.0  ;;  %v358_v54 = vadd.f32 %v5955_v18, %v319_v39  ;;  %v359_v55 = vadd.f32 %v5955_v18, %v320_v40  ;;  %v286_v56 = vld [vmem:[%s5972_s15 + $0xb8] sm:$0xff]  ;;  %v322_v58 = vmul.f32 %v5942_v15, %v283_v41  ;;  %v287_v60 = vld [vmem:[%s5972_s15 + $0xc0] sm:$0xff]  ;;  %s4301_s28 = sshll.u32 %s7427_s22, 1 }
  0x28   : > { %459 = vst.msk [vmem:[#allocation2 + $0x69] sm:$0xff] %vm405_vm0, %v380_v13  ;;  %460 = vst.msk [vmem:[#allocation2 + $0x79] sm:$0xff] %vm405_vm0, %v381_v27  ;;  %v360_v57 = vadd.f32 %v5955_v18, %v321_v51  ;;  %v323_v59 = vmul.f32 %v5942_v15, %v284_v43  ;;  %v288_v61 = vld [vmem:[%s5972_s15 + $0xc8] sm:$0xff]  ;;  %v289_v62 = vld [vmem:[%s5972_s15 + $0xd0] sm:$0xff]  ;;  %v389_v0 = vmax.f32 %v357_v53, 0.0  ;;  %v324_v3 = vmul.f32 %v5942_v15, %v285_v44  ;;  %s7177_s25 = scalar_lea.vmem %s7327_s6, %s4301_s28 }
  0x29   : > { %461 = vst.msk [vmem:[#allocation2 + $0x81] sm:$0xff] %vm405_vm0, %v382_v28  ;;  %462 = vst.msk [vmem:[#allocation2 + $0x91] sm:$0xff] %vm405_vm0, %v383_v29  ;;  %v390_v1 = vmax.f32 %v358_v54, 0.0  ;;  %v391_v2 = vmax.f32 %v359_v55, 0.0  ;;  %v290_v4 = vld [vmem:[%s5972_s15 + $0xd8] sm:$0xff]  ;;  %v325_v9 = vmul.f32 %v5942_v15, %v286_v56  ;;  %v326_v11 = vmul.f32 %v5942_v15, %v287_v60  ;;  %v291_v16 = vld [vmem:[%s5972_s15 + $0xe0] sm:$0xff] }
  0x2a   : > { %463 = vst.msk [vmem:[#allocation2 + $0x99] sm:$0xff] %vm405_vm0, %v384_v32  ;;  %464 = vst.msk [vmem:[#allocation2 + $0xa9] sm:$0xff] %vm405_vm0, %v385_v48  ;;  %v392_v6 = vmax.f32 %v360_v57, 0.0  ;;  %v362_v7 = vadd.f32 %v5955_v18, %v323_v59  ;;  %v363_v10 = vadd.f32 %v5955_v18, %v324_v3  ;;  %v327_v13 = vmul.f32 %v5942_v15, %v288_v61  ;;  %v292_v17 = vld [vmem:[%s5972_s15 + $0xe8] sm:$0xff]  ;;  %v4372_v24 = vld [vmem:[%s7324_s3 + $0x40] sm:$0xff] }
  0x2b   : > { %v522_v45 = vld [vmem:[#allocation2 + $0x19] sm:$0xff]  ;;  %465 = vst.msk [vmem:[#allocation2 + $0xb1] sm:$0xff] %vm405_vm0, %v386_v49  ;;  %466 = vst.msk [vmem:[#allocation2 + $0xc1] sm:$0xff] %vm405_vm0, %v387_v50  ;;  %v328_v14 = vmul.f32 %v5942_v15, %v289_v62  ;;  %v364_v21 = vadd.f32 %v5955_v18, %v325_v9  ;;  %v329_v22 = vmul.f32 %v5942_v15, %v290_v4  ;;  %v4373_v25 = vld [vmem:[%s7324_s3 + $0x48] sm:$0xff] }
  0x2c   : > { %v523_v46 = vld [vmem:[#allocation2 + $0x21] sm:$0xff]  ;;  %v524_v47 = vld [vmem:[#allocation2 + $0x31] sm:$0xff]  ;;  %4964 = vmatprep.mubr.msk.f32.mxu1 %vm405_vm0, %v522_v45  ;;  %5185 = vmatprep.mubr.msk.f32.mxu0 %vm405_vm0, %v522_v45  ;;  %467 = vst.msk [vmem:[#allocation2 + $0xc9] sm:$0xff] %vm405_vm0, %v388_v52  ;;  %468 = vst.msk [vmem:[#allocation2 + $0xd9] sm:$0xff] %vm405_vm0, %v389_v0  ;;  %v394_v20 = vmax.f32 %v362_v7, 0.0  ;;  %v395_v27 = vmax.f32 %v363_v10, 0.0  ;;  %v365_v28 = vadd.f32 %v5955_v18, %v326_v11 }
  0x2d   : > { %4965 = vmatmul.mubr.msk.f32.gmra.mrb[2].mxu1 %vm405_vm0, %v523_v46  ;;  %5186 = vmatmul.mubr.msk.f32.vlgmr.msra.gmra.mrb[0].mxu0 %vm405_vm0, %v523_v46  ;;  %v525_v63 = vld [vmem:[#allocation2 + $0x39] sm:$0xff]  ;;  %v526_v5 = vld [vmem:[#allocation2 + $0x49] sm:$0xff]  ;;  %469 = vst.msk [vmem:[#allocation2 + $0xe1] sm:$0xff] %vm405_vm0, %v390_v1  ;;  %470 = vst.msk [vmem:[#allocation2 + $0xf1] sm:$0xff] %vm405_vm0, %v391_v2  ;;  %v366_v29 = vadd.f32 %v5955_v18, %v327_v13  ;;  %v367_v30 = vadd.f32 %v5955_v18, %v328_v14  ;;  %v396_v32 = vmax.f32 %v364_v21, 0.0 }
  0x2e   : > { %5500 = vmatpush3.bf16.msra.mxu0 %v5974_v23  ;;  %4967 = vmatprep.mubr.msk.f32.mxu1 %vm405_vm0, %v524_v47  ;;  %v361_v23 = vadd.f32 %v5955_v18, %v322_v58  ;;  %471 = vst.msk [vmem:[#allocation2 + $0xf9] sm:$0xff] %vm405_vm0, %v392_v6  ;;  %v527_v26 = vld [vmem:[#allocation2 + $0x51] sm:$0xff]  ;;  %v528_v31 = vld [vmem:[#allocation2 + $0x61] sm:$0xff]  ;;  %473 = vst.msk [vmem:[#allocation2 + $0x111] sm:$0xff] %vm405_vm0, %v394_v20  ;;  %v368_v33 = vadd.f32 %v5955_v18, %v329_v22  ;;  %v397_v39 = vmax.f32 %v365_v28, 0.0 }
  0x2f   : > { %5188 = vmatprep.mubr.msk.f32.mxu0 %vm405_vm0, %v524_v47  ;;  %5502 = vmatprep.subr.bf16.mxu0 %v5992_v36  ;;  %v330_v34 = vmul.f32 %v5942_v15, %v291_v16  ;;  %v331_v35 = vmul.f32 %v5942_v15, %v292_v17  ;;  %v293_v37 = vld [vmem:[%s5972_s15 + $0xf0] sm:$0xff]  ;;  %v294_v38 = vld [vmem:[%s5972_s15 + $0xf8] sm:$0xff]  ;;  %474 = vst.msk [vmem:[#allocation2 + $0x121] sm:$0xff] %vm405_vm0, %v395_v27  ;;  %v398_v40 = vmax.f32 %v366_v29, 0.0  ;;  %475 = vst.msk [vmem:[#allocation2 + $0x129] sm:$0xff] %vm405_vm0, %v396_v32 }
  0x30   : > { %v393_v19 = vmax.f32 %v361_v23, 0.0  ;;  %v6126_v41 = vpack.c.bf16 %v4373_v25, %v4372_v24  ;;  %v400_v43 = vmax.f32 %v368_v33, 0.0  ;;  %v6135_v46 = vld [vmem:[#allocation2 + $0x69] sm:$0xff]  ;;  %476 = vst.msk [vmem:[#allocation2 + $0x139] sm:$0xff] %vm405_vm0, %v397_v39  ;;  %v332_v47 = vmul.f32 %v5942_v15, %v293_v37  ;;  %v6142_v49 = vld [vmem:[#allocation2 + $0x79] sm:$0xff]  ;;  %v6160_v55 = vld [vmem:[#allocation2 + $0x91] sm:$0xff] }
  0x31   : > { %4968 = vmatmul.mubr.msk.f32.gmra.mrb[4].mxu1 %vm405_vm0, %v525_v63  ;;  %5189 = vmatmul.mubr.msk.f32.gmra.mrb[2].mxu0 %vm405_vm0, %v525_v63  ;;  %v369_v44 = vadd.f32 %v5955_v18, %v330_v34  ;;  %v370_v45 = vadd.f32 %v5955_v18, %v331_v35  ;;  %477 = vst.msk [vmem:[#allocation2 + $0x141] sm:$0xff] %vm405_vm0, %v398_v40  ;;  %v6172_v56 = vld [vmem:[#allocation2 + $0x99] sm:$0xff]  ;;  %v6174_v57 = vld [vmem:[#allocation2 + $0xa9] sm:$0xff] }
  0x32   : > { %4970 = vmatprep.mubr.msk.f32.mxu1 %vm405_vm0, %v526_v5  ;;  %5191 = vmatprep.mubr.msk.f32.mxu0 %vm405_vm0, %v526_v5  ;;  %472 = vst.msk [vmem:[#allocation2 + $0x109] sm:$0xff] %vm405_vm0, %v393_v19  ;;  %v333_v48 = vmul.f32 %v5942_v15, %v294_v38  ;;  %479 = vst.msk [vmem:[#allocation2 + $0x159] sm:$0xff] %vm405_vm0, %v400_v43  ;;  %v371_v52 = vadd.f32 %v5955_v18, %v332_v47  ;;  %v6158_v15 = vld [vmem:[#allocation2 + $0x81] sm:$0xff]  ;;  %v6184_v58 = vld [vmem:[#allocation2 + $0xb1] sm:$0xff] }
  0x33   : > { %5504 = vmatpush3.bf16.msra.mxu0 %v5992_v36  ;;  %v399_v36 = vmax.f32 %v367_v30, 0.0  ;;  %v401_v50 = vmax.f32 %v369_v44, 0.0  ;;  %v402_v51 = vmax.f32 %v370_v45, 0.0  ;;  %5474 = vmatprep.subr.bf16.mxu1 %v6126_v41  ;;  %v6186_v59 = vld [vmem:[#allocation2 + $0xc1] sm:$0xff]  ;;  %v6196_v60 = vld [vmem:[#allocation2 + $0xc9] sm:$0xff]  ;;  %v6198_v61 = vld [vmem:[#allocation2 + $0xd9] sm:$0xff] }
  0x34   : > { %5506 = vmatprep.subr.bf16.mxu0 %v6000_v42  ;;  %v372_v53 = vadd.f32 %v5955_v18, %v333_v48  ;;  %v403_v54 = vmax.f32 %v371_v52, 0.0  ;;  %7363 = vst [vmem:[#allocation4_spill] sm:$0xff] %v6198_v61  ;;  %v6200_v62 = vld [vmem:[#allocation2 + $0x1a] sm:$0xff]  ;;  %v4518_v63 = vld [vmem:[%s7324_s3 + $0xd0] sm:$0xff]  ;;  %v6218_v2 = vld [vmem:[#allocation2 + $0x22] sm:$0xff] }
  0x35   : > { %4971 = vmatmul.mubr.msk.f32.gmra.mrb[6].mxu1 %vm405_vm0, %v527_v26  ;;  %5192 = vmatmul.mubr.msk.f32.gmra.mrb[4].mxu0 %vm405_vm0, %v527_v26  ;;  %478 = vst.msk [vmem:[#allocation2 + $0x151] sm:$0xff] %vm405_vm0, %v399_v36  ;;  %480 = vst.msk [vmem:[#allocation2 + $0x169] sm:$0xff] %vm405_vm0, %v401_v50  ;;  %v4519_v0 = vld [vmem:[%s7324_s3 + $0xd8] sm:$0xff]  ;;  %v6216_v1 = vld [vmem:[#allocation2 + $0xe1] sm:$0xff] }
  0x36   : > { %4973 = vmatprep.mubr.msk.f32.mxu1 %vm405_vm0, %v528_v31  ;;  %5194 = vmatprep.mubr.msk.f32.mxu0 %vm405_vm0, %v528_v31  ;;  %481 = vst.msk [vmem:[#allocation2 + $0x171] sm:$0xff] %vm405_vm0, %v402_v51  ;;  %v404_v18 = vmax.f32 %v372_v53, 0.0  ;;  %482 = vst.msk [vmem:[#allocation2 + $0x181] sm:$0xff] %vm405_vm0, %v403_v54  ;;  %v6220_v3 = vld [vmem:[#allocation2 + $0xf1] sm:$0xff]  ;;  %v5509_v4 = vpack.c.bf16 %v4519_v0, %v4518_v63  ;;  %v4552_v6 = vld [vmem:[%s7324_s3 + $0xe0] sm:$0xff] }
  0x37   : > { %7364 = vst [vmem:[#allocation5_spill] sm:$0xff] %v6216_v1  ;;  %7365 = vst [vmem:[#allocation6_spill] sm:$0xff] %v6220_v3  ;;  %v6222_v5 = vld [vmem:[#allocation2 + $0x32] sm:$0xff]  ;;  %v4553_v23 = vld [vmem:[%s7324_s3 + $0xe8] sm:$0xff] }
  0x38   : > { %483 = vst.msk [vmem:[#allocation2 + $0x189] sm:$0xff] %vm405_vm0, %v404_v18  ;;  %v6237_v7 = vld [vmem:[#allocation2 + $0xf9] sm:$0xff]  ;;  %v6245_v11 = vld [vmem:[#allocation2 + $0x4a] sm:$0xff]  ;;  %v6247_v13 = vpack.c.bf16 %v4553_v23, %v4552_v6  ;;  %v6261_v16 = vld [vmem:[#allocation2 + $0x121] sm:$0xff] }
  0x39   : > { %4974 = vmatmul.mubr.msk.f32.gmra.mrb[8].mxu1 %vm405_vm0, %v6135_v46  ;;  %5195 = vmatmul.mubr.msk.f32.gmra.mrb[6].mxu0 %vm405_vm0, %v6135_v46  ;;  %7366 = vst [vmem:[#allocation7_spill] sm:$0xff] %v6237_v7  ;;  %v6239_v9 = vld [vmem:[#allocation2 + $0x3a] sm:$0xff]  ;;  %v6243_v10 = vld [vmem:[#allocation2 + $0x109] sm:$0xff]  ;;  %v6259_v14 = vld [vmem:[#allocation2 + $0x52] sm:$0xff] }
  0x3a   : > { %4976 = vmatprep.mubr.msk.f32.mxu1 %vm405_vm0, %v6142_v49  ;;  %5197 = vmatprep.mubr.msk.f32.mxu0 %vm405_vm0, %v6142_v49  ;;  %7367 = vst [vmem:[#allocation8_spill] sm:$0xff] %v6243_v10  ;;  %7369 = vst [vmem:[#allocation10_spill] sm:$0xff] %v6261_v16  ;;  %v6263_v17 = vld [vmem:[#allocation2 + $0x62] sm:$0xff]  ;;  %v6276_v20 = vld [vmem:[#allocation2 + $0x6a] sm:$0xff] }
  0x3b   : > { %v6274_v19 = vld [vmem:[#allocation2 + $0x129] sm:$0xff]  ;;  %v6278_v21 = vld [vmem:[#allocation2 + $0x139] sm:$0xff]  ;;  %v6290_v24 = vld [vmem:[#allocation2 + $0x141] sm:$0xff] }
  0x3c   : > { %7370 = vst [vmem:[#allocation11_spill] sm:$0xff] %v6274_v19  ;;  %7371 = vst [vmem:[#allocation12_spill] sm:$0xff] %v6278_v21  ;;  %v6280_v22 = vld [vmem:[#allocation2 + $0x7a] sm:$0xff]  ;;  %v6292_v25 = vld [vmem:[#allocation2 + $0x82] sm:$0xff] }
  0x3d   : > { %4977 = vmatmul.mubr.msk.f32.gmra.mrb[10].mxu1 %vm405_vm0, %v6158_v15  ;;  %5198 = vmatmul.mubr.msk.f32.gmra.mrb[8].mxu0 %vm405_vm0, %v6158_v15  ;;  %7372 = vst [vmem:[#allocation13_spill] sm:$0xff] %v6290_v24  ;;  %v6294_v26 = vld [vmem:[#allocation2 + $0x151] sm:$0xff]  ;;  %v6306_v28 = vld [vmem:[#allocation2 + $0x159] sm:$0xff]  ;;  %v6310_v30 = vld [vmem:[#allocation2 + $0x169] sm:$0xff] }
  0x3e   : > { %4979 = vmatprep.mubr.msk.f32.mxu1 %vm405_vm0, %v6160_v55  ;;  %5200 = vmatprep.mubr.msk.f32.mxu0 %vm405_vm0, %v6160_v55  ;;  %7373 = vst [vmem:[#allocation14_spill] sm:$0xff] %v6294_v26  ;;  %v6296_v27 = vld [vmem:[#allocation2 + $0x92] sm:$0xff]  ;;  %7374 = vst [vmem:[#allocation15_spill] sm:$0xff] %v6306_v28  ;;  %v6308_v29 = vld [vmem:[#allocation2 + $0x9a] sm:$0xff] }
  0x3f   : > { %7375 = vst [vmem:[#allocation16_spill] sm:$0xff] %v6310_v30  ;;  %v6312_v31 = vld [vmem:[#allocation2 + $0xaa] sm:$0xff]  ;;  %v6324_v33 = vld [vmem:[#allocation2 + $0xb2] sm:$0xff]  ;;  %v484_v34 = vld [vmem:[#allocation2] sm:$0xff] }
  0x40   : > { %v6322_v32 = vld [vmem:[#allocation2 + $0x171] sm:$0xff]  ;;  %v6326_v35 = vld [vmem:[#allocation2 + $0xc2] sm:$0xff]  ;;  %v6345_v43 = vld [vmem:[#allocation2 + $0xda] sm:$0xff] }
  0x41   : > { %4980 = vmatmul.mubr.msk.f32.gmra.mrb[12].mxu1 %vm405_vm0, %v6172_v56  ;;  %5201 = vmatmul.mubr.msk.f32.gmra.mrb[10].mxu0 %vm405_vm0, %v6172_v56  ;;  %7376 = vst [vmem:[#allocation17_spill] sm:$0xff] %v6322_v32  ;;  %v4374_v37 = vld [vmem:[%s7324_s3 + $0x50] sm:$0xff]  ;;  %v4375_v38 = vld [vmem:[%s7324_s3 + $0x58] sm:$0xff]  ;;  %v485_v39 = vld [vmem:[#allocation2 + $0x8] sm:$0xff] }
  0x42   : > { %4982 = vmatprep.mubr.msk.f32.mxu1 %vm405_vm0, %v6174_v57  ;;  %5203 = vmatprep.mubr.msk.f32.mxu0 %vm405_vm0, %v6174_v57  ;;  %v6341_v40 = vld [vmem:[#allocation2 + $0xca] sm:$0xff]  ;;  %v6343_v36 = vld [vmem:[#allocation2 + $0x18] sm:$0xff]  ;;  %v5477_v44 = vpack.c.bf16 %v4375_v38, %v4374_v37  ;;  %v4408_v45 = vld [vmem:[%s7324_s3 + $0x60] sm:$0xff] }
  0x43   : > { %7377 = vst [vmem:[#allocation18_spill] sm:$0xff] %v6341_v40  ;;  %7378 = vst [vmem:[#allocation19_spill] sm:$0xff] %v6343_v36  ;;  %v4409_v47 = vld [vmem:[%s7324_s3 + $0x68] sm:$0xff]  ;;  %v6360_v48 = vld [vmem:[#allocation2 + $0x20] sm:$0xff] }
  0x44   : > { %7379 = vst [vmem:[#allocation20_spill] sm:$0xff] %v6360_v48  ;;  %v6362_v50 = vld [vmem:[#allocation2 + $0xe2] sm:$0xff]  ;;  %v6365_v51 = vld [vmem:[#allocation2 + $0x30] sm:$0xff]  ;;  %v6369_v53 = vpack.c.bf16 %v4409_v47, %v4408_v45  ;;  %v6381_v54 = vld [vmem:[#allocation2 + $0xfa] sm:$0xff] }
  0x45   : > { %4983 = vmatmul.mubr.msk.f32.gmra.mrb[14].mxu1 %vm405_vm0, %v6184_v58  ;;  %5204 = vmatmul.mubr.msk.f32.gmra.mrb[12].mxu0 %vm405_vm0, %v6184_v58  ;;  %v6367_v52 = vld [vmem:[#allocation2 + $0xf2] sm:$0xff]  ;;  %v6383_v18 = vld [vmem:[#allocation2 + $0x48] sm:$0xff]  ;;  %v6400_v6 = vld [vmem:[#allocation2 + $0x60] sm:$0xff] }
  0x46   : > { %4985 = vmatprep.mubr.msk.f32.mxu1 %vm405_vm0, %v6186_v59  ;;  %5206 = vmatprep.mubr.msk.f32.mxu0 %vm405_vm0, %v6186_v59  ;;  %7381 = vst [vmem:[#allocation22_spill] sm:$0xff] %v6383_v18  ;;  %v6385_v63 = vld [vmem:[#allocation2 + $0x10a] sm:$0xff]  ;;  %7382 = vst [vmem:[#allocation23_spill] sm:$0xff] %v6400_v6  ;;  %v6402_v23 = vld [vmem:[#allocation2 + $0x122] sm:$0xff] }
  0x47   : > { %v6396_v0 = vld [vmem:[#allocation2 + $0x50] sm:$0xff]  ;;  %v6416_v38 = vld [vmem:[#allocation2 + $0x78] sm:$0xff]  ;;  %v6430_v45 = vld [vmem:[#allocation2 + $0x142] sm:$0xff] }
  0x48   : > { %v6414_v37 = vld [vmem:[#allocation2 + $0x12a] sm:$0xff]  ;;  %7384 = vst [vmem:[#allocation25_spill] sm:$0xff] %v6416_v38  ;;  %v6480_v12 = vld [vmem:[#allocation2 + $0xd8] sm:$0xff] }
  0x49   : > { %4986 = vmatmul.mubr.msk.f32.gmra.mrb[16].mxu1 %vm405_vm0, %v6196_v60  ;;  %5207 = vmatmul.mubr.msk.f32.gmra.mrb[14].mxu0 %vm405_vm0, %v6196_v60  ;;  %v6432_v47 = vld [vmem:[#allocation2 + $0x90] sm:$0xff] }
  0x4a   : > { %4988 = vmatprep.mubr.msk.f32.mxu1 %vm405_vm0, %v6198_v61  ;;  %5241 = vmatprep.mubr.msk.f32.mxu0 %vm405_vm0, %v6200_v62  ;;  %7386 = vst [vmem:[#allocation27_spill] sm:$0xff] %v6432_v47 }
  0x4d   : > { %4989 = vmatmul.mubr.msk.f32.gmra.mrb[18].mxu1 %vm405_vm0, %v6216_v1  ;;  %5242 = vmatmul.mubr.msk.f32.vlgmr.msra.gmra.mrb[0].mxu0 %vm405_vm0, %v6218_v2  ;;  %v4555_v1 = vld [vmem:[%s7324_s3 + $0xf8] sm:$0xff] }
  0x4e   : > { %5508 = vmatpush3.bf16.msra.mxu0 %v6000_v42  ;;  %4991 = vmatprep.mubr.msk.f32.mxu1 %vm405_vm0, %v6220_v3  ;;  %v6257_v42 = vld [vmem:[#allocation2 + $0x111] sm:$0xff] }
  0x4f   : > { %5244 = vmatprep.mubr.msk.f32.mxu0 %vm405_vm0, %v6222_v5  ;;  %5510 = vmatprep.subr.bf16.mxu0 %v5509_v4  ;;  %7368 = vst [vmem:[#allocation9_spill] sm:$0xff] %v6257_v42  ;;  %v4554_v3 = vld [vmem:[%s7324_s3 + $0xf0] sm:$0xff] }
  0x50   : > { %v5517_v61 = vpack.c.bf16 %v4555_v1, %v4554_v3  ;;  %v6513_v1 = vld [vmem:[#allocation2 + $0xf8] sm:$0xff]  ;;  %v6517_v3 = vld [vmem:[#allocation2 + $0x108] sm:$0xff] }
  0x51   : > { %4992 = vmatmul.mubr.msk.f32.gmra.mrb[20].mxu1 %vm405_vm0, %v6237_v7  ;;  %5245 = vmatmul.mubr.msk.f32.gmra.mrb[2].mxu0 %vm405_vm0, %v6239_v9  ;;  %v6478_v7 = vld [vmem:[#allocation2 + $0x18a] sm:$0xff] }
  0x52   : > { %4994 = vmatprep.mubr.msk.f32.mxu1 %vm405_vm0, %v6243_v10  ;;  %5247 = vmatprep.mubr.msk.f32.mxu0 %vm405_vm0, %v6245_v11  ;;  %v6476_v10 = vld [vmem:[#allocation2 + $0xc8] sm:$0xff]  ;;  %7392 = vst [vmem:[#allocation33_spill] sm:$0xff] %v6478_v7 }
  0x53   : > { %5512 = vmatpush3.bf16.msra.mxu0 %v5509_v4  ;;  %v6398_v4 = vld [vmem:[#allocation2 + $0x112] sm:$0xff] }
  0x54   : > { %5514 = vmatprep.subr.bf16.mxu0 %v6247_v13 }
  0x55   : > { %4995 = vmatmul.mubr.msk.f32.gmra.mrb[22].mxu1 %vm405_vm0, %v6257_v42  ;;  %5248 = vmatmul.mubr.msk.f32.gmra.mrb[4].mxu0 %vm405_vm0, %v6259_v14  ;;  %v6466_v42 = vld [vmem:[#allocation2 + $0x182] sm:$0xff] }
  0x56   : > { %4997 = vmatprep.mubr.msk.f32.mxu1 %vm405_vm0, %v6261_v16  ;;  %5250 = vmatprep.mubr.msk.f32.mxu0 %vm405_vm0, %v6263_v17  ;;  %v6464_v16 = vld [vmem:[#allocation2 + $0xc0] sm:$0xff]  ;;  %7391 = vst [vmem:[#allocation32_spill] sm:$0xff] %v6466_v42 }
  0x57   : > { %7390 = vst [vmem:[#allocation31_spill] sm:$0xff] %v6464_v16 }
  0x59   : > { %4998 = vmatmul.mubr.msk.f32.gmra.mrb[24].mxu1 %vm405_vm0, %v6274_v19  ;;  %5251 = vmatmul.mubr.msk.f32.gmra.mrb[6].mxu0 %vm405_vm0, %v6276_v20  ;;  %v6462_v19 = vld [vmem:[#allocation2 + $0x172] sm:$0xff] }
  0x5a   : > { %5000 = vmatprep.mubr.msk.f32.mxu1 %vm405_vm0, %v6278_v21  ;;  %5253 = vmatprep.mubr.msk.f32.mxu0 %vm405_vm0, %v6280_v22  ;;  %v6460_v21 = vld [vmem:[#allocation2 + $0xb0] sm:$0xff] }
  0x5b   : > { %7389 = vst [vmem:[#allocation30_spill] sm:$0xff] %v6460_v21 }
  0x5d   : > { %5001 = vmatmul.mubr.msk.f32.gmra.mrb[26].mxu1 %vm405_vm0, %v6290_v24  ;;  %5254 = vmatmul.mubr.msk.f32.gmra.mrb[8].mxu0 %vm405_vm0, %v6292_v25  ;;  %v6450_v24 = vld [vmem:[#allocation2 + $0x16a] sm:$0xff] }
  0x5e   : > { %5003 = vmatprep.mubr.msk.f32.mxu1 %vm405_vm0, %v6294_v26  ;;  %5256 = vmatprep.mubr.msk.f32.mxu0 %vm405_vm0, %v6296_v27  ;;  %v6448_v26 = vld [vmem:[#allocation2 + $0xa8] sm:$0xff] }
  0x5f   : > { %7388 = vst [vmem:[#allocation29_spill] sm:$0xff] %v6448_v26 }
  0x61   : > { %5004 = vmatmul.mubr.msk.f32.gmra.mrb[28].mxu1 %vm405_vm0, %v6306_v28  ;;  %5257 = vmatmul.mubr.msk.f32.gmra.mrb[10].mxu0 %vm405_vm0, %v6308_v29  ;;  %v6446_v28 = vld [vmem:[#allocation2 + $0x15a] sm:$0xff] }
  0x62   : > { %5006 = vmatprep.mubr.msk.f32.mxu1 %vm405_vm0, %v6310_v30  ;;  %5259 = vmatprep.mubr.msk.f32.mxu0 %vm405_vm0, %v6312_v31  ;;  %v6444_v30 = vld [vmem:[#allocation2 + $0x98] sm:$0xff] }
  0x63   : > { %7387 = vst [vmem:[#allocation28_spill] sm:$0xff] %v6444_v30 }
  0x65   : > { %5007 = vmatmul.mubr.msk.f32.gmra.mrb[30].mxu1 %vm405_vm0, %v6322_v32  ;;  %5260 = vmatmul.mubr.msk.f32.gmra.mrb[12].mxu0 %vm405_vm0, %v6324_v33  ;;  %v6434_v32 = vld [vmem:[#allocation2 + $0x152] sm:$0xff] }
  0x66   : > { %5017 = vmatprep.mubr.msk.f32.mxu1 %vm405_vm0, %v484_v34  ;;  %5262 = vmatprep.mubr.msk.f32.mxu0 %vm405_vm0, %v6326_v35  ;;  %v6412_v34 = vld [vmem:[#allocation2 + $0x68] sm:$0xff] }
  0x67   : > { %7383 = vst [vmem:[#allocation24_spill] sm:$0xff] %v6412_v34 }
  0x69   : > { %5018 = vmatmul.mubr.msk.f32.vlgmr.msra.gmra.mrb[0].mxu1 %vm405_vm0, %v485_v39  ;;  %5263 = vmatmul.mubr.msk.f32.gmra.mrb[14].mxu0 %vm405_vm0, %v6341_v40  ;;  %v6418_v39 = vld [vmem:[#allocation2 + $0x13a] sm:$0xff] }
  0x6a   : > { %5020 = vmatprep.mubr.msk.f32.mxu1 %vm405_vm0, %v6343_v36  ;;  %5265 = vmatprep.mubr.msk.f32.mxu0 %vm405_vm0, %v6345_v43  ;;  %v4589_v36 = vld [vmem:[%s7324_s3 + $0x108] sm:$0xff] }
  0x6b   : > { %5476 = vmatpush3.bf16.msra.mxu1 %v6126_v41  ;;  %v6379_v41 = vld [vmem:[#allocation2 + $0x38] sm:$0xff] }
  0x6c   : > { %5478 = vmatprep.subr.bf16.mxu1 %v5477_v44  ;;  %7380 = vst [vmem:[#allocation21_spill] sm:$0xff] %v6379_v41 }
  0x6d   : > { %5021 = vmatmul.mubr.msk.f32.gmra.mrb[2].mxu1 %vm405_vm0, %v6360_v48  ;;  %5266 = vmatmul.mubr.msk.f32.gmra.mrb[16].mxu0 %vm405_vm0, %v6362_v50  ;;  %v6498_v48 = vld [vmem:[#allocation2 + $0xf0] sm:$0xff] }
  0x6e   : > { %5023 = vmatprep.mubr.msk.f32.mxu1 %vm405_vm0, %v6365_v51  ;;  %5268 = vmatprep.mubr.msk.f32.mxu0 %vm405_vm0, %v6367_v52 }
  0x6f   : > { %5480 = vmatpush3.bf16.msra.mxu1 %v5477_v44  ;;  %v6428_v44 = vld [vmem:[#allocation2 + $0x80] sm:$0xff] }
  0x70   : > { %5482 = vmatprep.subr.bf16.mxu1 %v6369_v53  ;;  %7385 = vst [vmem:[#allocation26_spill] sm:$0xff] %v6428_v44 }
  0x71   : > { %5024 = vmatmul.mubr.msk.f32.gmra.mrb[4].mxu1 %vm405_vm0, %v6379_v41  ;;  %5269 = vmatmul.mubr.msk.f32.gmra.mrb[18].mxu0 %vm405_vm0, %v6381_v54 }
  0x72   : > { %5026 = vmatprep.mubr.msk.f32.mxu1 %vm405_vm0, %v6383_v18  ;;  %5271 = vmatprep.mubr.msk.f32.mxu0 %vm405_vm0, %v6385_v63 }
  0x75   : > { %5027 = vmatmul.mubr.msk.f32.gmra.mrb[6].mxu1 %vm405_vm0, %v6396_v0  ;;  %5272 = vmatmul.mubr.msk.f32.gmra.mrb[20].mxu0 %vm405_vm0, %v6398_v4 }
  0x76   : > { %5029 = vmatprep.mubr.msk.f32.mxu1 %vm405_vm0, %v6400_v6  ;;  %5274 = vmatprep.mubr.msk.f32.mxu0 %vm405_vm0, %v6402_v23 }
  0x79   : > { %5030 = vmatmul.mubr.msk.f32.gmra.mrb[8].mxu1 %vm405_vm0, %v6412_v34  ;;  %5275 = vmatmul.mubr.msk.f32.gmra.mrb[22].mxu0 %vm405_vm0, %v6414_v37 }
  0x7a   : > { %5032 = vmatprep.mubr.msk.f32.mxu1 %vm405_vm0, %v6416_v38  ;;  %5277 = vmatprep.mubr.msk.f32.mxu0 %vm405_vm0, %v6418_v39 }
  0x7d   : > { %5033 = vmatmul.mubr.msk.f32.gmra.mrb[10].mxu1 %vm405_vm0, %v6428_v44  ;;  %5278 = vmatmul.mubr.msk.f32.gmra.mrb[24].mxu0 %vm405_vm0, %v6430_v45 }
  0x7e   : > { %5035 = vmatprep.mubr.msk.f32.mxu1 %vm405_vm0, %v6432_v47  ;;  %5280 = vmatprep.mubr.msk.f32.mxu0 %vm405_vm0, %v6434_v32 }
  0x81   : > { %5036 = vmatmul.mubr.msk.f32.gmra.mrb[12].mxu1 %vm405_vm0, %v6444_v30  ;;  %5281 = vmatmul.mubr.msk.f32.gmra.mrb[26].mxu0 %vm405_vm0, %v6446_v28 }
  0x82   : > { %5038 = vmatprep.mubr.msk.f32.mxu1 %vm405_vm0, %v6448_v26  ;;  %5283 = vmatprep.mubr.msk.f32.mxu0 %vm405_vm0, %v6450_v24 }
  0x85   : > { %5039 = vmatmul.mubr.msk.f32.gmra.mrb[14].mxu1 %vm405_vm0, %v6460_v21  ;;  %5284 = vmatmul.mubr.msk.f32.gmra.mrb[28].mxu0 %vm405_vm0, %v6462_v19 }
  0x86   : > { %5041 = vmatprep.mubr.msk.f32.mxu1 %vm405_vm0, %v6464_v16  ;;  %5286 = vmatprep.mubr.msk.f32.mxu0 %vm405_vm0, %v6466_v42  ;;  %v6496_v42 = vld [vmem:[#allocation2 + $0xe0] sm:$0xff] }
  0x89   : > { %5042 = vmatmul.mubr.msk.f32.gmra.mrb[16].mxu1 %vm405_vm0, %v6476_v10  ;;  %5287 = vmatmul.mubr.msk.f32.gmra.mrb[30].mxu0 %vm405_vm0, %v6478_v7  ;;  %v4588_v7 = vld [vmem:[%s7324_s3 + $0x100] sm:$0xff] }
  0x8a   : > { %5044 = vmatprep.mubr.msk.f32.mxu1 %vm405_vm0, %v6480_v12  ;;  %5297 = vmatprep.mubr.msk.f32.mxu0 %vm405_vm0, %v6365_v51 }
  0x8d   : > { %5045 = vmatmul.mubr.msk.f32.gmra.mrb[18].mxu1 %vm405_vm0, %v6496_v42  ;;  %5298 = vmatmul.mubr.msk.f32.vlgmr.msra.gmra.mrb[0].mxu0 %vm405_vm0, %v6379_v41  ;;  %v6519_v41 = vpack.c.bf16 %v4589_v36, %v4588_v7  ;;  %v6542_v7 = vld [vmem:[#allocation2 + $0x128] sm:$0xff]  ;;  %v6544_v36 = vld [vmem:[#allocation2 + $0x138] sm:$0xff] }
  0x8e   : > { %5516 = vmatpush3.bf16.msra.mxu0 %v6247_v13  ;;  %5047 = vmatprep.mubr.msk.f32.mxu1 %vm405_vm0, %v6498_v48  ;;  %v6529_v13 = vld [vmem:[#allocation2 + $0x110] sm:$0xff] }
  0x8f   : > { %5300 = vmatprep.mubr.msk.f32.mxu0 %vm405_vm0, %v6383_v18  ;;  %5518 = vmatprep.subr.bf16.mxu0 %v5517_v61  ;;  %v6531_v18 = vld [vmem:[#allocation2 + $0x120] sm:$0xff] }
  0x91   : > { %5048 = vmatmul.mubr.msk.f32.gmra.mrb[20].mxu1 %vm405_vm0, %v6513_v1  ;;  %5301 = vmatmul.mubr.msk.f32.gmra.mrb[2].mxu0 %vm405_vm0, %v6396_v0 }
  0x92   : > { %5050 = vmatprep.mubr.msk.f32.mxu1 %vm405_vm0, %v6517_v3  ;;  %5303 = vmatprep.mubr.msk.f32.mxu0 %vm405_vm0, %v6400_v6 }
  0x93   : > { %5520 = vmatpush3.bf16.msra.mxu0 %v5517_v61  ;;  %v6554_v61 = vld [vmem:[#allocation2 + $0x140] sm:$0xff] }
  0x94   : > { %5522 = vmatprep.subr.bf16.mxu0 %v6519_v41 }
  0x95   : > { %5051 = vmatmul.mubr.msk.f32.gmra.mrb[22].mxu1 %vm405_vm0, %v6529_v13  ;;  %5304 = vmatmul.mubr.msk.f32.gmra.mrb[4].mxu0 %vm405_vm0, %v6412_v34  ;;  %v6556_v34 = vld [vmem:[#allocation2 + $0x150] sm:$0xff] }
  0x96   : > { %5053 = vmatprep.mubr.msk.f32.mxu1 %vm405_vm0, %v6531_v18  ;;  %5306 = vmatprep.mubr.msk.f32.mxu0 %vm405_vm0, %v6416_v38  ;;  %v6568_v38 = vld [vmem:[#allocation2 + $0x168] sm:$0xff] }
  0x99   : > { %5054 = vmatmul.mubr.msk.f32.gmra.mrb[24].mxu1 %vm405_vm0, %v6542_v7  ;;  %5307 = vmatmul.mubr.msk.f32.gmra.mrb[6].mxu0 %vm405_vm0, %v6428_v44  ;;  %v6566_v44 = vld [vmem:[#allocation2 + $0x158] sm:$0xff] }
  0x9a   : > { %5056 = vmatprep.mubr.msk.f32.mxu1 %vm405_vm0, %v6544_v36  ;;  %5309 = vmatprep.mubr.msk.f32.mxu0 %vm405_vm0, %v6432_v47  ;;  %v1199_v47 = vld [vmem:[#allocation2 + $0x2] sm:$0xff] }
  0x9d   : > { %5057 = vmatmul.mubr.msk.f32.gmra.mrb[26].mxu1 %vm405_vm0, %v6554_v61  ;;  %5310 = vmatmul.mubr.msk.f32.gmra.mrb[8].mxu0 %vm405_vm0, %v6444_v30  ;;  %v6578_v30 = vld [vmem:[#allocation2 + $0x170] sm:$0xff] }
  0x9e   : > { %5059 = vmatprep.mubr.msk.f32.mxu1 %vm405_vm0, %v6556_v34  ;;  %5312 = vmatprep.mubr.msk.f32.mxu0 %vm405_vm0, %v6448_v26  ;;  %v4410_v26 = vld [vmem:[%s7324_s3 + $0x70] sm:$0xff] }
  0xa1   : > { %5060 = vmatmul.mubr.msk.f32.gmra.mrb[28].mxu1 %vm405_vm0, %v6566_v44  ;;  %5313 = vmatmul.mubr.msk.f32.gmra.mrb[10].mxu0 %vm405_vm0, %v6460_v21  ;;  %v4411_v21 = vld [vmem:[%s7324_s3 + $0x78] sm:$0xff] }
  0xa2   : > { %5062 = vmatprep.mubr.msk.f32.mxu1 %vm405_vm0, %v6568_v38  ;;  %5315 = vmatprep.mubr.msk.f32.mxu0 %vm405_vm0, %v6464_v16  ;;  %v1200_v16 = vld [vmem:[#allocation2 + $0xa] sm:$0xff]  ;;  %v5485_v6 = vpack.c.bf16 %v4411_v21, %v4410_v26  ;;  %v2791_v21 = vld [vmem:[#allocation2 + $0x1a0] sm:$0xff] }
  0xa3   : > { %v3150_v26 = vld [vmem:[#allocation2 + $0x31] sm:$0xff] }
  0xa5   : > { %5063 = vmatmul.mubr.msk.f32.gmra.mrb[30].mxu1 %vm405_vm0, %v6578_v30  ;;  %5316 = vmatmul.mubr.msk.f32.gmra.mrb[12].mxu0 %vm405_vm0, %v6476_v10 }
  0xa6   : > { %5073 = vmatprep.mubr.msk.f32.mxu1 %vm405_vm0, %v1199_v47  ;;  %5318 = vmatprep.mubr.msk.f32.mxu0 %vm405_vm0, %v6480_v12  ;;  %v3151_v47 = vld [vmem:[#allocation2 + $0x39] sm:$0xff] }
  0xa9   : > { %5074 = vmatmul.mubr.msk.f32.vlgmr.msra.gmra.mrb[0].mxu1 %vm405_vm0, %v1200_v16  ;;  %5319 = vmatmul.mubr.msk.f32.gmra.mrb[14].mxu0 %vm405_vm0, %v6496_v42  ;;  %v2790_v16 = vld [vmem:[#allocation2 + $0x198] sm:$0xff] }
  0xaa   : > { %5076 = vmatprep.mubr.msk.f32.mxu1 %vm405_vm0, %v6200_v62  ;;  %5321 = vmatprep.mubr.msk.f32.mxu0 %vm405_vm0, %v6498_v48  ;;  %v6642_v62 = vld [vmem:[#allocation2 + $0x180] sm:$0xff] }
  0xab   : > { %5484 = vmatpush3.bf16.msra.mxu1 %v6369_v53  ;;  %v4590_v53 = vld [vmem:[%s7324_s3 + $0x110] sm:$0xff] }
  0xac   : > { %5486 = vmatprep.subr.bf16.mxu1 %v5485_v6 }
  0xad   : > { %5077 = vmatmul.mubr.msk.f32.gmra.mrb[2].mxu1 %vm405_vm0, %v6218_v2  ;;  %5322 = vmatmul.mubr.msk.f32.gmra.mrb[16].mxu0 %vm405_vm0, %v6513_v1  ;;  %v6652_v2 = vld [vmem:[#allocation2 + $0x188] sm:$0xff] }
  0xae   : > { %5079 = vmatprep.mubr.msk.f32.mxu1 %vm405_vm0, %v6222_v5  ;;  %5324 = vmatprep.mubr.msk.f32.mxu0 %vm405_vm0, %v6517_v3  ;;  %7393 = vst [vmem:[#allocation34_spill] sm:$0xff] %v6652_v2 }
  0xaf   : > { %5488 = vmatpush3.bf16.msra.mxu1 %v5485_v6  ;;  %v4591_v6 = vld [vmem:[%s7324_s3 + $0x118] sm:$0xff] }
  0xb0   : > { %5529 = vmatprep.subr.bf16.mxu1 %v5896_v8 }
  0xb1   : > { %5080 = vmatmul.mubr.msk.f32.gmra.mrb[4].mxu1 %vm405_vm0, %v6239_v9  ;;  %5325 = vmatmul.mubr.msk.f32.gmra.mrb[18].mxu0 %vm405_vm0, %v6529_v13 }
  0xb2   : > { %5082 = vmatprep.mubr.msk.f32.mxu1 %vm405_vm0, %v6245_v11  ;;  %5327 = vmatprep.mubr.msk.f32.mxu0 %vm405_vm0, %v6531_v18 }
  0xb5   : > { %5083 = vmatmul.mubr.msk.f32.gmra.mrb[6].mxu1 %vm405_vm0, %v6259_v14  ;;  %5328 = vmatmul.mubr.msk.f32.gmra.mrb[20].mxu0 %vm405_vm0, %v6542_v7 }
  0xb6   : > { %5085 = vmatprep.mubr.msk.f32.mxu1 %vm405_vm0, %v6263_v17  ;;  %5330 = vmatprep.mubr.msk.f32.mxu0 %vm405_vm0, %v6544_v36 }
  0xb9   : > { %5086 = vmatmul.mubr.msk.f32.gmra.mrb[8].mxu1 %vm405_vm0, %v6276_v20  ;;  %5331 = vmatmul.mubr.msk.f32.gmra.mrb[22].mxu0 %vm405_vm0, %v6554_v61 }
  0xba   : > { %5088 = vmatprep.mubr.msk.f32.mxu1 %vm405_vm0, %v6280_v22  ;;  %5333 = vmatprep.mubr.msk.f32.mxu0 %vm405_vm0, %v6556_v34 }
  0xbd   : > { %5089 = vmatmul.mubr.msk.f32.gmra.mrb[10].mxu1 %vm405_vm0, %v6292_v25  ;;  %5334 = vmatmul.mubr.msk.f32.gmra.mrb[24].mxu0 %vm405_vm0, %v6566_v44 }
  0xbe   : > { %5091 = vmatprep.mubr.msk.f32.mxu1 %vm405_vm0, %v6296_v27  ;;  %5336 = vmatprep.mubr.msk.f32.mxu0 %vm405_vm0, %v6568_v38 }
  0xc1   : > { %5092 = vmatmul.mubr.msk.f32.gmra.mrb[12].mxu1 %vm405_vm0, %v6308_v29  ;;  %5337 = vmatmul.mubr.msk.f32.gmra.mrb[26].mxu0 %vm405_vm0, %v6578_v30 }
  0xc2   : > { %5094 = vmatprep.mubr.msk.f32.mxu1 %vm405_vm0, %v6312_v31  ;;  %5339 = vmatprep.mubr.msk.f32.mxu0 %vm405_vm0, %v6642_v62 }
  0xc5   : > { %5095 = vmatmul.mubr.msk.f32.gmra.mrb[14].mxu1 %vm405_vm0, %v6324_v33  ;;  %5340 = vmatmul.mubr.msk.f32.gmra.mrb[28].mxu0 %vm405_vm0, %v6652_v2  ;;  %v3152_v2 = vld [vmem:[#allocation2 + $0x49] sm:$0xff] }
  0xc6   : > { %5097 = vmatprep.mubr.msk.f32.mxu1 %vm405_vm0, %v6326_v35  ;;  %5342 = vmatprep.mubr.msk.f32.mxu0 %vm405_vm0, %v2790_v16  ;;  %v5525_v16 = vpack.c.bf16 %v4591_v6, %v4590_v53  ;;  %v7409_v53 = vld [vmem:[#allocation25_spill] sm:$0xff]  ;;  %v7410_v6 = vld [vmem:[#allocation12_spill] sm:$0xff] }
  0xc9   : > { %5098 = vmatmul.mubr.msk.f32.gmra.mrb[16].mxu1 %vm405_vm0, %v6341_v40  ;;  %5343 = vmatmul.mubr.msk.f32.gmra.mrb[30].mxu0 %vm405_vm0, %v2791_v21  ;;  %v3153_v40 = vld [vmem:[#allocation2 + $0x51] sm:$0xff]  ;;  %v3154_v21 = vld [vmem:[#allocation2 + $0x61] sm:$0xff] }
  0xca   : > { %5100 = vmatprep.mubr.msk.f32.mxu1 %vm405_vm0, %v6345_v43  ;;  %5353 = vmatprep.mubr.msk.f32.mxu0 %vm405_vm0, %v3150_v26  ;;  %v7408_v26 = vld [vmem:[#allocation11_spill] sm:$0xff] }
  0xcd   : > { %5101 = vmatmul.mubr.msk.f32.gmra.mrb[18].mxu1 %vm405_vm0, %v6362_v50  ;;  %5354 = vmatmul.mubr.msk.f32.vlgmr.msra.gmra.mrb[0].mxu0 %vm405_vm0, %v3151_v47  ;;  %v7412_v47 = vld [vmem:[#allocation13_spill] sm:$0xff] }
  0xce   : > { %5524 = vmatpush3.bf16.msra.mxu0 %v6519_v41  ;;  %5103 = vmatprep.mubr.msk.f32.mxu1 %vm405_vm0, %v6367_v52  ;;  %v7406_v41 = vld [vmem:[#allocation10_spill] sm:$0xff] }
  0xcf   : > { %5356 = vmatprep.mubr.msk.f32.mxu0 %vm405_vm0, %v3152_v2  ;;  %5526 = vmatprep.subr.bf16.mxu0 %v5525_v16  ;;  %v7407_v2 = vld [vmem:[#allocation24_spill] sm:$0xff] }
  0xd1   : > { %5104 = vmatmul.mubr.msk.f32.gmra.mrb[20].mxu1 %vm405_vm0, %v6381_v54  ;;  %5357 = vmatmul.mubr.msk.f32.gmra.mrb[2].mxu0 %vm405_vm0, %v3153_v40  ;;  %v7403_v40 = vld [vmem:[#allocation8_spill] sm:$0xff] }
  0xd2   : > { %5106 = vmatprep.mubr.msk.f32.mxu1 %vm405_vm0, %v6385_v63  ;;  %5359 = vmatprep.mubr.msk.f32.mxu0 %vm405_vm0, %v3154_v21  ;;  %v7414_v21 = vld [vmem:[#allocation14_spill] sm:$0xff] }
  0xd3   : > { %5528 = vmatpush3.bf16.msra.mxu0 %v5525_v16  ;;  %v7413_v16 = vld [vmem:[#allocation27_spill] sm:$0xff] }
  0xd5   : > { %5107 = vmatmul.mubr.msk.f32.gmra.mrb[22].mxu1 %vm405_vm0, %v6398_v4  ;;  %5360 = vmatmul.mubr.msk.f32.gmra.mrb[4].mxu0 %vm405_vm0, %v6135_v46  ;;  %v7394_v46 = vld [vmem:[#allocation19_spill] sm:$0xff] }
  0xd6   : > { %5109 = vmatprep.mubr.msk.f32.mxu1 %vm405_vm0, %v6402_v23  ;;  %5362 = vmatprep.mubr.msk.f32.mxu0 %vm405_vm0, %v6142_v49  ;;  %v7395_v49 = vld [vmem:[#allocation4_spill] sm:$0xff] }
  0xd9   : > { %5110 = vmatmul.mubr.msk.f32.gmra.mrb[24].mxu1 %vm405_vm0, %v6414_v37  ;;  %5363 = vmatmul.mubr.msk.f32.gmra.mrb[6].mxu0 %vm405_vm0, %v6158_v15  ;;  %v7396_v15 = vld [vmem:[#allocation20_spill] sm:$0xff] }
  0xda   : > { %5112 = vmatprep.mubr.msk.f32.mxu1 %vm405_vm0, %v6418_v39  ;;  %5365 = vmatprep.mubr.msk.f32.mxu0 %vm405_vm0, %v6160_v55  ;;  %v7397_v55 = vld [vmem:[#allocation5_spill] sm:$0xff] }
  0xdd   : > { %5113 = vmatmul.mubr.msk.f32.gmra.mrb[26].mxu1 %vm405_vm0, %v6430_v45  ;;  %5366 = vmatmul.mubr.msk.f32.gmra.mrb[8].mxu0 %vm405_vm0, %v6172_v56  ;;  %v7398_v56 = vld [vmem:[#allocation6_spill] sm:$0xff] }
  0xde   : > { %5115 = vmatprep.mubr.msk.f32.mxu1 %vm405_vm0, %v6434_v32  ;;  %5368 = vmatprep.mubr.msk.f32.mxu0 %vm405_vm0, %v6174_v57  ;;  %v7399_v57 = vld [vmem:[#allocation3_spill] sm:$0xff] }
  0xe1   : > { %5116 = vmatmul.mubr.msk.f32.gmra.mrb[28].mxu1 %vm405_vm0, %v6446_v28  ;;  %5369 = vmatmul.mubr.msk.f32.gmra.mrb[10].mxu0 %vm405_vm0, %v6184_v58  ;;  %v7400_v58 = vld [vmem:[#allocation21_spill] sm:$0xff] }
  0xe2   : > { %5118 = vmatprep.mubr.msk.f32.mxu1 %vm405_vm0, %v6450_v24  ;;  %5371 = vmatprep.mubr.msk.f32.mxu0 %vm405_vm0, %v6186_v59  ;;  %v7401_v59 = vld [vmem:[#allocation7_spill] sm:$0xff] }
  0xe5   : > { %5119 = vmatmul.mubr.msk.f32.gmra.mrb[30].mxu1 %vm405_vm0, %v6462_v19  ;;  %5372 = vmatmul.mubr.msk.f32.gmra.mrb[12].mxu0 %vm405_vm0, %v6196_v60  ;;  %v7402_v60 = vld [vmem:[#allocation22_spill] sm:$0xff] }
  0xe6   : > { %5129 = vmatprep.mubr.msk.f32.mxu1 %vm405_vm0, %v7394_v46  ;;  %5374 = vmatprep.mubr.msk.f32.mxu0 %vm405_vm0, %v7395_v49  ;;  %v7415_v46 = vld [vmem:[#allocation28_spill] sm:$0xff]  ;;  %v7416_v49 = vld [vmem:[#allocation15_spill] sm:$0xff] }
  0xe9   : > { %5130 = vmatmul.mubr.msk.f32.vlgmr.msra.gmra.mrb[0].mxu1 %vm405_vm0, %v7396_v15  ;;  %5375 = vmatmul.mubr.msk.f32.gmra.mrb[14].mxu0 %vm405_vm0, %v7397_v55  ;;  %v7417_v15 = vld [vmem:[#allocation29_spill] sm:$0xff]  ;;  %v7418_v55 = vld [vmem:[#allocation16_spill] sm:$0xff] }
  0xea   : > { %5132 = vmatprep.mubr.msk.f32.mxu1 %vm405_vm0, %v6365_v51  ;;  %5377 = vmatprep.mubr.msk.f32.mxu0 %vm405_vm0, %v7398_v56  ;;  %v7405_v51 = vld [vmem:[#allocation23_spill] sm:$0xff]  ;;  %v6777_v56 = vld [vmem:[#allocation2 + $0x181] sm:$0xff] }
  0xeb   : > { %5531 = vmatpush3.bf16.msra.mxu1 %v5896_v8  ;;  %v7404_v8 = vld [vmem:[#allocation9_spill] sm:$0xff] }
  0xec   : > { %5530 = vmatprep.subr.bf16.mxu1 %v7399_v57 }
  0xed   : > { %5133 = vmatmul.mubr.msk.f32.gmra.mrb[2].mxu1 %vm405_vm0, %v7400_v58  ;;  %5378 = vmatmul.mubr.msk.f32.gmra.mrb[16].mxu0 %vm405_vm0, %v7401_v59  ;;  %v7420_v58 = vld [vmem:[#allocation17_spill] sm:$0xff]  ;;  %v7421_v59 = vld [vmem:[#allocation31_spill] sm:$0xff] }
  0xee   : > { %5135 = vmatprep.mubr.msk.f32.mxu1 %vm405_vm0, %v7402_v60  ;;  %5380 = vmatprep.mubr.msk.f32.mxu0 %vm405_vm0, %v7403_v40  ;;  %v6787_v60 = vld [vmem:[#allocation2 + $0x189] sm:$0xff]  ;;  %v3180_v40 = vld [vmem:[#allocation2 + $0x199] sm:$0xff] }
  0xef   : > { %5532 = vmatpush3.bf16.msra.mxu1 %v7399_v57  ;;  %v7419_v57 = vld [vmem:[#allocation30_spill] sm:$0xff] }
  0xf1   : > { %5136 = vmatmul.mubr.msk.f32.gmra.mrb[4].mxu1 %vm405_vm0, %v6396_v0  ;;  %5381 = vmatmul.mubr.msk.f32.gmra.mrb[18].mxu0 %vm405_vm0, %v7404_v8  ;;  %v7411_v0 = vld [vmem:[#allocation26_spill] sm:$0xff] }
  0xf2   : > { %5138 = vmatprep.mubr.msk.f32.mxu1 %vm405_vm0, %v7405_v51  ;;  %5383 = vmatprep.mubr.msk.f32.mxu0 %vm405_vm0, %v7406_v41  ;;  %v3181_v8 = vld [vmem:[#allocation2 + $0x1a1] sm:$0xff] }
  0xf5   : > { %5139 = vmatmul.mubr.msk.f32.gmra.mrb[6].mxu1 %vm405_vm0, %v7407_v2  ;;  %5384 = vmatmul.mubr.msk.f32.gmra.mrb[20].mxu0 %vm405_vm0, %v7408_v26 }
  0xf6   : > { %5141 = vmatprep.mubr.msk.f32.mxu1 %vm405_vm0, %v7409_v53  ;;  %5386 = vmatprep.mubr.msk.f32.mxu0 %vm405_vm0, %v7410_v6 }
  0xf9   : > { %5142 = vmatmul.mubr.msk.f32.gmra.mrb[8].mxu1 %vm405_vm0, %v7411_v0  ;;  %5387 = vmatmul.mubr.msk.f32.gmra.mrb[22].mxu0 %vm405_vm0, %v7412_v47 }
  0xfa   : > { %5144 = vmatprep.mubr.msk.f32.mxu1 %vm405_vm0, %v7413_v16  ;;  %5389 = vmatprep.mubr.msk.f32.mxu0 %vm405_vm0, %v7414_v21 }
  0xfd   : > { %5145 = vmatmul.mubr.msk.f32.gmra.mrb[10].mxu1 %vm405_vm0, %v7415_v46  ;;  %5390 = vmatmul.mubr.msk.f32.gmra.mrb[24].mxu0 %vm405_vm0, %v7416_v49 }
  0xfe   : > { %5147 = vmatprep.mubr.msk.f32.mxu1 %vm405_vm0, %v7417_v15  ;;  %5392 = vmatprep.mubr.msk.f32.mxu0 %vm405_vm0, %v7418_v55 }
 0x101   : > { %5148 = vmatmul.mubr.msk.f32.gmra.mrb[12].mxu1 %vm405_vm0, %v7419_v57  ;;  %5393 = vmatmul.mubr.msk.f32.gmra.mrb[26].mxu0 %vm405_vm0, %v7420_v58 }
 0x102   : > { %5150 = vmatprep.mubr.msk.f32.mxu1 %vm405_vm0, %v7421_v59  ;;  %5395 = vmatprep.mubr.msk.f32.mxu0 %vm405_vm0, %v6777_v56 }
 0x105   : > { %5151 = vmatmul.mubr.msk.f32.gmra.mrb[14].mxu1 %vm405_vm0, %v6476_v10  ;;  %5396 = vmatmul.mubr.msk.f32.gmra.mrb[28].mxu0 %vm405_vm0, %v6787_v60  ;;  %v1996_v10 = vld [vmem:[#allocation2 + $0xe1] sm:$0xff] }
 0x106   : > { %5153 = vmatprep.mubr.msk.f32.mxu1 %vm405_vm0, %v6480_v12  ;;  %5398 = vmatprep.mubr.msk.f32.mxu0 %vm405_vm0, %v3180_v40  ;;  %v1995_v12 = vld [vmem:[#allocation2 + $0xd9] sm:$0xff] }
 0x109   : > { %5154 = vmatmul.mubr.msk.f32.gmra.mrb[16].mxu1 %vm405_vm0, %v6496_v42  ;;  %5399 = vmatmul.mubr.msk.f32.gmra.mrb[30].mxu0 %vm405_vm0, %v3181_v8  ;;  %v1998_v42 = vld [vmem:[#allocation2 + $0xf9] sm:$0xff] }
 0x10a   : > { %5156 = vmatprep.mubr.msk.f32.mxu1 %vm405_vm0, %v6498_v48  ;;  %5409 = vmatprep.mubr.msk.f32.mxu0 %vm405_vm0, %v6222_v5  ;;  %v7422_v5 = vld [vmem:[#allocation34_spill] sm:$0xff] }
 0x10d   : > { %5157 = vmatmul.mubr.msk.f32.gmra.mrb[18].mxu1 %vm405_vm0, %v6513_v1  ;;  %5410 = vmatmul.mubr.msk.f32.vlgmr.msra.gmra.mrb[0].mxu0 %vm405_vm0, %v6239_v9  ;;  %v7423_v9 = vld [vmem:[#allocation18_spill] sm:$0xff] }
 0x10e   : > { %5159 = vmatprep.mubr.msk.f32.mxu1 %vm405_vm0, %v6517_v3  ;;  %5412 = vmatprep.mubr.msk.f32.mxu0 %vm405_vm0, %v6245_v11  ;;  %v1997_v11 = vld [vmem:[#allocation2 + $0xf1] sm:$0xff]  ;;  %v6922_v3 = vld [vmem:[%s7325_s4] ss:$0 sm:$0xff] }
 0x111   : > { %5160 = vmatmul.mubr.msk.f32.gmra.mrb[20].mxu1 %vm405_vm0, %v6529_v13  ;;  %5413 = vmatmul.mubr.msk.f32.gmra.mrb[2].mxu0 %vm405_vm0, %v6259_v14  ;;  %v1999_v14 = vld [vmem:[#allocation2 + $0x109] sm:$0xff] }
 0x112   : > { %5162 = vmatprep.mubr.msk.f32.mxu1 %vm405_vm0, %v6531_v18  ;;  %5415 = vmatprep.mubr.msk.f32.mxu0 %vm405_vm0, %v6263_v17  ;;  %v2000_v17 = vld [vmem:[#allocation2 + $0x111] sm:$0xff] }
 0x115   : > { %5163 = vmatmul.mubr.msk.f32.gmra.mrb[22].mxu1 %vm405_vm0, %v6542_v7  ;;  %5416 = vmatmul.mubr.msk.f32.gmra.mrb[4].mxu0 %vm405_vm0, %v6276_v20  ;;  %v2001_v20 = vld [vmem:[#allocation2 + $0x121] sm:$0xff] }
 0x116   : > { %5165 = vmatprep.mubr.msk.f32.mxu1 %vm405_vm0, %v6544_v36  ;;  %5418 = vmatprep.mubr.msk.f32.mxu0 %vm405_vm0, %v6280_v22  ;;  %v2002_v22 = vld [vmem:[#allocation2 + $0x129] sm:$0xff] }
 0x119   : > { %5166 = vmatmul.mubr.msk.f32.gmra.mrb[24].mxu1 %vm405_vm0, %v6554_v61  ;;  %5419 = vmatmul.mubr.msk.f32.gmra.mrb[6].mxu0 %vm405_vm0, %v6292_v25  ;;  %v2003_v25 = vld [vmem:[#allocation2 + $0x139] sm:$0xff] }
 0x11a   : > { %5168 = vmatprep.mubr.msk.f32.mxu1 %vm405_vm0, %v6556_v34  ;;  %5421 = vmatprep.mubr.msk.f32.mxu0 %vm405_vm0, %v6296_v27  ;;  %v2004_v27 = vld [vmem:[#allocation2 + $0x141] sm:$0xff] }
 0x11d   : > { %5169 = vmatmul.mubr.msk.f32.gmra.mrb[26].mxu1 %vm405_vm0, %v6566_v44  ;;  %5422 = vmatmul.mubr.msk.f32.gmra.mrb[8].mxu0 %vm405_vm0, %v6308_v29  ;;  %v2005_v29 = vld [vmem:[#allocation2 + $0x151] sm:$0xff] }
 0x11e   : > { %5171 = vmatprep.mubr.msk.f32.mxu1 %vm405_vm0, %v6568_v38  ;;  %5424 = vmatprep.mubr.msk.f32.mxu0 %vm405_vm0, %v6312_v31  ;;  %v2007_v31 = vld [vmem:[#allocation2 + $0x169] sm:$0xff] }
 0x121   : > { %5172 = vmatmul.mubr.msk.f32.gmra.mrb[28].mxu1 %vm405_vm0, %v6578_v30  ;;  %5425 = vmatmul.mubr.msk.f32.gmra.mrb[10].mxu0 %vm405_vm0, %v6324_v33  ;;  %v2006_v30 = vld [vmem:[#allocation2 + $0x159] sm:$0xff]  ;;  %v2008_v33 = vld [vmem:[#allocation2 + $0x171] sm:$0xff] }
 0x122   : > { %5174 = vmatprep.mubr.msk.f32.mxu1 %vm405_vm0, %v6642_v62  ;;  %5427 = vmatprep.mubr.msk.f32.mxu0 %vm405_vm0, %v6326_v35  ;;  %v3570_v35 = vld [vmem:[#allocation2 + $0x19a] sm:$0xff] }
 0x125   : > { %5175 = vmatmul.mubr.msk.f32.gmra.mrb[30].mxu1 %vm405_vm0, %v7422_v5  ;;  %5428 = vmatmul.mubr.msk.f32.gmra.mrb[12].mxu0 %vm405_vm0, %v7423_v9 }
 0x126   : > { %5209 = vmatprep.mubr.msk.f32.mxu1 %vm405_vm0, %v1995_v12  ;;  %5430 = vmatprep.mubr.msk.f32.mxu0 %vm405_vm0, %v6345_v43 }
 0x129   : > { %5210 = vmatmul.mubr.msk.f32.vlgmr.msra.gmra.mrb[16].mxu1 %vm405_vm0, %v1996_v10  ;;  %5431 = vmatmul.mubr.msk.f32.gmra.mrb[14].mxu0 %vm405_vm0, %v6362_v50 }
 0x12a   : > { %5212 = vmatprep.mubr.msk.f32.mxu1 %vm405_vm0, %v1997_v11  ;;  %5433 = vmatprep.mubr.msk.f32.mxu0 %vm405_vm0, %v6367_v52 }
 0x12d   : > { %5213 = vmatmul.mubr.msk.f32.gmra.mrb[18].mxu1 %vm405_vm0, %v1998_v42  ;;  %5434 = vmatmul.mubr.msk.f32.gmra.mrb[16].mxu0 %vm405_vm0, %v6381_v54 }
 0x12e   : > { %5215 = vmatprep.mubr.msk.f32.mxu1 %vm405_vm0, %v1999_v14  ;;  %5436 = vmatprep.mubr.msk.f32.mxu0 %vm405_vm0, %v6385_v63 }
 0x131   : > { %5216 = vmatmul.mubr.msk.f32.gmra.mrb[20].mxu1 %vm405_vm0, %v2000_v17  ;;  %5437 = vmatmul.mubr.msk.f32.gmra.mrb[18].mxu0 %vm405_vm0, %v6398_v4 }
 0x132   : > { %5218 = vmatprep.mubr.msk.f32.mxu1 %vm405_vm0, %v2001_v20  ;;  %5439 = vmatprep.mubr.msk.f32.mxu0 %vm405_vm0, %v6402_v23 }
 0x135   : > { %5219 = vmatmul.mubr.msk.f32.gmra.mrb[22].mxu1 %vm405_vm0, %v2002_v22  ;;  %5440 = vmatmul.mubr.msk.f32.gmra.mrb[20].mxu0 %vm405_vm0, %v6414_v37 }
 0x136   : > { %5221 = vmatprep.mubr.msk.f32.mxu1 %vm405_vm0, %v2003_v25  ;;  %5442 = vmatprep.mubr.msk.f32.mxu0 %vm405_vm0, %v6418_v39 }
 0x139   : > { %5222 = vmatmul.mubr.msk.f32.gmra.mrb[24].mxu1 %vm405_vm0, %v2004_v27  ;;  %5443 = vmatmul.mubr.msk.f32.gmra.mrb[22].mxu0 %vm405_vm0, %v6430_v45 }
 0x13a   : > { %5224 = vmatprep.mubr.msk.f32.mxu1 %vm405_vm0, %v2005_v29  ;;  %5445 = vmatprep.mubr.msk.f32.mxu0 %vm405_vm0, %v6434_v32  ;;  %v7424_v32 = vld [vmem:[#allocation32_spill] sm:$0xff] }
 0x13d   : > { %5225 = vmatmul.mubr.msk.f32.gmra.mrb[26].mxu1 %vm405_vm0, %v2006_v30  ;;  %5446 = vmatmul.mubr.msk.f32.gmra.mrb[24].mxu0 %vm405_vm0, %v6446_v28  ;;  %v7425_v28 = vld [vmem:[#allocation33_spill] sm:$0xff] }
 0x13e   : > { %5227 = vmatprep.mubr.msk.f32.mxu1 %vm405_vm0, %v2007_v31  ;;  %5448 = vmatprep.mubr.msk.f32.mxu0 %vm405_vm0, %v6450_v24  ;;  %v3571_v24 = vld [vmem:[#allocation2 + $0x1a2] sm:$0xff] }
 0x141   : > { %5228 = vmatmul.mubr.msk.f32.gmra.mrb[28].mxu1 %vm405_vm0, %v2008_v33  ;;  %5449 = vmatmul.mubr.msk.f32.gmra.mrb[26].mxu0 %vm405_vm0, %v6462_v19 }
 0x142   : > { %5230 = vmatprep.mubr.msk.f32.mxu1 %vm405_vm0, %v6777_v56  ;;  %5451 = vmatprep.mubr.msk.f32.mxu0 %vm405_vm0, %v7424_v32 }
 0x145   : > { %5231 = vmatmul.mubr.msk.f32.gmra.mrb[30].mxu1 %vm405_vm0, %v6787_v60  ;;  %5452 = vmatmul.mubr.msk.f32.gmra.mrb[28].mxu0 %vm405_vm0, %v7425_v28 }
 0x146   : > { %5454 = vmatprep.mubr.msk.f32.mxu0 %vm405_vm0, %v3570_v35 }
 0x149   : > { %5455 = vmatmul.mubr.msk.f32.gmra.mrb[30].mxu0 %vm405_vm0, %v3571_v24 }
 0x1bc   : > { %v5131_v43 = vpop.f32.mrb[0].mxu1 }
 0x1bd   : > { %v1788_v19 = vpop.f32.mrb[1].mxu1 }
 0x1c0   : > { %v5134_v48 = vpop.f32.mrb[2].mxu1 }
 0x1c1   : > { %v1798_v50 = vpop.f32.mrb[3].mxu1 }
 0x1c4   : > { %v5137_v52 = vpop.f32.mrb[4].mxu1 }
 0x1c5   : > { %v1808_v54 = vpop.f32.mrb[5].mxu1 }
 0x1c8   : > { %v5140_v18 = vpop.f32.mrb[6].mxu1 }
 0x1c9   : > { %v1818_v63 = vpop.f32.mrb[7].mxu1 }
 0x1cc   : > { %v5143_v4 = vpop.f32.mrb[8].mxu1 }
 0x1cd   : > { %v1828_v23 = vpop.f32.mrb[9].mxu1 }
 0x1d0   : > { %v6907_v34 = vpop.f32.mrb[10].mxu1 }
 0x1d1   : > { %v6909_v37 = vpop.f32.mrb[11].mxu1 }
 0x1d4   : > { %v6911_v38 = vpop.f32.mrb[12].mxu1 }
 0x1d5   : > { %v6913_v39 = vpop.f32.mrb[13].mxu1 }
 0x1d8   : > { %v6915_v44 = vpop.f32.mrb[14].mxu1 }
 0x1d9   : > { %v6917_v45 = vpop.f32.mrb[15].mxu1 }
 0x1e0   : > { %v5411_v1 = vpop.f32.mrb[0].mxu0 }
 0x1e1   : > { %v5533_v13 = vadd.f32 %v5411_v1, %v5131_v43  ;;  %v3739_v7 = vpop.f32.mrb[1].mxu0 }
 0x1e2   : > { %v5534_v36 = vadd.f32 %v3739_v7, %v1788_v19 }
 0x1e3   : > { %v6932_v61 = vadd.f32 %v5533_v13, %v6922_v3 }
 0x1e4   : > { %v6935_v62 = vadd.f32 %v5534_v36, %v6922_v3  ;;  %v5414_v51 = vpop.f32.mrb[2].mxu0 }
 0x1e5   : > { %3970 = vst.msk [vmem:[%s6929_s20 + $0x8] sm:$0xff] %vm405_vm0, %v6932_v61  ;;  %v5535_v41 = vadd.f32 %v5414_v51, %v5134_v48  ;;  %v3749_v2 = vpop.f32.mrb[3].mxu0  ;;  %v4002_v26 = vsel %vm405_vm0, %v6932_v61, 0.0 }
 0x1e6   : > { %3969 = vst.msk [vmem:[%s6929_s20] sm:$0xff] %vm405_vm0, %v6935_v62  ;;  %v4001_v53 = vsel %vm405_vm0, %v6935_v62, 0.0  ;;  %v5536_v6 = vadd.f32 %v3749_v2, %v1798_v50 }
 0x1e7   : > { %v6948_v0 = vadd.f32 %v5535_v41, %v6922_v3  ;;  %v4003_v21 = vadd.f32 %v4002_v26, %v4001_v53 }
 0x1e8   : > { %v6951_v47 = vadd.f32 %v5536_v6, %v6922_v3  ;;  %v5417_v16 = vpop.f32.mrb[4].mxu0 }
 0x1e9   : > { %3972 = vst.msk [vmem:[%s6929_s20 + $0x18] sm:$0xff] %vm405_vm0, %v6948_v0  ;;  %v5537_v46 = vadd.f32 %v5417_v16, %v5137_v52  ;;  %v3759_v49 = vpop.f32.mrb[5].mxu0  ;;  %v4006_v58 = vsel %vm405_vm0, %v6948_v0, 0.0 }
 0x1ea   : > { %3971 = vst.msk [vmem:[%s6929_s20 + $0x10] sm:$0xff] %vm405_vm0, %v6951_v47  ;;  %v4004_v15 = vsel %vm405_vm0, %v6951_v47, 0.0  ;;  %v5538_v55 = vadd.f32 %v3759_v49, %v1808_v54 }
 0x1eb   : > { %v4005_v56 = vadd.f32 %v4004_v15, %v4003_v21  ;;  %v6962_v57 = vadd.f32 %v5537_v46, %v6922_v3 }
 0x1ec   : > { %v6967_v59 = vadd.f32 %v5538_v55, %v6922_v3  ;;  %v5420_v60 = vpop.f32.mrb[6].mxu0 }
 0x1ed   : > { %3974 = vst.msk [vmem:[%s6929_s20 + $0x28] sm:$0xff] %vm405_vm0, %v6962_v57  ;;  %v4007_v40 = vadd.f32 %v4006_v58, %v4005_v56  ;;  %v5539_v8 = vadd.f32 %v5420_v60, %v5140_v18  ;;  %v3769_v12 = vpop.f32.mrb[7].mxu0  ;;  %v4010_v42 = vsel %vm405_vm0, %v6962_v57, 0.0 }
 0x1ee   : > { %3973 = vst.msk [vmem:[%s6929_s20 + $0x20] sm:$0xff] %vm405_vm0, %v6967_v59  ;;  %v4008_v5 = vsel %vm405_vm0, %v6967_v59, 0.0  ;;  %v5540_v9 = vadd.f32 %v3769_v12, %v1818_v63 }
 0x1ef   : > { %v4009_v10 = vadd.f32 %v4008_v5, %v4007_v40  ;;  %v6978_v11 = vadd.f32 %v5539_v8, %v6922_v3 }
 0x1f0   : > { %v6983_v14 = vadd.f32 %v5540_v9, %v6922_v3  ;;  %v5423_v17 = vpop.f32.mrb[8].mxu0 }
 0x1f1   : > { %3976 = vst.msk [vmem:[%s6929_s20 + $0x38] sm:$0xff] %vm405_vm0, %v6978_v11  ;;  %v4011_v20 = vadd.f32 %v4010_v42, %v4009_v10  ;;  %v5541_v22 = vadd.f32 %v5423_v17, %v5143_v4  ;;  %v3779_v25 = vpop.f32.mrb[9].mxu0  ;;  %v4014_v33 = vsel %vm405_vm0, %v6978_v11, 0.0 }
 0x1f2   : > { %3975 = vst.msk [vmem:[%s6929_s20 + $0x30] sm:$0xff] %vm405_vm0, %v6983_v14  ;;  %v4012_v27 = vsel %vm405_vm0, %v6983_v14, 0.0  ;;  %v5542_v29 = vadd.f32 %v3779_v25, %v1828_v23 }
 0x1f3   : > { %v4013_v30 = vadd.f32 %v4012_v27, %v4011_v20  ;;  %v6994_v31 = vadd.f32 %v5541_v22, %v6922_v3 }
 0x1f4   : > { %v6999_v32 = vadd.f32 %v5542_v29, %v6922_v3  ;;  %v5426_v35 = vpop.f32.mrb[10].mxu0 }
 0x1f5   : > { %3978 = vst.msk [vmem:[%s6929_s20 + $0x48] sm:$0xff] %vm405_vm0, %v6994_v31  ;;  %v4015_v28 = vadd.f32 %v4014_v33, %v4013_v30  ;;  %v5543_v24 = vadd.f32 %v5426_v35, %v6907_v34  ;;  %v3789_v43 = vpop.f32.mrb[11].mxu0  ;;  %v4018_v54 = vsel %vm405_vm0, %v6994_v31, 0.0 }
 0x1f6   : > { %3977 = vst.msk [vmem:[%s6929_s20 + $0x40] sm:$0xff] %vm405_vm0, %v6999_v32  ;;  %v4016_v19 = vsel %vm405_vm0, %v6999_v32, 0.0  ;;  %v5544_v48 = vadd.f32 %v3789_v43, %v6909_v37 }
 0x1f7   : > { %v4017_v50 = vadd.f32 %v4016_v19, %v4015_v28  ;;  %v7012_v52 = vadd.f32 %v5543_v24, %v6922_v3 }
 0x1f8   : > { %v7017_v18 = vadd.f32 %v5544_v48, %v6922_v3  ;;  %v5429_v63 = vpop.f32.mrb[12].mxu0 }
 0x1f9   : > { %3980 = vst.msk [vmem:[%s6929_s20 + $0x58] sm:$0xff] %vm405_vm0, %v7012_v52  ;;  %v4019_v4 = vadd.f32 %v4018_v54, %v4017_v50  ;;  %v5545_v23 = vadd.f32 %v5429_v63, %v6911_v38  ;;  %v3799_v34 = vpop.f32.mrb[13].mxu0  ;;  %v4022_v36 = vsel %vm405_vm0, %v7012_v52, 0.0 }
 0x1fa   : > { %3979 = vst.msk [vmem:[%s6929_s20 + $0x50] sm:$0xff] %vm405_vm0, %v7017_v18  ;;  %v4020_v37 = vsel %vm405_vm0, %v7017_v18, 0.0  ;;  %v5546_v1 = vadd.f32 %v3799_v34, %v6913_v39 }
 0x1fb   : > { %v4021_v13 = vadd.f32 %v4020_v37, %v4019_v4  ;;  %v7030_v7 = vadd.f32 %v5545_v23, %v6922_v3 }
 0x1fc   : > { %v7035_v51 = vadd.f32 %v5546_v1, %v6922_v3  ;;  %v5211_v38 = vpop.f32.mrb[16].mxu1  ;;  %v5432_v41 = vpop.f32.mrb[14].mxu0 }
 0x1fd   : > { %3982 = vst.msk [vmem:[%s6929_s20 + $0x68] sm:$0xff] %vm405_vm0, %v7030_v7  ;;  %v4023_v2 = vadd.f32 %v4022_v36, %v4021_v13  ;;  %v5547_v26 = vadd.f32 %v5432_v41, %v6915_v44  ;;  %v2258_v39 = vpop.f32.mrb[17].mxu1  ;;  %v3809_v53 = vpop.f32.mrb[15].mxu0  ;;  %v4026_v49 = vsel %vm405_vm0, %v7030_v7, 0.0 }
 0x1fe   : > { %3981 = vst.msk [vmem:[%s6929_s20 + $0x60] sm:$0xff] %vm405_vm0, %v7035_v51  ;;  %v4024_v6 = vsel %vm405_vm0, %v7035_v51, 0.0  ;;  %v5548_v16 = vadd.f32 %v3809_v53, %v6917_v45 }
 0x1ff   : > { %v4025_v21 = vadd.f32 %v4024_v6, %v4023_v2  ;;  %v7048_v46 = vadd.f32 %v5547_v26, %v6922_v3 }
 0x200   : > { %v7053_v44 = vadd.f32 %v5548_v16, %v6922_v3  ;;  %v5214_v15 = vpop.f32.mrb[18].mxu1  ;;  %v5435_v55 = vpop.f32.mrb[16].mxu0 }
 0x201   : > { %3984 = vst.msk [vmem:[%s6929_s20 + $0x78] sm:$0xff] %vm405_vm0, %v7048_v46  ;;  %v4027_v56 = vadd.f32 %v4026_v49, %v4025_v21  ;;  %v5549_v58 = vadd.f32 %v5435_v55, %v5211_v38  ;;  %v2268_v60 = vpop.f32.mrb[19].mxu1  ;;  %v3819_v45 = vpop.f32.mrb[17].mxu0  ;;  %v4030_v9 = vsel %vm405_vm0, %v7048_v46, 0.0 }
 0x202   : > { %3983 = vst.msk [vmem:[%s6929_s20 + $0x70] sm:$0xff] %vm405_vm0, %v7053_v44  ;;  %v4028_v40 = vsel %vm405_vm0, %v7053_v44, 0.0  ;;  %v5550_v8 = vadd.f32 %v3819_v45, %v2258_v39 }
 0x203   : > { %v4029_v12 = vadd.f32 %v4028_v40, %v4027_v56  ;;  %v7064_v5 = vadd.f32 %v5549_v58, %v6922_v3 }
 0x204   : > { %v7069_v10 = vadd.f32 %v5550_v8, %v6922_v3  ;;  %v5217_v42 = vpop.f32.mrb[20].mxu1  ;;  %v5438_v17 = vpop.f32.mrb[18].mxu0 }
 0x205   : > { %3986 = vst.msk [vmem:[%s6929_s20 + $0x88] sm:$0xff] %vm405_vm0, %v7064_v5  ;;  %v4031_v20 = vadd.f32 %v4030_v9, %v4029_v12  ;;  %v5551_v22 = vadd.f32 %v5438_v17, %v5214_v15  ;;  %v2278_v25 = vpop.f32.mrb[21].mxu1  ;;  %v3829_v27 = vpop.f32.mrb[19].mxu0  ;;  %v4034_v28 = vsel %vm405_vm0, %v7064_v5, 0.0 }
 0x206   : > { %3985 = vst.msk [vmem:[%s6929_s20 + $0x80] sm:$0xff] %vm405_vm0, %v7069_v10  ;;  %v4032_v29 = vsel %vm405_vm0, %v7069_v10, 0.0  ;;  %v5552_v30 = vadd.f32 %v3829_v27, %v2268_v60 }
 0x207   : > { %v4033_v33 = vadd.f32 %v4032_v29, %v4031_v20  ;;  %v7080_v35 = vadd.f32 %v5551_v22, %v6922_v3 }
 0x208   : > { %v7085_v24 = vadd.f32 %v5552_v30, %v6922_v3  ;;  %v5220_v43 = vpop.f32.mrb[22].mxu1  ;;  %v5441_v19 = vpop.f32.mrb[20].mxu0 }
 0x209   : > { %3988 = vst.msk [vmem:[%s6929_s20 + $0x98] sm:$0xff] %vm405_vm0, %v7080_v35  ;;  %v4035_v48 = vadd.f32 %v4034_v28, %v4033_v33  ;;  %v5553_v50 = vadd.f32 %v5441_v19, %v5217_v42  ;;  %v2288_v54 = vpop.f32.mrb[23].mxu1  ;;  %v3839_v63 = vpop.f32.mrb[21].mxu0  ;;  %v4038_v1 = vsel %vm405_vm0, %v7080_v35, 0.0 }
 0x20a   : > { %3987 = vst.msk [vmem:[%s6929_s20 + $0x90] sm:$0xff] %vm405_vm0, %v7085_v24  ;;  %v4036_v4 = vsel %vm405_vm0, %v7085_v24, 0.0  ;;  %v5554_v23 = vadd.f32 %v3839_v63, %v2278_v25 }
 0x20b   : > { %v4037_v34 = vadd.f32 %v4036_v4, %v4035_v48  ;;  %v7096_v37 = vadd.f32 %v5553_v50, %v6922_v3 }
 0x20c   : > { %v7101_v13 = vadd.f32 %v5554_v23, %v6922_v3  ;;  %v5223_v36 = vpop.f32.mrb[24].mxu1  ;;  %v5444_v38 = vpop.f32.mrb[22].mxu0 }
 0x20d   : > { %3990 = vst.msk [vmem:[%s6929_s20 + $0xa8] sm:$0xff] %vm405_vm0, %v7096_v37  ;;  %v4039_v41 = vadd.f32 %v4038_v1, %v4037_v34  ;;  %v5555_v2 = vadd.f32 %v5444_v38, %v5220_v43  ;;  %v2298_v26 = vpop.f32.mrb[25].mxu1  ;;  %v3849_v39 = vpop.f32.mrb[23].mxu0  ;;  %v4042_v49 = vsel %vm405_vm0, %v7096_v37, 0.0 }
 0x20e   : > { %3989 = vst.msk [vmem:[%s6929_s20 + $0xa0] sm:$0xff] %vm405_vm0, %v7101_v13  ;;  %v4040_v53 = vsel %vm405_vm0, %v7101_v13, 0.0  ;;  %v5556_v6 = vadd.f32 %v3849_v39, %v2288_v54 }
 0x20f   : > { %v4041_v16 = vadd.f32 %v4040_v53, %v4039_v41  ;;  %v7112_v21 = vadd.f32 %v5555_v2, %v6922_v3 }
 0x210   : > { %v7117_v15 = vadd.f32 %v5556_v6, %v6922_v3  ;;  %v5226_v55 = vpop.f32.mrb[26].mxu1  ;;  %v5447_v56 = vpop.f32.mrb[24].mxu0 }
 0x211   : > { %3992 = vst.msk [vmem:[%s6929_s20 + $0xb8] sm:$0xff] %vm405_vm0, %v7112_v21  ;;  %v4043_v58 = vadd.f32 %v4042_v49, %v4041_v16  ;;  %v5557_v60 = vadd.f32 %v5447_v56, %v5223_v36  ;;  %v2308_v45 = vpop.f32.mrb[27].mxu1  ;;  %v3859_v40 = vpop.f32.mrb[25].mxu0  ;;  %v4046_v17 = vsel %vm405_vm0, %v7112_v21, 0.0 }
 0x212   : > { %3991 = vst.msk [vmem:[%s6929_s20 + $0xb0] sm:$0xff] %vm405_vm0, %v7117_v15  ;;  %v4044_v8 = vsel %vm405_vm0, %v7117_v15, 0.0  ;;  %v5558_v12 = vadd.f32 %v3859_v40, %v2298_v26 }
 0x213   : > { %v4045_v9 = vadd.f32 %v4044_v8, %v4043_v58  ;;  %v7128_v42 = vadd.f32 %v5557_v60, %v6922_v3 }
 0x214   : > { %v7133_v20 = vadd.f32 %v5558_v12, %v6922_v3  ;;  %v5229_v22 = vpop.f32.mrb[28].mxu1  ;;  %v5450_v25 = vpop.f32.mrb[26].mxu0 }
 0x215   : > { %3994 = vst.msk [vmem:[%s6929_s20 + $0xc8] sm:$0xff] %vm405_vm0, %v7128_v42  ;;  %v4047_v27 = vadd.f32 %v4046_v17, %v4045_v9  ;;  %v5559_v29 = vadd.f32 %v5450_v25, %v5226_v55  ;;  %v2318_v30 = vpop.f32.mrb[29].mxu1  ;;  %v3869_v33 = vpop.f32.mrb[27].mxu0  ;;  %v4050_v50 = vsel %vm405_vm0, %v7128_v42, 0.0 }
 0x216   : > { %3993 = vst.msk [vmem:[%s6929_s20 + $0xc0] sm:$0xff] %vm405_vm0, %v7133_v20  ;;  %v4048_v28 = vsel %vm405_vm0, %v7133_v20, 0.0  ;;  %v5560_v43 = vadd.f32 %v3869_v33, %v2308_v45 }
 0x217   : > { %v4049_v19 = vadd.f32 %v4048_v28, %v4047_v27  ;;  %v7144_v48 = vadd.f32 %v5559_v29, %v6922_v3 }
 0x218   : > { %v3963_v54 = vadd.f32 %v5560_v43, %v6922_v3  ;;  %v5232_v63 = vpop.f32.mrb[30].mxu1  ;;  %v5453_v4 = vpop.f32.mrb[28].mxu0 }
 0x219   : > { %3996 = vst.msk [vmem:[%s6929_s20 + $0xd8] sm:$0xff] %vm405_vm0, %v7144_v48  ;;  %v4051_v23 = vadd.f32 %v4050_v50, %v4049_v19  ;;  %v5561_v34 = vadd.f32 %v5453_v4, %v5229_v22  ;;  %v2328_v1 = vpop.f32.mrb[31].mxu1  ;;  %v3879_v36 = vpop.f32.mrb[29].mxu0  ;;  %v4054_v39 = vsel %vm405_vm0, %v7144_v48, 0.0 }
 0x21a   : > { %3995 = vst.msk [vmem:[%s6929_s20 + $0xd0] sm:$0xff] %vm405_vm0, %v3963_v54  ;;  %v4052_v38 = vsel %vm405_vm0, %v3963_v54, 0.0  ;;  %v5562_v41 = vadd.f32 %v3879_v36, %v2318_v30 }
 0x21b   : > { %v4053_v2 = vadd.f32 %v4052_v38, %v4051_v23  ;;  %v3966_v26 = vadd.f32 %v5561_v34, %v6922_v3 }
 0x21c   : > { %v3965_v53 = vadd.f32 %v5562_v41, %v6922_v3  ;;  %v5456_v6 = vpop.f32.mrb[30].mxu0 }
 0x21d   : > { %3998 = vst.msk [vmem:[%s6929_s20 + $0xe8] sm:$0xff] %vm405_vm0, %v3966_v26  ;;  %v4055_v16 = vadd.f32 %v4054_v39, %v4053_v2  ;;  %v5563_v49 = vadd.f32 %v5456_v6, %v5232_v63  ;;  %v3889_v55 = vpop.f32.mrb[31].mxu0  ;;  %v4058_v40 = vsel %vm405_vm0, %v3966_v26, 0.0 }
 0x21e   : > { %3997 = vst.msk [vmem:[%s6929_s20 + $0xe0] sm:$0xff] %vm405_vm0, %v3965_v53  ;;  %v4056_v56 = vsel %vm405_vm0, %v3965_v53, 0.0  ;;  %v5564_v58 = vadd.f32 %v3889_v55, %v2328_v1 }
 0x21f   : > { %v4057_v60 = vadd.f32 %v4056_v56, %v4055_v16  ;;  %v3968_v45 = vadd.f32 %v5563_v49, %v6922_v3 }
 0x220   : > { %v3967_v8 = vadd.f32 %v5564_v58, %v6922_v3 }
 0x221   : > { %4000 = vst.msk [vmem:[%s6929_s20 + $0xf8] sm:$0xff] %vm405_vm0, %v3968_v45  ;;  %v4059_v12 = vadd.f32 %v4058_v40, %v4057_v60  ;;  %v4062_v22 = vsel %vm405_vm0, %v3968_v45, 0.0 }
 0x222   : > { %3999 = vst.msk [vmem:[%s6929_s20 + $0xf0] sm:$0xff] %vm405_vm0, %v3967_v8  ;;  %v4060_v9 = vsel %vm405_vm0, %v3967_v8, 0.0 }
 0x223   : > { %v4061_v17 = vadd.f32 %v4060_v9, %v4059_v12 }
 0x225   : > { %v4063_v25 = vadd.f32 %v4062_v22, %v4061_v17 }
 0x227   : > { %v4064_v27 = vrot.slane %v4063_v25, 4 }
 0x229   : > { %v4065_v29 = vadd.f32 %v4064_v27, %v4063_v25 }
 0x22b   : > { %v4066_v30 = vrot.slane %v4065_v29, 2 }
 0x22d   : > { %v4067_v33 = vadd.f32 %v4066_v30, %v4065_v29 }
 0x22f   : > { %v4068_v28 = vrot.slane %v4067_v33, 1 }
 0x231   : > { %v4069_v43 = vadd.f32 %v4068_v28, %v4067_v33 }
 0x233   : > { %v4070_v3 = vmul.f32 0.00390625, %v4069_v43 }
 0x235   : > { %4103 = vst.msk [vmem:[%s7177_s25] sm:$0x1] %vm413_vm2, %v4070_v3  ;;  %v4081_v19 = vsub.f32 %v7017_v18, %v4070_v3  ;;  %v4082_v50 = vsub.f32 %v7012_v52, %v4070_v3  ;;  %v4083_v63 = vsub.f32 %v7035_v51, %v4070_v3  ;;  %v7185_v4 = vsub.f32 %v7030_v7, %v4070_v3 }
 0x236   : > { %v7188_v23 = vsub.f32 %v7053_v44, %v4070_v3  ;;  %v7191_v34 = vsub.f32 %v7048_v46, %v4070_v3  ;;  %v7194_v1 = vsub.f32 %v7069_v10, %v4070_v3  ;;  %v7197_v36 = vsub.f32 %v7064_v5, %v4070_v3 }
 0x237   : > { %v7200_v18 = vsub.f32 %v7085_v24, %v4070_v3  ;;  %v7203_v52 = vsub.f32 %v7080_v35, %v4070_v3  ;;  %v7206_v7 = vsub.f32 %v7101_v13, %v4070_v3  ;;  %v7209_v51 = vsub.f32 %v7096_v37, %v4070_v3 }
 0x238   : > { %v7212_v46 = vsub.f32 %v7117_v15, %v4070_v3  ;;  %v7215_v44 = vsub.f32 %v7112_v21, %v4070_v3  ;;  %v7218_v5 = vsub.f32 %v7133_v20, %v4070_v3  ;;  %v7221_v10 = vsub.f32 %v7128_v42, %v4070_v3 }
 0x239   : > { %v7223_v35 = vsub.f32 %v3963_v54, %v4070_v3  ;;  %v7226_v24 = vsub.f32 %v7144_v48, %v4070_v3  ;;  %v7228_v13 = vsub.f32 %v3965_v53, %v4070_v3  ;;  %v7230_v37 = vsub.f32 %v3966_v26, %v4070_v3 }
 0x23a   : > { %v7232_v15 = vsub.f32 %v3967_v8, %v4070_v3  ;;  %v7234_v38 = vsub.f32 %v3968_v45, %v4070_v3  ;;  %v4071_v21 = vsub.f32 %v6935_v62, %v4070_v3  ;;  %v4072_v20 = vsub.f32 %v6932_v61, %v4070_v3 }
 0x23b   : > { %v4073_v42 = vsub.f32 %v6951_v47, %v4070_v3  ;;  %v4074_v54 = vsub.f32 %v6948_v0, %v4070_v3  ;;  %v4075_v48 = vsub.f32 %v6967_v59, %v4070_v3  ;;  %v4076_v26 = vsub.f32 %v6962_v57, %v4070_v3 }
 0x23c   : > { %v4104_v41 = vmul.f32 %v4071_v21, %v4071_v21  ;;  %v4105_v2 = vmul.f32 %v4072_v20, %v4072_v20  ;;  %v4077_v62 = vsub.f32 %v6983_v14, %v4070_v3  ;;  %v4078_v0 = vsub.f32 %v6978_v11, %v4070_v3 }
 0x23d   : > { %v4106_v39 = vmul.f32 %v4073_v42, %v4073_v42  ;;  %v4107_v53 = vmul.f32 %v4074_v54, %v4074_v54  ;;  %v4108_v61 = vmul.f32 %v4075_v48, %v4075_v48  ;;  %v4109_v56 = vmul.f32 %v4076_v26, %v4076_v26 }
 0x23e   : > { %v4136_v6 = vsel %vm405_vm0, %v4104_v41, 0.0  ;;  %v4137_v16 = vsel %vm405_vm0, %v4105_v2, 0.0  ;;  %v4079_v57 = vsub.f32 %v6999_v32, %v4070_v3  ;;  %v4110_v60 = vmul.f32 %v4077_v62, %v4077_v62 }
 0x23f   : > { %v4138_v49 = vadd.f32 %v4137_v16, %v4136_v6  ;;  %v4139_v47 = vsel %vm405_vm0, %v4106_v39, 0.0  ;;  %v4141_v59 = vsel %vm405_vm0, %v4107_v53, 0.0  ;;  %v4143_v45 = vsel %vm405_vm0, %v4108_v61, 0.0 }
 0x240   : > { %v4080_v8 = vsub.f32 %v6994_v31, %v4070_v3  ;;  %v4111_v12 = vmul.f32 %v4078_v0, %v4078_v0  ;;  %v4145_v14 = vsel %vm405_vm0, %v4109_v56, 0.0  ;;  %v4112_v17 = vmul.f32 %v4079_v57, %v4079_v57 }
 0x241   : > { %v4140_v55 = vadd.f32 %v4139_v47, %v4138_v49  ;;  %v4147_v22 = vsel %vm405_vm0, %v4110_v60, 0.0  ;;  %v4114_v30 = vmul.f32 %v4081_v19, %v4081_v19  ;;  %v4115_v28 = vmul.f32 %v4082_v50, %v4082_v50 }
 0x242   : > { %v4113_v25 = vmul.f32 %v4080_v8, %v4080_v8  ;;  %v4149_v27 = vsel %vm405_vm0, %v4111_v12, 0.0  ;;  %v4151_v32 = vsel %vm405_vm0, %v4112_v17, 0.0  ;;  %v4116_v3 = vmul.f32 %v4083_v63, %v4083_v63 }
 0x243   : > { %v4142_v58 = vadd.f32 %v4141_v59, %v4140_v55  ;;  %v4155_v21 = vsel %vm405_vm0, %v4114_v30, 0.0  ;;  %v4117_v42 = vmul.f32 %v7185_v4, %v7185_v4  ;;  %v4157_v54 = vsel %vm405_vm0, %v4115_v28, 0.0 }
 0x244   : > { %v4153_v43 = vsel %vm405_vm0, %v4113_v25, 0.0  ;;  %v4118_v19 = vmul.f32 %v7188_v23, %v7188_v23  ;;  %v4159_v2 = vsel %vm405_vm0, %v4116_v3, 0.0  ;;  %v4119_v50 = vmul.f32 %v7191_v34, %v7191_v34 }
 0x245   : > { %v4144_v40 = vadd.f32 %v4143_v45, %v4142_v58  ;;  %v4161_v63 = vsel %vm405_vm0, %v4117_v42, 0.0  ;;  %v4120_v26 = vmul.f32 %v7194_v1, %v7194_v1  ;;  %v4121_v6 = vmul.f32 %v7197_v36, %v7197_v36 }
 0x246   : > { %v4163_v4 = vsel %vm405_vm0, %v4118_v19, 0.0  ;;  %v4165_v23 = vsel %vm405_vm0, %v4119_v50, 0.0  ;;  %v4122_v49 = vmul.f32 %v7200_v18, %v7200_v18  ;;  %v4123_v61 = vmul.f32 %v7203_v52, %v7203_v52 }
 0x247   : > { %v4146_v9 = vadd.f32 %v4145_v14, %v4144_v40  ;;  %v4167_v34 = vsel %vm405_vm0, %v4120_v26, 0.0  ;;  %v4169_v1 = vsel %vm405_vm0, %v4121_v6, 0.0  ;;  %v4124_v55 = vmul.f32 %v7206_v7, %v7206_v7 }
 0x248   : > { %v4171_v36 = vsel %vm405_vm0, %v4122_v49, 0.0  ;;  %v4125_v56 = vmul.f32 %v7209_v51, %v7209_v51  ;;  %v4173_v18 = vsel %vm405_vm0, %v4123_v61, 0.0  ;;  %v4126_v58 = vmul.f32 %v7212_v46, %v7212_v46 }
 0x249   : > { %v4148_v11 = vadd.f32 %v4147_v22, %v4146_v9  ;;  %v4175_v52 = vsel %vm405_vm0, %v4124_v55, 0.0  ;;  %v4127_v60 = vmul.f32 %v7215_v44, %v7215_v44  ;;  %v4128_v40 = vmul.f32 %v7218_v5, %v7218_v5 }
 0x24a   : > { %v4177_v7 = vsel %vm405_vm0, %v4125_v56, 0.0  ;;  %v4179_v51 = vsel %vm405_vm0, %v4126_v58, 0.0  ;;  %v4129_v12 = vmul.f32 %v7221_v10, %v7221_v10  ;;  %v4130_v9 = vmul.f32 %v7223_v35, %v7223_v35 }
 0x24b   : > { %v4150_v29 = vadd.f32 %v4149_v27, %v4148_v11  ;;  %v4181_v46 = vsel %vm405_vm0, %v4127_v60, 0.0  ;;  %v4183_v44 = vsel %vm405_vm0, %v4128_v40, 0.0  ;;  %v4131_v22 = vmul.f32 %v7226_v24, %v7226_v24 }
 0x24c   : > { %v4185_v5 = vsel %vm405_vm0, %v4129_v12, 0.0  ;;  %v4132_v25 = vmul.f32 %v7228_v13, %v7228_v13  ;;  %v4187_v10 = vsel %vm405_vm0, %v4130_v9, 0.0  ;;  %v4135_v28 = vmul.f32 %v7234_v38, %v7234_v38 }
 0x24d   : > { %v4152_v33 = vadd.f32 %v4151_v32, %v4150_v29  ;;  %v4133_v29 = vmul.f32 %v7230_v37, %v7230_v37  ;;  %v4189_v35 = vsel %vm405_vm0, %v4131_v22, 0.0  ;;  %v4134_v32 = vmul.f32 %v7232_v15, %v7232_v15 }
 0x24e   : > { %v4191_v24 = vsel %vm405_vm0, %v4132_v25, 0.0  ;;  %v4197_v37 = vsel %vm405_vm0, %v4135_v28, 0.0 }
 0x24f   : > { %v4154_v31 = vadd.f32 %v4153_v43, %v4152_v33  ;;  %v4193_v13 = vsel %vm405_vm0, %v4133_v29, 0.0 }
 0x251   : > { %v4156_v20 = vadd.f32 %v4155_v21, %v4154_v31  ;;  %v4195_v31 = vsel %vm405_vm0, %v4134_v32, 0.0 }
 0x253   : > { %v4158_v41 = vadd.f32 %v4157_v54, %v4156_v20 }
 0x255   : > { %v4160_v48 = vadd.f32 %v4159_v2, %v4158_v41 }
 0x257   : > { %v4162_v39 = vadd.f32 %v4161_v63, %v4160_v48 }
 0x259   : > { %v4164_v53 = vadd.f32 %v4163_v4, %v4162_v39 }
 0x25b   : > { %v4166_v16 = vadd.f32 %v4165_v23, %v4164_v53 }
 0x25d   : > { %v4168_v62 = vadd.f32 %v4167_v34, %v4166_v16 }
 0x25f   : > { %v4170_v47 = vadd.f32 %v4169_v1, %v4168_v62 }
 0x261   : > { %v4172_v0 = vadd.f32 %v4171_v36, %v4170_v47 }
 0x263   : > { %v4174_v59 = vadd.f32 %v4173_v18, %v4172_v0 }
 0x265   : > { %v4176_v57 = vadd.f32 %v4175_v52, %v4174_v59 }
 0x267   : > { %v4178_v45 = vadd.f32 %v4177_v7, %v4176_v57 }
 0x269   : > { %v4180_v8 = vadd.f32 %v4179_v51, %v4178_v45 }
 0x26b   : > { %v4182_v14 = vadd.f32 %v4181_v46, %v4180_v8 }
 0x26d   : > { %v4184_v17 = vadd.f32 %v4183_v44, %v4182_v14 }
 0x26f   : > { %v4186_v11 = vadd.f32 %v4185_v5, %v4184_v17 }
 0x271   : > { %v4188_v27 = vadd.f32 %v4187_v10, %v4186_v11 }
 0x273   : > { %v4190_v30 = vadd.f32 %v4189_v35, %v4188_v27 }
 0x275   : > { %v4192_v33 = vadd.f32 %v4191_v24, %v4190_v30 }
 0x277   : > { %v4194_v43 = vadd.f32 %v4193_v13, %v4192_v33 }
 0x279   : > { %v4196_v3 = vadd.f32 %v4195_v31, %v4194_v43 }
 0x27b   : > { %v4198_v21 = vadd.f32 %v4197_v37, %v4196_v3 }
 0x27d   : > { %v4199_v20 = vrot.slane %v4198_v21, 4 }
 0x27f   : > { %v4200_v42 = vadd.f32 %v4199_v20, %v4198_v21 }
 0x281   : > { %v4201_v54 = vrot.slane %v4200_v42, 2 }
 0x283   : > { %v4202_v15 = vadd.f32 %v4201_v54, %v4200_v42 }
 0x285   : > { %v4203_v41 = vrot.slane %v4202_v15, 1 }
 0x287   : > { %v4204_v19 = vadd.f32 %v4203_v41, %v4202_v15 }
 0x289   : > { %4205 = vst.msk [vmem:[%s7177_s25 + $0x1] sm:$0x1] %vm413_vm2, %v4204_v19 }
 0x28a PF: > { %s17_s21 = sadd.s32 1, %s5804_s21  }
 0x28b   : > { %p14_p4 = scmp.ge.s32.totalorder %s17_s21, 4  }
 0x28d   :  { %16 = sbr.rel (!%p14_p4) target bundleno = 1 (0x1), region = 93 }

</bundles_post_ra>
